<compile_context>
chip_gen: v7x
topology: tpu7x:2x2x1
jax: 0.10.0
libtpu: 0.0.40
codegen_flags: <defaults>
</compile_context>

<pallas_src>
import functools

import jax
import jax.numpy as jnp
import numpy as np
from jax.experimental import pallas as pl
from jax.experimental.pallas import tpu as pltpu

# ----------------------------- model hyper-params ---------------------------
DIM = 16             # spatial resolution (dim x dim grid); power of two
LATENT_SIZE = 2
CHANNELS = 3
CH_PAD = 8           # final layer padded to 8 rows -> full-vreg (8, N) stores
HIDDEN = 32
HIDDEN_LAYERS = 3
OMEGA = 30.0

IN_FEATURES = 2 + LATENT_SIZE        # grid (2) + latent
NPIX = DIM * DIM                     # pixels per image
SHIFT = DIM.bit_length() - 1         # log2(DIM)
assert DIM == (1 << SHIFT), "DIM must be a power of two for the shift/mask path"
assert NPIX % 128 == 0, "NPIX must be lane-dense (multiple of 128)"


# ------------------------------- Pallas kernel ------------------------------
def siren_mlp_kernel(dim, shift,
                     latb_ref,
                     w0g_ref,
                     w1_ref, b1_ref,
                     w2_ref, b2_ref,
                     w3_ref, b3_ref,
                     wf_ref, bf_ref,
                     o_ref):
    """SIREN MLP for one (image, pixel-tile) grid cell; pixels on the lane axis.

    latb_ref: (1, HIDDEN, 1)   f32   per-image bias omega*(W0_lat @ z + b0)
    w0g_ref : (HIDDEN, 2)      f32   omega-scaled grid columns of layer 0
    wK_ref  : (HIDDEN, HIDDEN) bf16  omega-scaled hidden weights
    bK_ref  : (HIDDEN, 1)      f32   omega-scaled hidden biases
    wf_ref  : (CH_PAD, HIDDEN) bf16  final weights (rows >= CHANNELS are zero)
    bf_ref  : (CH_PAD, 1)      f32
    o_ref   : (1, CH_PAD, pixel_tile) f32
    """
    n_tile = o_ref.shape[-1]
    t0 = pl.program_id(1) * n_tile

    # ---- in-kernel grid coordinates: iota + shift/mask, no div/mod on VALU ----
    pix = jax.lax.broadcasted_iota(jnp.int32, (1, n_tile), 1) + t0      # (1, T)
    gi = -1.0 + (2.0 / dim) * (pix >> shift).astype(jnp.float32)        # row coord
    gj = -1.0 + (2.0 / dim) * (pix & (dim - 1)).astype(jnp.float32)     # col coord

    # ---- first sine layer: two VPU broadcast-FMAs + free per-image lane bias ----
    w0g = w0g_ref[...]                                                  # (H, 2)
    lat_b = latb_ref[0]                                                 # (H, 1)
    h = jnp.sin(w0g[:, 0:1] * gi + w0g[:, 1:2] * gj + lat_b)            # (H, T) f32

    # ---- hidden sine layers: bf16 MXU matmuls, f32 accumulate, f32 sin ----
    # (bf16 elementwise sin is a v6e/v7x-only follow-up; f32 is the safe choice
    #  on v5e which has no bf16 VPU/EUP path.)
    for w_ref, b_ref in ((w1_ref, b1_ref), (w2_ref, b2_ref), (w3_ref, b3_ref)):
        h = jnp.sin(jnp.dot(w_ref[...], h.astype(jnp.bfloat16),
                            preferred_element_type=jnp.float32) + b_ref[...])

    # ---- outermost linear (padded to CH_PAD rows) + tanh, full-vreg store ----
    out = jnp.tanh(jnp.dot(wf_ref[...], h.astype(jnp.bfloat16),
                           preferred_element_type=jnp.float32) + bf_ref[...])
    o_ref[0] = out.astype(o_ref.dtype)


def _choose_pixel_tile(batch, npix):
    """Lane-dense pixel tile; guarantee >= 2 total grid steps for v7x megacore."""
    if batch >= 2:
        return npix                    # grid = (batch, 1): >= 2 parallel steps
    half = npix // 2
    if half >= 128 and half % 128 == 0:
        return half                    # batch == 1: split pixels across both TCs
    return npix


def siren_generator_pallas(x, params):
    """x: (batch, LATENT_SIZE) latent codes -> (batch, CH_PAD, NPIX) f32."""
    batch = x.shape[0]
    (w0, b0), hidden, (wf, bf) = params

    # ---- one-time wrapper-side folding (per-layer / per-image, not per-pixel) ----
    w0g = (OMEGA * w0[:, :2]).astype(jnp.float32)                       # (H, 2)
    lat_bias = OMEGA * (jnp.dot(x, w0[:, 2:].T,
                                precision=jax.lax.Precision.HIGHEST) + b0)
    lat_bias = lat_bias.reshape(batch, HIDDEN, 1).astype(jnp.float32)   # (B, H, 1)

    flat_inputs = [lat_bias, w0g]
    for (w, b) in hidden:
        flat_inputs.append((OMEGA * w).astype(jnp.bfloat16))            # (H, H)
        flat_inputs.append((OMEGA * b).reshape(HIDDEN, 1).astype(jnp.float32))
    wf_p = jnp.zeros((CH_PAD, HIDDEN), jnp.float32).at[:CHANNELS].set(wf)
    bf_p = jnp.zeros((CH_PAD, 1), jnp.float32).at[:CHANNELS, 0].set(bf)
    flat_inputs.append(wf_p.astype(jnp.bfloat16))
    flat_inputs.append(bf_p)

    pixel_tile = _choose_pixel_tile(batch, NPIX)
    assert NPIX % pixel_tile == 0
    grid = (batch, NPIX // pixel_tile)

    def replicated_spec(arr):
        nd = arr.ndim
        return pl.BlockSpec(arr.shape, lambda b, i, _nd=nd: (0,) * _nd)

    in_specs = [pl.BlockSpec((1, HIDDEN, 1), lambda b, i: (b, 0, 0))]   # latent bias
    in_specs += [replicated_spec(a) for a in flat_inputs[1:]]           # weights
    out_spec = pl.BlockSpec((1, CH_PAD, pixel_tile), lambda b, i: (b, 0, i))

    n = batch * NPIX
    weight_bytes = (2 * HIDDEN * HIDDEN * HIDDEN_LAYERS + 2 * CH_PAD * HIDDEN
                    + 4 * HIDDEN * (HIDDEN_LAYERS + 3))
    cost = pl.CostEstimate(
        flops=2 * n * (2 * HIDDEN + HIDDEN_LAYERS * HIDDEN * HIDDEN
                       + HIDDEN * CH_PAD),
        transcendentals=n * ((1 + HIDDEN_LAYERS) * HIDDEN + CH_PAD),
        bytes_accessed=4 * n * CH_PAD + 4 * batch * HIDDEN + weight_bytes,
    )

    kernel = functools.partial(siren_mlp_kernel, DIM, SHIFT)

    return pl.pallas_call(
        kernel,
        out_shape=jax.ShapeDtypeStruct((batch, CH_PAD, NPIX), jnp.float32),
        grid_spec=pltpu.PrefetchScalarGridSpec(
            num_scalar_prefetch=0,
            grid=grid,
            in_specs=in_specs,
            out_specs=out_spec,
        ),
        compiler_params=pltpu.CompilerParams(
            dimension_semantics=("parallel", "parallel")),
        cost_estimate=cost,
    )(*flat_inputs)


# ------------------------------ parameter init -------------------------------
def init_params(key):
    """SIREN init; weights stored PyTorch-style (out, in), biases (out,)."""
    def uniform(k, shape, bound):
        return jax.random.uniform(k, shape, minval=-bound, maxval=bound,
                                  dtype=jnp.float32)

    keys = jax.random.split(key, 10)

    # first sine layer: weight uniform(-1/in, 1/in); bias = default Linear init
    w0 = uniform(keys[0], (HIDDEN, IN_FEATURES), 1.0 / IN_FEATURES)
    b0 = uniform(keys[1], (HIDDEN,), 1.0 / np.sqrt(IN_FEATURES))

    hidden = []
    wb = np.sqrt(6.0 / HIDDEN) / OMEGA
    for li in range(HIDDEN_LAYERS):
        w = uniform(keys[2 + 2 * li], (HIDDEN, HIDDEN), wb)
        b = uniform(keys[3 + 2 * li], (HIDDEN,), 1.0 / np.sqrt(HIDDEN))
        hidden.append((w, b))

    lb = 1.0 / np.sqrt(HIDDEN)
    wf = uniform(keys[8], (CHANNELS, HIDDEN), lb)
    bf = uniform(keys[9], (CHANNELS,), lb)
    return (w0, b0), tuple(hidden), (wf, bf)


# ------------------------------- generator glue ------------------------------
def generator_forward(x, params):
    """x: (batch, latent_size) -> (batch, channels, dim, dim)  (NCHW, like PyTorch)."""
    batch = x.shape[0]
    out = siren_generator_pallas(x, params)          # (batch, CH_PAD, NPIX)
    out = out[:, :CHANNELS, :]                       # drop zero-padded channel rows
    return out.reshape(batch, CHANNELS, DIM, DIM)    # free NCHW; no HBM transpose


# --------------------------- pure-JAX reference -------------------------------
def generator_reference(x, params):
    """Reference with matched omega folding and bf16 rounding of MXU operands."""
    def q(v):                                        # bf16 round-trip
        return v.astype(jnp.bfloat16).astype(jnp.float32)

    batch = x.shape[0]
    (w0, b0), hidden, (wf, bf) = params
    idx = jnp.arange(DIM, dtype=jnp.float32)
    gi, gj = jnp.meshgrid(-1.0 + 2.0 / DIM * idx, -1.0 + 2.0 / DIM * idx,
                          indexing="ij")
    grid = jnp.stack([gi.reshape(-1), gj.reshape(-1)], axis=1)          # (NPIX, 2)
    grid = jnp.tile(grid, (batch, 1))                                   # (N, 2)
    lat = jnp.repeat(x, NPIX, axis=0)                                   # (N, 2)
    inp = jnp.concatenate([grid, lat], axis=1)                          # (N, 4)

    h = jnp.sin(OMEGA * (jnp.dot(inp, w0.T,
                                 precision=jax.lax.Precision.HIGHEST) + b0))
    for (w, b) in hidden:
        h = jnp.sin(jnp.dot(q(h), q(OMEGA * w).T,
                            precision=jax.lax.Precision.HIGHEST) + OMEGA * b)
    out = jnp.tanh(jnp.dot(q(h), q(wf).T,
                           precision=jax.lax.Precision.HIGHEST) + bf)   # (N, C)
    out = out.reshape(batch, DIM, DIM, CHANNELS)
    return jnp.transpose(out, (0, 3, 1, 2))                             # NCHW


# ------------------------------------ main -----------------------------------
if __name__ == "__main__":
    key = jax.random.PRNGKey(0)
    pkey, xkey = jax.random.split(key)

    params = init_params(pkey)
    x = jax.random.normal(xkey, (2, LATENT_SIZE), dtype=jnp.float32)   # batch=2

    out = generator_forward(x, params)
    jax.block_until_ready(out)

    assert out.shape == (2, CHANNELS, DIM, DIM), out.shape
    assert bool(jnp.all(jnp.isfinite(out)))

    ref = generator_reference(x, params)
    max_err = float(jnp.max(jnp.abs(out - ref)))
    assert max_err < 0.05, f"max abs error vs reference: {max_err}"

    print("KERNEL_OK")
</pallas_src>

<mosaic_0001>
module attributes {stable_mosaic.version = 11 : i64} {
  func.func @siren_mlp_kernel(%arg0: i32, %arg1: i32, %arg2: memref<1x32x1xf32, #tpu.memory_space<vmem>>, %arg3: memref<32x2xf32, #tpu.memory_space<vmem>>, %arg4: memref<32x32xbf16, #tpu.memory_space<vmem>>, %arg5: memref<32x1xf32, #tpu.memory_space<vmem>>, %arg6: memref<32x32xbf16, #tpu.memory_space<vmem>>, %arg7: memref<32x1xf32, #tpu.memory_space<vmem>>, %arg8: memref<32x32xbf16, #tpu.memory_space<vmem>>, %arg9: memref<32x1xf32, #tpu.memory_space<vmem>>, %arg10: memref<8x32xbf16, #tpu.memory_space<vmem>>, %arg11: memref<8x1xf32, #tpu.memory_space<vmem>>, %arg12: memref<1x8x256xf32, #tpu.memory_space<vmem>>) attributes {dimension_semantics = [#tpu.dimension_semantics<parallel>, #tpu.dimension_semantics<parallel>], iteration_bounds = array<i64: 2, 1>, scalar_prefetch = 0 : i64, scratch_operands = 0 : i64, tpu.core_type = #tpu.core_type<tc>, window_params = [{transform_indices = @transform_0, window_bounds = array<i64: 1, 32, 1>}, {pipeline_mode = #tpu.pipeline_mode<synchronous>, transform_indices = @transform_1, window_bounds = array<i64: 32, 2>}, {pipeline_mode = #tpu.pipeline_mode<synchronous>, transform_indices = @transform_2, window_bounds = array<i64: 32, 32>}, {pipeline_mode = #tpu.pipeline_mode<synchronous>, transform_indices = @transform_3, window_bounds = array<i64: 32, 1>}, {pipeline_mode = #tpu.pipeline_mode<synchronous>, transform_indices = @transform_4, window_bounds = array<i64: 32, 32>}, {pipeline_mode = #tpu.pipeline_mode<synchronous>, transform_indices = @transform_5, window_bounds = array<i64: 32, 1>}, {pipeline_mode = #tpu.pipeline_mode<synchronous>, transform_indices = @transform_6, window_bounds = array<i64: 32, 32>}, {pipeline_mode = #tpu.pipeline_mode<synchronous>, transform_indices = @transform_7, window_bounds = array<i64: 32, 1>}, {pipeline_mode = #tpu.pipeline_mode<synchronous>, transform_indices = @transform_8, window_bounds = array<i64: 8, 32>}, {pipeline_mode = #tpu.pipeline_mode<synchronous>, transform_indices = @transform_9, window_bounds = array<i64: 8, 1>}, {transform_indices = @transform_10, window_bounds = array<i64: 1, 8, 256>}]} {
    %c256_i32 = arith.constant 256 : i32
    %0 = arith.muli %arg1, %c256_i32 : i32
    %1 = tpu.iota {dimensions = array<i32: 1>} : vector<1x256xi32>
    %2 = vector.broadcast %0 : i32 to vector<1x256xi32>
    %3 = arith.addi %1, %2 : vector<1x256xi32>
    %c4_i32 = arith.constant 4 : i32
    %4 = vector.broadcast %c4_i32 : i32 to vector<1x256xi32>
    %5 = arith.shrsi %3, %4 : vector<1x256xi32>
    %6 = arith.sitofp %5 : vector<1x256xi32> to vector<1x256xf32>
    %cst = arith.constant 1.250000e-01 : f32
    %7 = vector.broadcast %cst : f32 to vector<1x256xf32>
    %8 = arith.mulf %7, %6 : vector<1x256xf32>
    %cst_0 = arith.constant -1.000000e+00 : f32
    %9 = vector.broadcast %cst_0 : f32 to vector<1x256xf32>
    %10 = arith.addf %9, %8 : vector<1x256xf32>
    %c15_i32 = arith.constant 15 : i32
    %11 = vector.broadcast %c15_i32 : i32 to vector<1x256xi32>
    %12 = arith.andi %3, %11 : vector<1x256xi32>
    %13 = arith.sitofp %12 : vector<1x256xi32> to vector<1x256xf32>
    %cst_1 = arith.constant 1.250000e-01 : f32
    %14 = vector.broadcast %cst_1 : f32 to vector<1x256xf32>
    %15 = arith.mulf %14, %13 : vector<1x256xf32>
    %cst_2 = arith.constant -1.000000e+00 : f32
    %16 = vector.broadcast %cst_2 : f32 to vector<1x256xf32>
    %17 = arith.addf %16, %15 : vector<1x256xf32>
    %c0 = arith.constant 0 : index
    %c0_3 = arith.constant 0 : index
    %18 = vector.load %arg3[%c0, %c0_3] : memref<32x2xf32, #tpu.memory_space<vmem>>, vector<32x2xf32>
    %c0_4 = arith.constant 0 : index
    %c0_5 = arith.constant 0 : index
    %c0_6 = arith.constant 0 : index
    %19 = vector.load %arg2[%c0_4, %c0_5, %c0_6] : memref<1x32x1xf32, #tpu.memory_space<vmem>>, vector<1x32x1xf32>
    %20 = vector.shape_cast %19 : vector<1x32x1xf32> to vector<32x1xf32>
    %21 = vector.extract_strided_slice %18 {offsets = [0, 0], sizes = [32, 1], strides = [1, 1]} : vector<32x2xf32> to vector<32x1xf32>
    %22 = vector.broadcast %21 : vector<32x1xf32> to vector<32x256xf32>
    %23 = vector.broadcast %10 : vector<1x256xf32> to vector<32x256xf32>
    %24 = arith.mulf %22, %23 : vector<32x256xf32>
    %25 = vector.extract_strided_slice %18 {offsets = [0, 1], sizes = [32, 1], strides = [1, 1]} : vector<32x2xf32> to vector<32x1xf32>
    %26 = vector.broadcast %25 : vector<32x1xf32> to vector<32x256xf32>
    %27 = vector.broadcast %17 : vector<1x256xf32> to vector<32x256xf32>
    %28 = arith.mulf %26, %27 : vector<32x256xf32>
    %29 = arith.addf %24, %28 : vector<32x256xf32>
    %30 = vector.broadcast %20 : vector<32x1xf32> to vector<32x256xf32>
    %31 = arith.addf %29, %30 : vector<32x256xf32>
    %32 = math.sin %31 : vector<32x256xf32>
    %c0_7 = arith.constant 0 : index
    %c0_8 = arith.constant 0 : index
    %33 = vector.load %arg4[%c0_7, %c0_8] : memref<32x32xbf16, #tpu.memory_space<vmem>>, vector<32x32xbf16>
    %34 = arith.truncf %32 : vector<32x256xf32> to vector<32x256xbf16>
    %cst_9 = arith.constant dense<0.000000e+00> : vector<32x256xf32>
    %35 = tpu.matmul %33, %34, %cst_9 {dimension_numbers = #tpu.dot_dimension_numbers<[1], [0], [0], [1], [0, 0, 1, 1], [], []>} : vector<32x32xbf16>, vector<32x256xbf16>, vector<32x256xf32> -> vector<32x256xf32>
    %c0_10 = arith.constant 0 : index
    %c0_11 = arith.constant 0 : index
    %36 = vector.load %arg5[%c0_10, %c0_11] : memref<32x1xf32, #tpu.memory_space<vmem>>, vector<32x1xf32>
    %37 = vector.broadcast %36 : vector<32x1xf32> to vector<32x256xf32>
    %38 = arith.addf %35, %37 : vector<32x256xf32>
    %39 = math.sin %38 : vector<32x256xf32>
    %c0_12 = arith.constant 0 : index
    %c0_13 = arith.constant 0 : index
    %40 = vector.load %arg6[%c0_12, %c0_13] : memref<32x32xbf16, #tpu.memory_space<vmem>>, vector<32x32xbf16>
    %41 = arith.truncf %39 : vector<32x256xf32> to vector<32x256xbf16>
    %cst_14 = arith.constant dense<0.000000e+00> : vector<32x256xf32>
    %42 = tpu.matmul %40, %41, %cst_14 {dimension_numbers = #tpu.dot_dimension_numbers<[1], [0], [0], [1], [0, 0, 1, 1], [], []>} : vector<32x32xbf16>, vector<32x256xbf16>, vector<32x256xf32> -> vector<32x256xf32>
    %c0_15 = arith.constant 0 : index
    %c0_16 = arith.constant 0 : index
    %43 = vector.load %arg7[%c0_15, %c0_16] : memref<32x1xf32, #tpu.memory_space<vmem>>, vector<32x1xf32>
    %44 = vector.broadcast %43 : vector<32x1xf32> to vector<32x256xf32>
    %45 = arith.addf %42, %44 : vector<32x256xf32>
    %46 = math.sin %45 : vector<32x256xf32>
    %c0_17 = arith.constant 0 : index
    %c0_18 = arith.constant 0 : index
    %47 = vector.load %arg8[%c0_17, %c0_18] : memref<32x32xbf16, #tpu.memory_space<vmem>>, vector<32x32xbf16>
    %48 = arith.truncf %46 : vector<32x256xf32> to vector<32x256xbf16>
    %cst_19 = arith.constant dense<0.000000e+00> : vector<32x256xf32>
    %49 = tpu.matmul %47, %48, %cst_19 {dimension_numbers = #tpu.dot_dimension_numbers<[1], [0], [0], [1], [0, 0, 1, 1], [], []>} : vector<32x32xbf16>, vector<32x256xbf16>, vector<32x256xf32> -> vector<32x256xf32>
    %c0_20 = arith.constant 0 : index
    %c0_21 = arith.constant 0 : index
    %50 = vector.load %arg9[%c0_20, %c0_21] : memref<32x1xf32, #tpu.memory_space<vmem>>, vector<32x1xf32>
    %51 = vector.broadcast %50 : vector<32x1xf32> to vector<32x256xf32>
    %52 = arith.addf %49, %51 : vector<32x256xf32>
    %53 = math.sin %52 : vector<32x256xf32>
    %c0_22 = arith.constant 0 : index
    %c0_23 = arith.constant 0 : index
    %54 = vector.load %arg10[%c0_22, %c0_23] : memref<8x32xbf16, #tpu.memory_space<vmem>>, vector<8x32xbf16>
    %55 = arith.truncf %53 : vector<32x256xf32> to vector<32x256xbf16>
    %cst_24 = arith.constant dense<0.000000e+00> : vector<8x256xf32>
    %56 = tpu.matmul %54, %55, %cst_24 {dimension_numbers = #tpu.dot_dimension_numbers<[1], [0], [0], [1], [0, 0, 1, 1], [], []>} : vector<8x32xbf16>, vector<32x256xbf16>, vector<8x256xf32> -> vector<8x256xf32>
    %c0_25 = arith.constant 0 : index
    %c0_26 = arith.constant 0 : index
    %57 = vector.load %arg11[%c0_25, %c0_26] : memref<8x1xf32, #tpu.memory_space<vmem>>, vector<8x1xf32>
    %58 = vector.broadcast %57 : vector<8x1xf32> to vector<8x256xf32>
    %59 = arith.addf %56, %58 : vector<8x256xf32>
    %60 = math.tanh %59 : vector<8x256xf32>
    %c0_27 = arith.constant 0 : index
    %c0_28 = arith.constant 0 : index
    %c0_29 = arith.constant 0 : index
    %61 = vector.load %arg12[%c0_27, %c0_28, %c0_29] : memref<1x8x256xf32, #tpu.memory_space<vmem>>, vector<1x8x256xf32>
    %62 = vector.shape_cast %61 : vector<1x8x256xf32> to vector<8x256xf32>
    %63 = vector.shape_cast %60 : vector<8x256xf32> to vector<1x8x256xf32>
    tpu.vector_store %arg12[%c0_27, %c0_28, %c0_29], %63 {strides = array<i32>} : memref<1x8x256xf32, #tpu.memory_space<vmem>>, vector<1x8x256xf32>,
    return
  }
  func.func @transform_0(%arg0: i32, %arg1: i32) -> (i32, i32, i32) {
    %c0_i32 = arith.constant 0 : i32
    %c0_i32_0 = arith.constant 0 : i32
    %c0_i32_1 = arith.constant 0 : i32
    return %arg0, %c0_i32, %c0_i32_0 : i32, i32, i32
  }
  func.func @transform_1(%arg0: i32, %arg1: i32) -> (i32, i32) {
    %c0_i32 = arith.constant 0 : i32
    %c0_i32_0 = arith.constant 0 : i32
    %c0_i32_1 = arith.constant 0 : i32
    return %c0_i32, %c0_i32_0 : i32, i32
  }
  func.func @transform_2(%arg0: i32, %arg1: i32) -> (i32, i32) {
    %c0_i32 = arith.constant 0 : i32
    %c0_i32_0 = arith.constant 0 : i32
    %c0_i32_1 = arith.constant 0 : i32
    return %c0_i32, %c0_i32_0 : i32, i32
  }
  func.func @transform_3(%arg0: i32, %arg1: i32) -> (i32, i32) {
    %c0_i32 = arith.constant 0 : i32
    %c0_i32_0 = arith.constant 0 : i32
    %c0_i32_1 = arith.constant 0 : i32
    return %c0_i32, %c0_i32_0 : i32, i32
  }
  func.func @transform_4(%arg0: i32, %arg1: i32) -> (i32, i32) {
    %c0_i32 = arith.constant 0 : i32
    %c0_i32_0 = arith.constant 0 : i32
    %c0_i32_1 = arith.constant 0 : i32
    return %c0_i32, %c0_i32_0 : i32, i32
  }
  func.func @transform_5(%arg0: i32, %arg1: i32) -> (i32, i32) {
    %c0_i32 = arith.constant 0 : i32
    %c0_i32_0 = arith.constant 0 : i32
    %c0_i32_1 = arith.constant 0 : i32
    return %c0_i32, %c0_i32_0 : i32, i32
  }
  func.func @transform_6(%arg0: i32, %arg1: i32) -> (i32, i32) {
    %c0_i32 = arith.constant 0 : i32
    %c0_i32_0 = arith.constant 0 : i32
    %c0_i32_1 = arith.constant 0 : i32
    return %c0_i32, %c0_i32_0 : i32, i32
  }
  func.func @transform_7(%arg0: i32, %arg1: i32) -> (i32, i32) {
    %c0_i32 = arith.constant 0 : i32
    %c0_i32_0 = arith.constant 0 : i32
    %c0_i32_1 = arith.constant 0 : i32
    return %c0_i32, %c0_i32_0 : i32, i32
  }
  func.func @transform_8(%arg0: i32, %arg1: i32) -> (i32, i32) {
    %c0_i32 = arith.constant 0 : i32
    %c0_i32_0 = arith.constant 0 : i32
    %c0_i32_1 = arith.constant 0 : i32
    return %c0_i32, %c0_i32_0 : i32, i32
  }
  func.func @transform_9(%arg0: i32, %arg1: i32) -> (i32, i32) {
    %c0_i32 = arith.constant 0 : i32
    %c0_i32_0 = arith.constant 0 : i32
    %c0_i32_1 = arith.constant 0 : i32
    return %c0_i32, %c0_i32_0 : i32, i32
  }
  func.func @transform_10(%arg0: i32, %arg1: i32) -> (i32, i32, i32) {
    %c0_i32 = arith.constant 0 : i32
    %c0_i32_0 = arith.constant 0 : i32
    return %arg0, %c0_i32, %arg1 : i32, i32, i32
  }
}

</mosaic_0001>

<bundles_post_ra>
// kernel: tpu_custom_call.1
= control target key start
LH: loop header
LB: loop body
LE: loop exit
PB: predicated region body
PF: predicated region fallthrough
CT: control target
= control target key end

     0   :  { %15 = vsyncpa [#allocation3], 0  ;;  %s8125_s0 = inlined_call_operand.vmem [shape: f32[2,32,1], index: 0, kind: input, shape index: {}]   ;;  %s8126_s1 = inlined_call_operand.vmem [shape: f32[32,2], index: 1, kind: input, shape index: {}]   ;;  %s8127_s2 = inlined_call_operand.vmem [shape: bf16[32,32], index: 2, kind: input, shape index: {}]   ;;  %s8128_s3 = inlined_call_operand.vmem [shape: f32[32,1], index: 3, kind: input, shape index: {}]   ;;  %s8129_s4 = inlined_call_operand.vmem [shape: bf16[32,32], index: 4, kind: input, shape index: {}]   ;;  %s8130_s5 = inlined_call_operand.vmem [shape: f32[32,1], index: 5, kind: input, shape index: {}]   ;;  %s8131_s6 = inlined_call_operand.vmem [shape: bf16[32,32], index: 6, kind: input, shape index: {}]   ;;  %s8132_s7 = inlined_call_operand.vmem [shape: f32[32,1], index: 7, kind: input, shape index: {}]   ;;  %s8133_s8 = inlined_call_operand.vmem [shape: bf16[8,32], index: 8, kind: input, shape index: {}]   ;;  %s8134_s9 = inlined_call_operand.vmem [shape: f32[8,1], index: 9, kind: input, shape index: {}]   ;;  %s8135_s10 = inlined_call_operand.hbm [shape: f32[2,8,256], index: 10, kind: output, shape index: {}]  }
   0x1   :  { %17 = vsyncpa [#allocation3 + $0x1], 0  ;;  %s4906_s13 = smov 0   ;;  %s4908_s14 = smov 0  }
   0x2   :  { %s4910_s15 = smov 0   ;;  %s4912_s16 = smov 0  }
   0x3   :  { %s4914_s17 = smov 0   ;;  %s4916_s18 = smov 0  }
   0x4 LB: > { %s4271_s19 = sadd.s32 4294967295, %s4840_s18   ;;  %s4272_s20 = sadd.s32 4294967294, %s4840_s18   ;;  %s4840_s18 = sphi %s4916_s18, %s23_s18   ;;  %s4836_s17 = sphi %s4914_s17, %s8398_s17   ;;  %s4832_s16 = sphi %s4912_s16, %s8397_s16   ;;  %s4828_s15 = sphi %s4910_s15, %s8396_s15   ;;  %s4824_s14 = sphi %s4908_s14, %s8395_s14   ;;  %s4820_s13 = sphi %s4906_s13, %s8394_s13  }
   0x5   : > { %s35_s21 = sadd.s32 1, %s4836_s17  ;;  %s259_s22 = sadd.s32 1, %s4828_s15 }
   0x6   : > { %p37_p0 = scmp.ge.s32.totalorder %s35_s21, 2  ;;  %p269_p1 = scmp.ne.s32.totalorder %s4828_s15, %s4824_s14 }
   0x7   : > { %p270_p2 = scmp.eq.s32.totalorder %s4271_s19, 1  ;;  %p275_p3 = scmp.ne.s32.totalorder %s4824_s14, %s4820_s13 }
   0x8   : > { %s8400_s21 = smov (%p37_p0, %s35_s21), 0  ;;  %p276_p5 = scmp.eq.s32.totalorder %s4272_s20, 1 }
   0x9   : > { %p4946_p4 = por %p270_p2, %p269_p1  ;;  %s254_s24 = ssub.s32 %s4836_s17, %s8400_s21 }
   0xa   : > { %p4275_p6 = scmp.ge.s32.totalorder %s4840_s18, 1  ;;  %p257_p7 = scmp.eq.s32.totalorder %s254_s24, 0 }
   0xb   : > { %p4953_p8 = por %p276_p5, %p275_p3  ;;  %p329_p9 = scmp.lt.s32.totalorder %s4840_s18, 3 }
   0xc   : > { %s4959_s26 = scalar_select %p257_p7, %s4828_s15, %s259_s22  }
   0xd   : > { %p330_p10 = pnand %p4275_p6, %p329_p9 }
   0xf   : > { %333 = sbr.rel (%p330_p10) target bundleno = 1923 (0x783), region = 60 }
  0x16   : > { %v399_v0 = vld [vmem:[%s8126_s1 + $0x10] sm:$0xff]  ;;  %v397_v1 = vld [vmem:[%s8126_s1] sm:$0xff]  ;;  %v4842_v2 = vmov 1   ;;  %p367_p11 = scmp.lt.s32.totalorder %s4832_s16, 1  ;;  %v398_v3 = vld [vmem:[%s8126_s1 + $0x8] sm:$0xff]  ;;  %v8136_v4 = vmov 0   ;;  %v375_v23 = vlaneseq }
  0x17   : > { %4620 = vset.pattern.permute.xlu0 %v4842_v2  ;;  %4618 = vset.pattern.permute.xlu1 %v4842_v2  ;;  %v400_v5 = vld [vmem:[%s8126_s1 + $0x18] sm:$0xff]  ;;  %v1333_v8 = vld [vmem:[%s8128_s3] sm:$0xff]  ;;  %v1335_v10 = vld [vmem:[%s8128_s3 + $0x10] sm:$0xff]  ;;  %s364_s11 = sand.u32 1, %s4824_s14  }
  0x18   : > { %442 = vperm.xlu0 %4620, %v399_v0   ;;  %434 = vperm.xlu1 %4618, %v397_v1   ;;  %s368_s19 = scalar_select %p367_p11, %s4832_s16, 1  ;;  %v2267_v12 = vld [vmem:[%s8130_s5] sm:$0xff]  ;;  %v1334_v13 = vld [vmem:[%s8128_s3 + $0x8] sm:$0xff]  ;;  %v2269_v14 = vld [vmem:[%s8130_s5 + $0x10] sm:$0xff]  ;;  %v376_v26 = vand.u32 127, %v375_v23 }
  0x19   : > { %1406 = vmatprep.mubr.bf16.mxu0 %v8136_v4  ;;  %2339 = vmatprep.mubr.bf16.mxu1 %v8136_v4  ;;  %v1336_v15 = vld [vmem:[%s8128_s3 + $0x18] sm:$0xff]  ;;  %v3200_v16 = vld [vmem:[%s8132_s7] sm:$0xff]  ;;  %v2268_v17 = vld [vmem:[%s8130_s5 + $0x8] sm:$0xff]  ;;  %s4276_s12 = sshll.u32 %s364_s11, 4  ;;  %s4185_s28 = scalar_lea.sflag [#allocation3], %s364_s11 }
  0x1a   : > { %s4425_s24 = sshll.u32 %s368_s19, 5  ;;  %v3202_v18 = vld [vmem:[%s8132_s7 + $0x10] sm:$0xff]  ;;  %v2270_v19 = vld [vmem:[%s8130_s5 + $0x18] sm:$0xff]  ;;  %v4130_v20 = vld [vmem:[%s8134_s9] sm:$0xff]  ;;  %v381_v29 = vshra.s32 %v376_v26, 4  ;;  %v389_v30 = vand.u32 15, %v376_v26 }
  0x1b   : > { %s371_s29 = scalar_lea.vmem %s8125_s0, %s4425_s24  ;;  %v3201_v21 = vld [vmem:[%s8132_s7 + $0x8] sm:$0xff]  ;;  %v3203_v22 = vld [vmem:[%s8132_s7 + $0x18] sm:$0xff]  ;;  %v377_v35 = vadd.s32 128, %v376_v26  ;;  %s366_s19 = scalar_lea.vmem [#allocation2], %s4276_s12 }
  0x1c   : > { %4621 = vset.pattern.permute.xlu0 %v8136_v4  ;;  %438 = vperm.xlu1 %4618, %v398_v3   ;;  %v402_v6 = vld [vmem:[%s371_s29 + $0x8] sm:$0xff]  ;;  %v401_v7 = vld [vmem:[%s371_s29] sm:$0xff]  ;;  %v403_v9 = vld [vmem:[%s371_s29 + $0x10] sm:$0xff]  ;;  %v383_v31 = vcvt.s32.f32 %v381_v29  ;;  %v391_v34 = vcvt.s32.f32 %v389_v30  ;;  %s4201_s20 = sshll.u32 %s366_s19, 4  ;;  %s8080_s20 = int_to_ptr.vmem [resolvable:$true] %s4201_s20 }
  0x1d   : > { %407 = vperm.xlu0 %4621, %v397_v1   ;;  %v404_v11 = vld [vmem:[%s371_s29 + $0x18] sm:$0xff]  ;;  %v382_v37 = vshra.s32 %v377_v35, 4  ;;  %v390_v40 = vand.u32 15, %v377_v35  ;;  %s4426_s29 = sshll.u32 %s4832_s16, 8  ;;  %s4762_s30 = scalar_lea.vmem %s8080_s20, 256 }
  0x1e   : > { %v385_v36 = vmul.f32 0.125, %v383_v31  ;;  %v393_v39 = vmul.f32 0.125, %v391_v34  ;;  %s8078_s27 = scalar_lea.hbm %s8135_s10, %s4426_s29  ;;  %p4763_p12 = scmp.ne.s32.totalorder %s8080_s20, %s4762_s30 }
  0x1f   : > { %v384_v43 = vcvt.s32.f32 %v382_v37  ;;  %v392_v47 = vcvt.s32.f32 %v390_v40  ;;  %s4850_s16 = smov [#allocation2]  }
  0x20   : > { %4619 = vset.pattern.permute.xlu1 %v8136_v4  ;;  %v387_v42 = vadd.f32 -1.0, %v385_v36  ;;  %v395_v44 = vadd.f32 -1.0, %v393_v39  ;;  %p4764_p13 = pnand %p4763_p12, %p4946_p4  ;;  %s4766_s12 = sshll.u32 %s4850_s16, 4  ;;  %s4767_s12 = int_to_ptr.vmem [resolvable:$false] %s4766_s12 }
  0x21   : > { %412 = vperm.xlu0 %4621, %v398_v3   ;;  %422 = vperm.xlu1 %4619, %v400_v5   ;;  %v386_v49 = vmul.f32 0.125, %v384_v43  ;;  %v394_v52 = vmul.f32 0.125, %v392_v47  ;;  %s4768_s22 = scalar_lea.vmem %s4767_s12, 512  ;;  %p4769_p1 = scmp.lt.s32.totalorder %s8080_s20, %s4767_s12 }
  0x22   : > { %p4765_p0 = pneg %p4764_p13  ;;  %p4770_p2 = scmp.lt.s32.totalorder %s4768_s22, %s4762_s30 }
  0x23   : > { %v388_v55 = vadd.f32 -1.0, %v386_v49  ;;  %v396_v57 = vadd.f32 -1.0, %v394_v52 }
  0x24   : > { %p4771_p3 = por %p4770_p2, %p4769_p1 }
  0x25   : > { %417 = vperm.xlu0 %4621, %v399_v0   ;;  %4622 = vset.pattern.permute.xlu1 %v4842_v2 }
  0x26   : > { %446 = vperm.xlu1 %4622, %v400_v5   ;;  %p4772_p5 = pnand %p4771_p3, %p4765_p0 }
  0x29   : > { %472 = vperm.xlu0 %4621, %v402_v6  }
  0x2a   : > { %4623 = vset.pattern.permute.xlu1 %v8136_v4 }
  0x2b   : > { %467 = vperm.xlu1 %4623, %v401_v7  }
  0x2d   : > { %1339 = vperm.xlu0 %4621, %v1333_v8  }
  0x2f   : > { %477 = vperm.xlu1 %4623, %v403_v9  }
  0x31   : > { %1349 = vperm.xlu0 %4621, %v1335_v10  }
  0x33   : > { %482 = vperm.xlu1 %4623, %v404_v11  }
  0x35   : > { %2273 = vperm.xlu0 %4621, %v2267_v12  }
  0x37   : > { %1344 = vperm.xlu1 %4623, %v1334_v13  }
  0x39   : > { %2283 = vperm.xlu0 %4621, %v2269_v14  }
  0x3b   : > { %1354 = vperm.xlu1 %4623, %v1336_v15  }
  0x3d   : > { %3206 = vperm.xlu0 %4621, %v3200_v16  }
  0x3f   : > { %2278 = vperm.xlu1 %4623, %v2268_v17  }
  0x41   : > { %3216 = vperm.xlu0 %4621, %v3202_v18  }
  0x43   : > { %2288 = vperm.xlu1 %4623, %v2270_v19  }
  0x45   : > { %4133 = vperm.xlu0 %4621, %v4130_v20  }
  0x47   : > { %3211 = vperm.xlu1 %4623, %v3201_v21  }
  0x4b   : > { %3221 = vperm.xlu1 %4623, %v3203_v22  }
  0x97   : > { %v435_v24 = vpop.permute.xlu1 %434  ;;  %v443_v25 = vpop.permute.xlu0 %442 }
  0x98   : > { %v453_v48 = vmul.f32 %v443_v25, %v395_v44  ;;  %v449_v5 = vmul.f32 %v435_v24, %v395_v44  ;;  %v450_v8 = vmul.f32 %v435_v24, %v396_v57  ;;  %v454_v10 = vmul.f32 %v443_v25, %v396_v57 }
  0x9b   : > { %v439_v27 = vpop.permute.xlu1 %438 }
  0x9c   : > { %v408_v28 = vpop.permute.xlu0 %407  ;;  %v451_v56 = vmul.f32 %v439_v27, %v395_v44  ;;  %v452_v62 = vmul.f32 %v439_v27, %v396_v57 }
  0x9d   : > { %v425_v0 = vmul.f32 %v408_v28, %v387_v42  ;;  %v426_v2 = vmul.f32 %v408_v28, %v388_v55 }
  0x9f   : > { %v457_v11 = vadd.f32 %v449_v5, %v425_v0  ;;  %v458_v12 = vadd.f32 %v450_v8, %v426_v2 }
  0xa0   : > { %v423_v32 = vpop.permute.xlu1 %422  ;;  %v413_v33 = vpop.permute.xlu0 %412 }
  0xa1   : > { %v427_v53 = vmul.f32 %v413_v33, %v387_v42  ;;  %v428_v58 = vmul.f32 %v413_v33, %v388_v55  ;;  %v431_v25 = vmul.f32 %v423_v32, %v387_v42  ;;  %v432_v28 = vmul.f32 %v423_v32, %v388_v55 }
  0xa2   : > { %v8149_v32 = vmov 683565275  }
  0xa3   : > { %v459_v60 = vadd.f32 %v451_v56, %v427_v53  ;;  %v460_v1 = vadd.f32 %v452_v62, %v428_v58  ;;  %v8143_v58 = vmov 1326507024  }
  0xa4   : > { %v418_v41 = vpop.permute.xlu0 %417 }
  0xa5   : > { %v447_v38 = vpop.permute.xlu1 %446  ;;  %v429_v45 = vmul.f32 %v418_v41, %v387_v42  ;;  %v430_v6 = vmul.f32 %v418_v41, %v388_v55  ;;  %v8145_v55 = vmov 920167782  }
  0xa6   : > { %v455_v21 = vmul.f32 %v447_v38, %v395_v44  ;;  %v456_v22 = vmul.f32 %v447_v38, %v396_v57 }
  0xa7   : > { %v461_v50 = vadd.f32 %v453_v48, %v429_v45  ;;  %v462_v16 = vadd.f32 %v454_v10, %v430_v6  ;;  %v8167_v45 = vmov 2475754826   ;;  %v8173_v48 = vmov 2131351028  }
  0xa8   : > { %v473_v59 = vpop.permute.xlu0 %472  ;;  %v463_v36 = vadd.f32 %v455_v21, %v431_v25  ;;  %v5041_v37 = vadd.f32 %v456_v22, %v432_v28 }
  0xa9   : > { %v5025_v63 = vadd.f32 %v473_v59, %v459_v60  ;;  %v5027_v7 = vadd.f32 %v473_v59, %v460_v1 }
  0xaa   : > { %v468_v46 = vpop.permute.xlu1 %467 }
  0xab   : > { %8228 = vst [vmem:[#allocation6_spill] sm:$0xff] %v5025_v63  ;;  %v704_v9 = vand.u32 2139095040, %v5025_v63  ;;  %v808_v14 = vand.u32 2139095040, %v5027_v7  ;;  %v5031_v15 = vadd.f32 %v468_v46, %v457_v11  ;;  %v5033_v18 = vadd.f32 %v468_v46, %v458_v12 }
  0xad   : > { %v705_v17 = vshrl.u32 %v704_v9, 23  ;;  %8229 = vst [vmem:[#allocation7_spill] sm:$0xff] %v5033_v18  ;;  %v809_v23 = vshrl.u32 %v808_v14, 23  ;;  %v496_v24 = vand.u32 2139095040, %v5031_v15  ;;  %v600_v27 = vand.u32 2139095040, %v5033_v18 }
  0xae   : > { %v478_v51 = vpop.permute.xlu1 %477 }
  0xaf   : > { %v5022_v54 = vadd.f32 %v478_v51, %v461_v50  ;;  %v5035_v19 = vadd.f32 %v478_v51, %v462_v16  ;;  %v4287_v26 = vadd.s32 4294967169, %v705_v17  ;;  %v4291_v34 = vadd.s32 4294967169, %v809_v23 }
  0xb0   : > { %v497_v35 = vshrl.u32 %v496_v24, 23  ;;  %v601_v39 = vshrl.u32 %v600_v27, 23  ;;  %v8147_v51 = vmov 2102212464  }
  0xb1   : > { %8227 = vst [vmem:[#allocation5_spill] sm:$0xff] %v5022_v54  ;;  %v912_v61 = vand.u32 2139095040, %v5022_v54  ;;  %8230 = vst [vmem:[#allocation8_spill] sm:$0xff] %v5035_v19  ;;  %v8138_v29 = vand.u32 2147483647, %v5022_v54  ;;  %v1016_v31 = vand.u32 2139095040, %v5035_v19 }
  0xb2   : > { %v711_v38 = vadd.s32 1, %v4287_v26  ;;  %v815_v12 = vadd.s32 1, %v4291_v34  ;;  %v483_v16 = vpop.permute.xlu1 %482  ;;  %v4283_v22 = vadd.s32 4294967169, %v601_v39  ;;  %v4279_v39 = vadd.s32 4294967169, %v497_v35 }
  0xb3   : > { %v913_v3 = vshrl.u32 %v912_v61, 23  ;;  %v1017_v41 = vshrl.u32 %v1016_v31, 23  ;;  %v916_v42 = vand.u32 8388607, %v8138_v29  ;;  %v5068_v28 = vadd.f32 %v483_v16, %v463_v36 }
  0xb4   : > { %vm712_vm6 = vcmp.gt.s32.totalorder %v711_v38, 0  ;;  %vm816_vm7 = vcmp.gt.s32.totalorder %v815_v12, 0 }
  0xb5   : > { %v4295_v13 = vadd.s32 4294967169, %v913_v3  ;;  %v4299_v0 = vadd.s32 4294967169, %v1017_v41  ;;  %v8140_v3 = vand.u32 2147483647, %v5035_v19  ;;  %v917_v5 = vor.u32 8388608, %v916_v42  ;;  %8231 = vst [vmem:[#allocation9_spill] sm:$0xff] %v5068_v28 }
  0xb6   : > { %v8141_v42 = vand.u32 2147483647, %v5033_v18  ;;  %v8241_v18 = vmov 1326507024  }
  0xb7   : > { %v919_v20 = vadd.s32 1, %v4295_v13  ;;  %v1023_v11 = vadd.s32 1, %v4299_v0  ;;  %v5063_v24 = vshll.u32 %v917_v5, 8  ;;  %v1020_v26 = vand.u32 8388607, %v8140_v3 }
  0xb9   : > { %vm920_vm0 = vcmp.gt.s32.totalorder %v919_v20, 0  ;;  %vm1024_vm5 = vcmp.gt.s32.totalorder %v1023_v11, 0 }
  0xba   : > { %v921_v30 = vsel %vm920_vm0, %v919_v20, 0  ;;  %v1025_v27 = vsel %vm1024_vm5, %v1023_v11, 0 }
  0xbb   : > { %v923_v33 = vand.u32 31, %v921_v30  ;;  %v922_v43 = vshrl.u32 %v921_v30, 5  ;;  %v1027_v34 = vand.u32 31, %v1025_v27 }
  0xbd   : > { %v924_v40 = vsub.s32 32, %v923_v33  ;;  %v926_v44 = vshll.u32 %v8149_v32, %v923_v33  ;;  %v929_v46 = vshll.u32 %v8167_v45, %v923_v33  ;;  %v932_v50 = vshll.u32 %v8173_v48, %v923_v33 }
  0xbe   : > { %v935_v53 = vshll.u32 %v8147_v51, %v923_v33  ;;  %v938_v57 = vshll.u32 %v8145_v55, %v923_v33  ;;  %vm941_vm1 = vcmp.lt.s32.totalorder %v922_v43, 1  ;;  %vm943_vm2 = vcmp.lt.s32.totalorder %v922_v43, 3 }
  0xbf   : > { %v927_v47 = vshrl.u32 %v8167_v45, %v924_v40  ;;  %v930_v49 = vshrl.u32 %v8173_v48, %v924_v40  ;;  %v933_v52 = vshrl.u32 %v8147_v51, %v924_v40  ;;  %v936_v56 = vshrl.u32 %v8145_v55, %v924_v40 }
  0xc0   : > { %v939_v59 = vshrl.u32 %v8143_v58, %v924_v40  ;;  %vm944_vm3 = vcmp.lt.s32.totalorder %v922_v43, 4  ;;  %vm942_vm4 = vcmp.lt.s32.totalorder %v922_v43, 2  ;;  %v925_v17 = vshrl.u32 %v8149_v32, %v924_v40 }
  0xc1   : > { %v928_v60 = vor.u32 %v927_v47, %v926_v44  ;;  %v931_v61 = vor.u32 %v930_v49, %v929_v46  ;;  %v934_v62 = vor.u32 %v933_v52, %v932_v50  ;;  %v937_v1 = vor.u32 %v936_v56, %v935_v53 }
  0xc2   : > { %v940_v2 = vor.u32 %v939_v59, %v938_v57  ;;  %v713_v44 = vsel %vm712_vm6, %v711_v38, 0  ;;  %v5081_v46 = vadd.s32 1, %v4283_v22  ;;  %v1028_v36 = vsub.s32 32, %v1027_v34 }
  0xc3   : > { %v949_v6 = vsel %vm941_vm1, %v928_v60, %v931_v61  ;;  %v950_v8 = vsel %vm944_vm3, %v937_v1, 920167782  ;;  %v953_v9 = vsel %vm941_vm1, %v931_v61, %v934_v62  ;;  %v946_v20 = vsel %vm944_vm3, %v934_v62, 2102212464 }
  0xc4   : > { %v954_v10 = vsel %vm944_vm3, %v940_v2, 1326507024  ;;  %v951_v13 = vsel %vm943_vm2, %v934_v62, %v950_v8  ;;  %v945_v25 = vsel %vm941_vm1, %v925_v17, %v928_v60  ;;  %v947_v30 = vsel %vm943_vm2, %v931_v61, %v946_v20 }
  0xc5   : > { %v955_v14 = vsel %vm943_vm2, %v937_v1, %v954_v10  ;;  %v952_v21 = vsel %vm942_vm4, %v949_v6, %v951_v13  ;;  %v948_v47 = vsel %vm942_vm4, %v945_v25, %v947_v30  ;;  %v1021_v49 = vor.u32 8388608, %v1020_v26 }
  0xc6   : > { %v956_v23 = vsel %vm942_vm4, %v953_v9, %v955_v14  ;;  %v5072_v31 = vmul.u32.u64.low %v5063_v24, %v952_v21  ;;  %v5073_v33 = vmul.u32.u64.high %v5063_v24, %v952_v21, %v5072_v31  ;;  %v5084_v50 = vshrl.u32 %v1025_v27, 5 }
  0xc7   : > { %v5077_v40 = vmul.u32.u64.low %v5063_v24, %v956_v23  ;;  %v5078_v41 = vmul.u32.u64.high %v5063_v24, %v956_v23, %v5077_v40  ;;  %v1120_v52 = vand.u32 2139095040, %v5068_v28  ;;  %v1030_v35 = vshll.u32 %v8149_v32, %v1027_v34 }
  0xc8   : > { %v1031_v53 = vshrl.u32 %v8167_v45, %v1028_v36  ;;  %v1033_v56 = vshll.u32 %v8167_v45, %v1027_v34  ;;  %v1034_v57 = vshrl.u32 %v8173_v48, %v1028_v36  ;;  %v1036_v38 = vshll.u32 %v8173_v48, %v1027_v34 }
  0xc9   : > { %v1037_v59 = vshrl.u32 %v8147_v51, %v1028_v36  ;;  %v1039_v43 = vshll.u32 %v8147_v51, %v1027_v34  ;;  %v1040_v60 = vshrl.u32 %v8145_v55, %v1028_v36  ;;  %v1042_v0 = vshll.u32 %v8145_v55, %v1027_v34 }
  0xca   : > { %v1032_v61 = vor.u32 %v1031_v53, %v1030_v35  ;;  %v1035_v62 = vor.u32 %v1034_v57, %v1033_v56  ;;  %v1043_v1 = vshrl.u32 %v8143_v58, %v1028_v36  ;;  %v5097_v6 = vshll.u32 %v1021_v49, 8 }
  0xcb   : > { %v1038_v2 = vor.u32 %v1037_v59, %v1036_v38  ;;  %v1041_v5 = vor.u32 %v1040_v60, %v1039_v43  ;;  %v1121_v8 = vshrl.u32 %v1120_v52, 23  ;;  %v967_v9 = vadd.s32 1, %v5073_v33 }
  0xcc   : > { %v1044_v10 = vor.u32 %v1043_v1, %v1042_v0  ;;  %vm1045_vm8 = vcmp.lt.s32.totalorder %v5084_v50, 1  ;;  %vm1048_vm9 = vcmp.lt.s32.totalorder %v5084_v50, 4  ;;  %vm966_vm10 = vc.u32 %v5078_v41, %v5072_v31 }
  0xcd   : > { %vm1047_vm11 = vcmp.lt.s32.totalorder %v5084_v50, 3  ;;  %v1053_v11 = vsel %vm1045_vm8, %v1032_v61, %v1035_v62  ;;  %v1054_v13 = vsel %vm1048_vm9, %v1041_v5, 920167782  ;;  %vm1046_vm12 = vcmp.lt.s32.totalorder %v5084_v50, 2 }
  0xce   : > { %v1055_v14 = vsel %vm1047_vm11, %v1038_v2, %v1054_v13  ;;  %v1057_v17 = vsel %vm1045_vm8, %v1035_v62, %v1038_v2  ;;  %v1058_v20 = vsel %vm1048_vm9, %v1044_v10, 1326507024  ;;  %v817_v21 = vsel %vm816_vm7, %v815_v12, 0 }
  0xcf   : > { %v1056_v22 = vsel %vm1046_vm12, %v1053_v11, %v1055_v14  ;;  %v1059_v23 = vsel %vm1047_vm11, %v1041_v5, %v1058_v20  ;;  %v5122_v25 = vadd.f32 %v483_v16, %v5041_v37  ;;  %v968_v26 = vsel %vm966_vm10, %v967_v9, %v5073_v33 }
  0xd0   : > { %v1060_v27 = vsel %vm1046_vm12, %v1057_v17, %v1059_v23  ;;  %v5128_v30 = vmul.u32.u64.low %v5097_v6, %v1056_v22  ;;  %v5129_v34 = vmul.u32.u64.high %v5097_v6, %v1056_v22, %v5128_v30  ;;  %v964_v12 = vmul.u32 %v5063_v24, %v948_v47 }
  0xd1   : > { %8232 = vst [vmem:[#allocation10_spill] sm:$0xff] %v5122_v25  ;;  %v5134_v40 = vmul.u32.u64.low %v5097_v6, %v1060_v27  ;;  %v5135_v49 = vmul.u32.u64.high %v5097_v6, %v1060_v27, %v5134_v40  ;;  %v4303_v52 = vadd.s32 4294967169, %v1121_v8  ;;  %v5137_v35 = vand.u32 31, %v713_v44 }
  0xd2   : > { %v503_v37 = vadd.s32 1, %v4279_v39  ;;  %v1050_v16 = vsel %vm1048_vm9, %v1038_v2, 2102212464  ;;  %v5141_v33 = vadd.s32 %v968_v26, %v964_v12  ;;  %v1029_v53 = vshrl.u32 %v8149_v32, %v1028_v36 }
  0xd3   : > { %8233 = vst [vmem:[#allocation11_spill] sm:$0xff] %v5137_v35  ;;  %v1127_v56 = vadd.s32 1, %v4303_v52  ;;  %v5145_v38 = vshrl.u32 %v713_v44, 5  ;;  %v5147_v24 = vand.u32 31, %v817_v21  ;;  %vm608_vm13 = vcmp.gt.s32.totalorder %v5081_v46, 0 }
  0xd4   : > { %v5152_v47 = vand.u32 8388607, %v8141_v42  ;;  %v1049_v39 = vsel %vm1045_vm8, %v1029_v53, %v1032_v61  ;;  %v1051_v59 = vsel %vm1047_vm11, %v1035_v62, %v1050_v16  ;;  %v1224_v36 = vand.u32 2139095040, %v5122_v25 }
  0xd5   : > { %vm1128_vm14 = vcmp.gt.s32.totalorder %v1127_v56, 0  ;;  %v5160_v44 = vsub.s32 32, %v5137_v35  ;;  %v5162_v43 = vshrl.u32 %v817_v21, 5  ;;  %vm504_vm15 = vcmp.gt.s32.totalorder %v503_v37, 0 }
  0xd6   : > { %v1129_v60 = vsel %vm1128_vm14, %v1127_v56, 0  ;;  %v5165_v0 = vsel %vm608_vm13, %v5081_v46, 0  ;;  %v970_v1 = vadd.s32 536870912, %v5141_v33  ;;  %v1071_v61 = vadd.s32 1, %v5129_v34 }
  0xd7   : > { %8234 = vst [vmem:[#allocation12_spill] sm:$0xff] %v5160_v44  ;;  %v1131_v2 = vand.u32 31, %v1129_v60  ;;  %v5171_v62 = vshll.u32 %v8147_v51, %v5137_v35  ;;  %v5175_v5 = vshll.u32 %v8145_v55, %v5137_v35  ;;  %v1052_v8 = vsel %vm1046_vm12, %v1049_v39, %v1051_v59 }
  0xd8   : > { %vm1070_vm0 = vc.u32 %v5135_v49, %v5128_v30  ;;  %v5182_v46 = vsub.s32 32, %v5147_v24  ;;  %v5186_v9 = vshll.u32 %v8147_v51, %v5147_v24  ;;  %v1225_v11 = vshrl.u32 %v1224_v36, 23 }
  0xd9   : > { %v5188_v10 = vsub.s32 32, %v1131_v2  ;;  %v5192_v13 = vshrl.u32 %v8145_v55, %v5160_v44  ;;  %v5196_v50 = vshll.u32 %v8145_v55, %v5147_v24  ;;  %v5199_v14 = vand.u32 31, %v5165_v0 }
  0xda   : > { %v8139_v17 = vand.u32 2147483647, %v5068_v28  ;;  %v5202_v20 = vshrl.u32 %v970_v1, 30  ;;  %v1068_v21 = vmul.u32 %v5097_v6, %v1052_v8  ;;  %v1072_v22 = vsel %vm1070_vm0, %v1071_v61, %v5129_v34 }
  0xdb   : > { %v1135_v23 = vshrl.u32 %v8167_v45, %v5188_v10  ;;  %v1138_v26 = vshrl.u32 %v8173_v48, %v5188_v10  ;;  %v1141_v27 = vshrl.u32 %v8147_v51, %v5188_v10  ;;  %v1143_v12 = vshll.u32 %v8147_v51, %v1131_v2 }
  0xdc   : > { %8235 = vst [vmem:[#allocation13_spill] sm:$0xff] %v5202_v20  ;;  %v1144_v40 = vshrl.u32 %v8145_v55, %v5188_v10  ;;  %v5215_v52 = vshrl.u32 %v1129_v60, 5  ;;  %v1134_v6 = vshll.u32 %v8149_v32, %v1131_v2  ;;  %v1137_v34 = vshll.u32 %v8167_v45, %v1131_v2 }
  0xdd   : > { %v4307_v16 = vadd.s32 4294967169, %v1225_v11  ;;  %v5219_v53 = vadd.s32 %v1072_v22, %v1068_v21  ;;  %v1124_v56 = vand.u32 8388607, %v8139_v17  ;;  %v1140_v39 = vshll.u32 %v8173_v48, %v1131_v2 }
  0xde   : > { %v1145_v59 = vor.u32 %v1144_v40, %v1143_v12  ;;  %v1136_v36 = vor.u32 %v1135_v23, %v1134_v6  ;;  %v1139_v1 = vor.u32 %v1138_v26, %v1137_v34  ;;  %v1146_v61 = vshll.u32 %v8145_v55, %v1131_v2 }
  0xdf   : > { %v1147_v60 = vshrl.u32 %v8143_v58, %v5188_v10  ;;  %v5229_v8 = vshrl.u32 %v8143_v58, %v5160_v44  ;;  %v5232_v11 = vsub.s32 32, %v5199_v14  ;;  %v972_v21 = vshll.u32 %v5202_v20, 30 }
  0xe0   : > { %v1142_v22 = vor.u32 %v1141_v27, %v1140_v39  ;;  %v505_v4 = vsel %vm504_vm15, %v503_v37, 0  ;;  %vm1152_vm1 = vcmp.lt.s32.totalorder %v5215_v52, 4  ;;  %v1231_v23 = vadd.s32 1, %v4307_v16 }
  0xe1   : > { %v1148_v12 = vor.u32 %v1147_v60, %v1146_v61  ;;  %v5239_v2 = vshrl.u32 %v8145_v55, %v5182_v46  ;;  %vm1149_vm2 = vcmp.lt.s32.totalorder %v5215_v52, 1  ;;  %v1158_v26 = vsel %vm1152_vm1, %v1145_v59, 920167782 }
  0xe2   : > { %v8142_v40 = vand.u32 2147483647, %v5122_v25  ;;  %v1074_v6 = vadd.s32 536870912, %v5219_v53  ;;  %v1125_v27 = vor.u32 8388608, %v1124_v56  ;;  %vm1151_vm3 = vcmp.lt.s32.totalorder %v5215_v52, 3 }
  0xe3   : > { %v1157_v37 = vsel %vm1149_vm2, %v1136_v36, %v1139_v1  ;;  %v624_v34 = vshrl.u32 %v8145_v55, %v5232_v11  ;;  %v5252_v16 = vsub.s32 %v5141_v33, %v972_v21  ;;  %v1159_v39 = vsel %vm1151_vm3, %v1142_v22, %v1158_v26 }
  0xe4   : > { %v1162_v61 = vsel %vm1152_vm1, %v1148_v12, 1326507024  ;;  %vm1150_vm4 = vcmp.lt.s32.totalorder %v5215_v52, 2  ;;  %v1161_v56 = vsel %vm1149_vm2, %v1139_v1, %v1142_v22  ;;  %vm1232_vm5 = vcmp.gt.s32.totalorder %v1231_v23, 0 }
  0xe5   : > { %v1163_v60 = vsel %vm1151_vm3, %v1145_v59, %v1162_v61  ;;  %v5265_v29 = vshrl.u32 %v8143_v58, %v5182_v46  ;;  %v623_v33 = vshll.u32 %v8147_v51, %v5199_v14  ;;  %v1160_v21 = vsel %vm1150_vm4, %v1157_v37, %v1159_v39 }
  0xe6   : > { %v1228_v12 = vand.u32 8388607, %v8142_v40  ;;  %v5273_v26 = vshrl.u32 %v505_v4, 5  ;;  %v5276_v17 = vshrl.u32 %v5165_v0, 5  ;;  %v5278_v59 = vshrl.u32 %v1074_v6, 30 }
  0xe7   : > { %v5280_v61 = vshll.u32 %v1125_v27, 8  ;;  %v5282_v3 = vor.u32 %v624_v34, %v623_v33  ;;  %v5286_v42 = vshrl.u32 %v8143_v58, %v5232_v11  ;;  %v1164_v37 = vsel %vm1150_vm4, %v1161_v56, %v1163_v60 }
  0xe8   : > { %8236 = vst [vmem:[#allocation14_spill] sm:$0xff] %v5278_v59  ;;  %v1233_v39 = vsel %vm1232_vm5, %v1231_v23, 0  ;;  %v975_v40 = vsub.s32 0, %v5252_v16  ;;  %v5298_v27 = vor.u32 %v5192_v13, %v5171_v62  ;;  %v5300_v34 = vand.u32 31, %v505_v4 }
  0xe9   : > { %v5292_v57 = vmul.u32.u64.low %v5280_v61, %v1160_v21  ;;  %v5293_v0 = vmul.u32.u64.high %v5280_v61, %v1160_v21, %v5292_v57  ;;  %v1235_v6 = vand.u32 31, %v1233_v39  ;;  %v5304_v33 = vshll.u32 %v8145_v55, %v5199_v14 }
  0xea   : > { %v1229_v56 = vor.u32 8388608, %v1228_v12  ;;  %v1076_v23 = vshll.u32 %v5278_v59, 30  ;;  %v1154_v60 = vsel %vm1152_vm1, %v1142_v22, 2102212464  ;;  %vm632_vm6 = vcmp.lt.s32.totalorder %v5276_v17, 4 }
  0xeb   : > { %8237 = vst [vmem:[#allocation15_spill] sm:$0xff] %v5292_v57  ;;  %v5310_v21 = vmul.u32.u64.low %v5280_v61, %v1164_v37  ;;  %v5311_v58 = vmul.u32.u64.high %v5280_v61, %v1164_v37, %v5310_v21  ;;  %v1133_v4 = vshrl.u32 %v8149_v32, %v5188_v10  ;;  %v1236_v13 = vsub.s32 32, %v1235_v6 }
  0xec   : > { %v628_v12 = vor.u32 %v5286_v42, %v5304_v33  ;;  %v5323_v22 = vsel %vm632_vm6, %v5282_v3, 920167782  ;;  %v5326_v37 = vmin.u32 %v975_v40, %v5252_v16  ;;  %v614_v21 = vshll.u32 %v8149_v32, %v5199_v14 }
  0xed   : > { %v1153_v62 = vsel %vm1149_vm2, %v1133_v4, %v1136_v36  ;;  %v1155_v10 = vsel %vm1151_vm3, %v1139_v1, %v1154_v60  ;;  %v5334_v55 = vshll.u32 %v1229_v56, 8  ;;  %v615_v42 = vshrl.u32 %v8167_v45, %v5232_v11 }
  0xee   : > { %v5339_v33 = vsub.s32 %v5219_v53, %v1076_v23  ;;  %v1239_v40 = vshrl.u32 %v8167_v45, %v1236_v13  ;;  %v617_v51 = vshll.u32 %v8167_v45, %v5199_v14  ;;  %v618_v32 = vshrl.u32 %v8173_v48, %v5232_v11 }
  0xef   : > { %v8238_v36 = vmov 683565275   ;;  %v1241_v1 = vshll.u32 %v8167_v45, %v1235_v6  ;;  %v1242_v56 = vshrl.u32 %v8173_v48, %v1236_v13  ;;  %v8239_v60 = vmov 2102212464  }
  0xf0   : > { %v1238_v4 = vshll.u32 %v8238_v36, %v1235_v6  ;;  %v1245_v20 = vshrl.u32 %v8239_v60, %v1236_v13  ;;  %v1156_v53 = vsel %vm1150_vm4, %v1153_v62, %v1155_v10  ;;  %v1175_v23 = vadd.s32 1, %v5293_v0 }
  0xf1   : > { %v1234_v59 = vshrl.u32 %v1233_v39, 5  ;;  %v1244_v25 = vshll.u32 %v8173_v48, %v1235_v6  ;;  %v1243_v54 = vor.u32 %v1242_v56, %v1241_v1  ;;  %v1247_v19 = vshll.u32 %v8239_v60, %v1235_v6 }
  0xf2   : > { %v1240_v28 = vor.u32 %v1239_v40, %v1238_v4  ;;  %v8240_v44 = vmov 920167782   ;;  %vm1174_vm7 = vc.u32 %v5311_v58, %v5292_v57  ;;  %v1251_v52 = vshrl.u32 %v8241_v18, %v1236_v13 }
  0xf3   : > { %v1248_v35 = vshrl.u32 %v8240_v44, %v1236_v13  ;;  %v1246_v45 = vor.u32 %v1245_v20, %v1244_v25  ;;  %v1250_v63 = vshll.u32 %v8240_v44, %v1235_v6  ;;  %v1079_v62 = vsub.s32 0, %v5339_v33 }
  0xf4   : > { %v1172_v39 = vmul.u32 %v5280_v61, %v1156_v53  ;;  %v616_v48 = vor.u32 %v615_v42, %v614_v21  ;;  %vm1253_vm8 = vcmp.lt.s32.totalorder %v1234_v59, 1  ;;  %vm1256_vm9 = vcmp.lt.s32.totalorder %v1234_v59, 4 }
  0xf5   : > { %v1249_v10 = vor.u32 %v1248_v35, %v1247_v19  ;;  %v1252_v40 = vor.u32 %v1251_v52, %v1250_v63  ;;  %v621_v4 = vshrl.u32 %v8239_v60, %v5232_v11  ;;  %v1176_v1 = vsel %vm1174_vm7, %v1175_v23, %v5293_v0 }
  0xf6   : > { %vm1255_vm10 = vcmp.lt.s32.totalorder %v1234_v59, 3  ;;  %v1261_v25 = vsel %vm1253_vm8, %v1240_v28, %v1243_v54  ;;  %vm1254_vm11 = vcmp.lt.s32.totalorder %v1234_v59, 2  ;;  %v1258_v6 = vsel %vm1256_vm9, %v1246_v45, 2102212464 }
  0xf7   : > { %v1262_v20 = vsel %vm1256_vm9, %v1249_v10, 920167782  ;;  %v1265_v57 = vsel %vm1253_vm8, %v1243_v54, %v1246_v45  ;;  %v1237_v19 = vshrl.u32 %v8238_v36, %v1236_v13  ;;  %v1266_v35 = vsel %vm1256_vm9, %v1252_v40, 1326507024 }
  0xf8   : > { %v1263_v56 = vsel %vm1255_vm10, %v1246_v45, %v1262_v20  ;;  %v8242_v61 = vmov 2131351028   ;;  %v5371_v42 = vadd.s32 %v1176_v1, %v1172_v39  ;;  %v1267_v0 = vsel %vm1255_vm10, %v1249_v10, %v1266_v35 }
  0xf9   : > { %v1264_v63 = vsel %vm1254_vm11, %v1261_v25, %v1263_v56  ;;  %v620_v21 = vshll.u32 %v8242_v61, %v5199_v14  ;;  %v1257_v52 = vsel %vm1253_vm8, %v1237_v19, %v1240_v28  ;;  %v1259_v20 = vsel %vm1255_vm10, %v1243_v54, %v1258_v6 }
  0xfa   : > { %v5374_v53 = vmul.u32.u64.low %v5334_v55, %v1264_v63  ;;  %v5375_v23 = vmul.u32.u64.high %v5334_v55, %v1264_v63, %v5374_v53  ;;  %v1268_v45 = vsel %vm1254_vm11, %v1265_v57, %v1267_v0  ;;  %v619_v13 = vor.u32 %v618_v32, %v617_v51 }
  0xfb   : > { %v4300_v25 = vmin.u32 %v1079_v62, %v5339_v33  ;;  %v5382_v40 = vmul.u32.u64.low %v5334_v55, %v1268_v45  ;;  %v5383_v56 = vmul.u32.u64.high %v5334_v55, %v1268_v45, %v5382_v40  ;;  %v622_v14 = vor.u32 %v621_v4, %v620_v21 }
  0xfc   : > { %v5387_v39 = vor.u32 %v5239_v2, %v5186_v9  ;;  %v642_v10 = vsel %vm632_vm6, %v628_v12, 1326507024  ;;  %v605_v28 = vor.u32 8388608, %v5152_v47  ;;  %vm629_vm12 = vcmp.lt.s32.totalorder %v5276_v17, 1 }
  0xfd   : > { %v1178_v54 = vadd.s32 536870912, %v5371_v42  ;;  %v1260_v32 = vsel %vm1254_vm11, %v1257_v52, %v1259_v20  ;;  %v1279_v51 = vadd.s32 1, %v5375_v23  ;;  %vm631_vm13 = vcmp.lt.s32.totalorder %v5276_v17, 3 }
  0xfe   : > { %vm736_vm14 = vcmp.lt.s32.totalorder %v5145_v38, 4  ;;  %vm840_vm15 = vcmp.lt.s32.totalorder %v5162_v43, 4  ;;  %v613_v57 = vshrl.u32 %v8238_v36, %v5232_v11  ;;  %v637_v47 = vsel %vm629_vm12, %v616_v48, %v619_v13 }
  0xff   : > { %v639_v9 = vsel %vm631_vm13, %v622_v14, %v5323_v22  ;;  %v641_v2 = vsel %vm629_vm12, %v619_v13, %v622_v14  ;;  %v977_v59 = vclz %v5326_v37  ;;  %v1081_v12 = vclz %v4300_v25 }
 0x100   : > { %vm1278_vm0 = vc.u32 %v5383_v56, %v5374_v53  ;;  %v634_v62 = vsel %vm632_vm6, %v622_v14, 2102212464  ;;  %v1276_v11 = vmul.u32 %v5334_v55, %v1260_v32  ;;  %vm630_vm1 = vcmp.lt.s32.totalorder %v5276_v17, 2 }
 0x101   : > { %v1280_v4 = vsel %vm1278_vm0, %v1279_v51, %v5375_v23  ;;  %v643_v22 = vsel %vm631_vm13, %v5282_v3, %v642_v10  ;;  %v5419_v1 = vshrl.u32 %v1178_v54, 30  ;;  %v640_v37 = vsel %vm630_vm1, %v637_v47, %v639_v9 }
 0x102   : > { %v644_v6 = vsel %vm630_vm1, %v641_v2, %v643_v22  ;;  %v645_v19 = vshll.u32 %v605_v28, 8  ;;  %v836_v55 = vor.u32 %v5265_v29, %v5196_v50  ;;  %v5427_v63 = vadd.s32 %v1280_v4, %v1276_v11 }
 0x103   : > { %v633_v35 = vsel %vm629_vm12, %v613_v57, %v616_v48  ;;  %v635_v3 = vsel %vm631_vm13, %v619_v13, %v634_v62  ;;  %v5434_v21 = vsub.s32 32, %v5300_v34  ;;  %v4297_v0 = vadd.s32 4294967294, %v977_v59 }
 0x104   : > { %v5436_v23 = vmul.u32.u64.low %v645_v19, %v644_v6  ;;  %v5437_v52 = vmul.u32.u64.high %v645_v19, %v644_v6, %v5436_v23  ;;  %v5441_v20 = vshll.u32 %v8239_v60, %v5300_v34  ;;  %v4301_v29 = vadd.s32 4294967294, %v1081_v12 }
 0x105   : > { %v5443_v50 = vmul.u32.u64.low %v645_v19, %v640_v37  ;;  %v5444_v45 = vmul.u32.u64.high %v645_v19, %v640_v37, %v5443_v50  ;;  %v1180_v48 = vshll.u32 %v5419_v1, 30  ;;  %v636_v13 = vsel %vm630_vm1, %v633_v35, %v635_v3 }
 0x106   : > { %v8243_v25 = vand.u32 2147483647, %v5027_v7  ;;  %v8244_v14 = vmov 2475754826   ;;  %v1282_v28 = vadd.s32 536870912, %v5427_v63  ;;  %v822_v54 = vshll.u32 %v8238_v36, %v5147_v24 }
 0x107   : > { %v823_v10 = vshrl.u32 %v8244_v14, %v5182_v46  ;;  %v825_v32 = vshll.u32 %v8244_v14, %v5147_v24  ;;  %v826_v51 = vshrl.u32 %v8242_v61, %v5182_v46  ;;  %v5464_v17 = vsel %vm736_vm14, %v5298_v27, 920167782 }
 0x108   : > { %v812_v40 = vand.u32 8388607, %v8243_v25  ;;  %v850_v57 = vsel %vm840_vm15, %v836_v55, 1326507024  ;;  %vm4298_vm2 = vcmp.lt.s32.totalorder %v4297_v0, 0  ;;  %vm654_vm3 = vc.u32 %v5437_v52, %v5443_v50 }
 0x109   : > { %vm4302_vm4 = vcmp.lt.s32.totalorder %v4301_v29, 0  ;;  %v655_v47 = vadd.s32 1, %v5444_v45  ;;  %v824_v9 = vor.u32 %v823_v10, %v822_v54  ;;  %v827_v2 = vor.u32 %v826_v51, %v825_v32 }
 0x10a   : > { %v5472_v59 = vsub.s32 %v5371_v42, %v1180_v48  ;;  %v652_v12 = vmul.u32 %v645_v19, %v636_v13  ;;  %v828_v62 = vshll.u32 %v8242_v61, %v5147_v24  ;;  %v829_v11 = vshrl.u32 %v8239_v60, %v5182_v46 }
 0x10b   : > { %v846_v4 = vsel %vm840_vm15, %v5387_v39, 920167782  ;;  %v5481_v22 = vshrl.u32 %v1282_v28, 30  ;;  %v656_v37 = vsel %vm654_vm3, %v655_v47, %v5444_v45  ;;  %v813_v6 = vor.u32 8388608, %v812_v40 }
 0x10c   : > { %v657_v55 = vadd.s32 %v656_v37, %v652_v12  ;;  %v830_v35 = vor.u32 %v829_v11, %v828_v62  ;;  %vm837_vm5 = vcmp.lt.s32.totalorder %v5162_v43, 1  ;;  %vm839_vm6 = vcmp.lt.s32.totalorder %v5162_v43, 3 }
 0x10d   : > { %v5487_v24 = vsel %vm4298_vm2, 0, %v4297_v0  ;;  %v5490_v42 = vsel %vm4302_vm4, 0, %v4301_v29  ;;  %v845_v19 = vsel %vm837_vm5, %v824_v9, %v827_v2  ;;  %v851_v3 = vsel %vm839_vm6, %v5387_v39, %v850_v57 }
 0x10e   : > { %v1183_v23 = vsub.s32 0, %v5472_v59  ;;  %v658_v45 = vadd.s32 536870912, %v657_v55  ;;  %v821_v48 = vshrl.u32 %v8238_v36, %v5182_v46  ;;  %v847_v0 = vsel %vm839_vm6, %v830_v35, %v846_v4 }
 0x10f   : > { %vm838_vm7 = vcmp.lt.s32.totalorder %v5162_v43, 2  ;;  %v842_v29 = vsel %vm840_vm15, %v830_v35, 2102212464  ;;  %v849_v13 = vsel %vm837_vm5, %v827_v2, %v830_v35  ;;  %v853_v25 = vshll.u32 %v813_v6, 8 }
 0x110   : > { %v1284_v39 = vshll.u32 %v5481_v22, 30  ;;  %v5508_v40 = vshrl.u32 %v658_v45, 30  ;;  %v848_v10 = vsel %vm838_vm7, %v845_v19, %v847_v0  ;;  %v852_v46 = vsel %vm838_vm7, %v849_v13, %v851_v3 }
 0x111   : > { %v985_v28 = vsub.s32 4294967266, %v5487_v24  ;;  %v1089_v54 = vsub.s32 4294967266, %v5490_v42  ;;  %v5516_v32 = vmul.u32.u64.low %v853_v25, %v852_v46  ;;  %v5517_v51 = vmul.u32.u64.high %v853_v25, %v852_v46, %v5516_v32 }
 0x112   : > { %v4304_v57 = vmin.u32 %v1183_v23, %v5472_v59  ;;  %v660_v47 = vshll.u32 %v5508_v40, 30  ;;  %v841_v12 = vsel %vm837_vm5, %v821_v48, %v824_v9  ;;  %v843_v62 = vsel %vm839_vm6, %v827_v2, %v842_v29 }
 0x113   : > { %v520_v11 = vshrl.u32 %v8240_v44, %v5434_v21  ;;  %v523_v4 = vshrl.u32 %v8241_v18, %v5434_v21  ;;  %v5529_v37 = vmul.u32.u64.low %v853_v25, %v848_v10  ;;  %v5530_v6 = vmul.u32.u64.high %v853_v25, %v848_v10, %v5529_v37  ;;  %v8246_v18 = vld [vmem:[#allocation7_spill] sm:$0xff] }
 0x114   : > { %v8245_v35 = vor.u32 %v5229_v8, %v5175_v5  ;;  %v522_v9 = vshll.u32 %v8240_v44, %v5300_v34  ;;  %v5543_v2 = vsub.s32 %v5427_v63, %v1284_v39  ;;  %v5545_v3 = vsub.s32 %v657_v55, %v660_v47 }
 0x115   : > { %v986_v23 = vadd.s32 127, %v985_v28  ;;  %v1085_v45 = vsub.s32 32, %v5490_v42  ;;  %v1090_v48 = vadd.s32 127, %v1089_v54  ;;  %v844_v0 = vsel %vm838_vm7, %v841_v12, %v843_v62 }
 0x116   : > { %v5538_v19 = vsel %vm736_vm14, %v8245_v35, 1326507024  ;;  %vm528_vm8 = vcmp.lt.s32.totalorder %v5273_v26, 4  ;;  %v1185_v5 = vclz %v4304_v57  ;;  %v663_v8 = vsub.s32 0, %v5545_v3 }
 0x117   : > { %vm862_vm9 = vc.u32 %v5517_v51, %v5529_v37  ;;  %v5555_v63 = vor.u32 %v520_v11, %v5441_v20  ;;  %v524_v55 = vor.u32 %v523_v4, %v522_v9  ;;  %v1069_v29 = vadd.s32 %v5128_v30, %v5135_v49 }
 0x118   : > { %v863_v13 = vadd.s32 1, %v5530_v6  ;;  %v981_v43 = vsub.s32 32, %v5487_v24  ;;  %v1287_v39 = vsub.s32 0, %v5543_v2  ;;  %v4284_v10 = vmin.u32 %v663_v8, %v5545_v3 }
 0x119   : > { %v860_v46 = vmul.u32 %v853_v25, %v844_v0  ;;  %v987_v28 = vshll.u32 %v986_v23, 23  ;;  %v1087_v54 = vshrl.u32 %v1069_v29, %v1085_v45  ;;  %v1091_v32 = vshll.u32 %v1090_v48, 23 }
 0x11a   : > { %v864_v57 = vsel %vm862_vm9, %v863_v13, %v5530_v6  ;;  %v965_v20 = vadd.s32 %v5072_v31, %v5078_v41  ;;  %v4305_v47 = vadd.s32 4294967294, %v1185_v5  ;;  %v665_v12 = vclz %v4284_v10 }
 0x11b   : > { %v865_v30 = vadd.s32 %v864_v57, %v860_v46  ;;  %v534_v49 = vsel %vm528_vm8, %v5555_v63, 920167782  ;;  %v538_v62 = vsel %vm528_vm8, %v524_v55, 1326507024  ;;  %v1086_v11 = vshll.u32 %v5339_v33, %v5490_v42 }
 0x11c   : > { %v5575_v4 = vshrl.u32 %v965_v20, %v981_v43  ;;  %v4308_v31 = vmin.u32 %v1287_v39, %v5543_v2  ;;  %v4285_v41 = vadd.s32 4294967294, %v665_v12  ;;  %v5578_v35 = vor.u32 4788187, %v987_v28 }
 0x11d   : > { %v866_v6 = vadd.s32 536870912, %v865_v30  ;;  %v1088_v9 = vor.u32 %v1087_v54, %v1086_v11  ;;  %v1092_v23 = vor.u32 4788187, %v1091_v32  ;;  %v8176_v45 = vand.u32 2147483647, %v5031_v15 }
 0x11e   : > { %vm4306_vm10 = vcmp.lt.s32.totalorder %v4305_v47, 0  ;;  %vm4286_vm11 = vcmp.lt.s32.totalorder %v4285_v41, 0  ;;  %v517_v0 = vshrl.u32 %v8239_v60, %v5434_v21  ;;  %v653_v33 = vadd.s32 %v5443_v50, %v5437_v52 }
 0x11f   : > { %v5581_v48 = vshrl.u32 %v866_v6, 30  ;;  %v668_v42 = vsel %vm4286_vm11, 0, %v4285_v41  ;;  %v511_v5 = vshrl.u32 %v8244_v14, %v5434_v21  ;;  %v514_v8 = vshrl.u32 %v8242_v61, %v5434_v21 }
 0x120   : > { %v1289_v55 = vclz %v4308_v31  ;;  %v669_v29 = vsub.s32 32, %v668_v42  ;;  %v673_v13 = vsub.s32 4294967266, %v668_v42  ;;  %v516_v43 = vshll.u32 %v8242_v61, %v5300_v34 }
 0x121   : > { %v868_v39 = vshll.u32 %v5581_v48, 30  ;;  %v500_v10 = vand.u32 8388607, %v8176_v45  ;;  %v510_v52 = vshll.u32 %v8238_v36, %v5300_v34  ;;  %v513_v50 = vshll.u32 %v8244_v14, %v5300_v34 }
 0x122   : > { %v670_v46 = vshll.u32 %v5545_v3, %v668_v42  ;;  %v671_v28 = vshrl.u32 %v653_v33, %v669_v29  ;;  %v674_v54 = vadd.s32 127, %v673_v13  ;;  %v518_v32 = vor.u32 %v517_v0, %v516_v43 }
 0x123   : > { %v1095_v57 = vcvt.s32.f32 %v1088_v9  ;;  %v5601_v20 = vsub.s32 %v865_v30, %v868_v39  ;;  %v512_v12 = vor.u32 %v511_v5, %v510_v52  ;;  %v515_v11 = vor.u32 %v514_v8, %v513_v50 }
 0x124   : > { %v1093_v31 = vand.u32 2147483647, %v1092_v23  ;;  %v5604_v41 = vsel %vm4306_vm10, 0, %v4305_v47  ;;  %v672_v6 = vor.u32 %v671_v28, %v670_v46  ;;  %v675_v45 = vshll.u32 %v674_v54, 23  ;;  %v8250_v54 = vld [vmem:[#allocation15_spill] sm:$0xff] }
 0x125   : > { %v5606_v25 = vadd.s32 4294967294, %v1289_v55  ;;  %vm599_vm12 = vcmp.lt.s32.totalorder %v8246_v18, 0  ;;  %v683_v34 = vsub.s32 4, %v5508_v40  ;;  %v871_v3 = vsub.s32 0, %v5601_v20 }
 0x126   : > { %v509_v30 = vshrl.u32 %v8238_v36, %v5434_v21  ;;  %v8247_v9 = vand.u32 2147483647, %v8246_v18  ;;  %v676_v47 = vor.u32 4788187, %v675_v45  ;;  %v501_v0 = vor.u32 8388608, %v500_v10 }
 0x127   : > { %vm525_vm15 = vcmp.lt.s32.totalorder %v5273_v26, 1  ;;  %v530_v33 = vsel %vm528_vm8, %v518_v32, 2102212464  ;;  %v679_v42 = vcvt.s32.f32 %v672_v6  ;;  %v4292_v5 = vmin.u32 %v871_v3, %v5601_v20 }
 0x128   : > { %vm5615_vm13 = vcmp.le.f32.partialorder %v8247_v9, 0.7853982  ;;  %vm527_vm0 = vcmp.lt.s32.totalorder %v5273_v26, 3  ;;  %v533_v8 = vsel %vm525_vm15, %v512_v12, %v515_v11  ;;  %v677_v21 = vand.u32 2147483647, %v676_v47 }
 0x129   : > { %v535_v55 = vsel %vm527_vm0, %v518_v32, %v534_v49  ;;  %v537_v29 = vsel %vm525_vm15, %v515_v11, %v518_v32  ;;  %v539_v13 = vsel %vm527_vm0, %v5555_v63, %v538_v62  ;;  %v873_v43 = vclz %v4292_v5 }
 0x12a   : > { %vm526_vm1 = vcmp.lt.s32.totalorder %v5273_v26, 2  ;;  %v529_v45 = vsel %vm525_vm15, %v509_v30, %v512_v12  ;;  %v531_v39 = vsel %vm527_vm0, %v515_v11, %v530_v33  ;;  %v680_v10 = vmul.f32 %v679_v42, %v677_v21  ;;  %v8251_v26 = vld [vmem:[#allocation6_spill] sm:$0xff] }
 0x12b   : > { %v536_v52 = vsel %vm526_vm1, %v533_v8, %v535_v55  ;;  %v540_v50 = vsel %vm526_vm1, %v537_v29, %v539_v13  ;;  %v541_v46 = vshll.u32 %v501_v0, 8  ;;  %v5626_v28 = vmul.f32 %v1095_v57, %v1093_v31  ;;  %v8252_v29 = vld [vmem:[#allocation11_spill] sm:$0xff] }
 0x12c   : > { %v5630_v6 = vadd.s32 %v8250_v54, %v5311_v58  ;;  %v1189_v49 = vsub.s32 32, %v5604_v41  ;;  %v4293_v32 = vadd.s32 4294967294, %v873_v43  ;;  %v681_v3 = vxor.u32 2147483648, %v680_v10 }
 0x12d   : > { %v5633_v63 = vmul.u32.u64.low %v541_v46, %v540_v50  ;;  %v5634_v62 = vmul.u32.u64.high %v541_v46, %v540_v50, %v5633_v63  ;;  %v701_v12 = vand.u32 2147483647, %v8251_v26  ;;  %v532_v11 = vsel %vm526_vm1, %v529_v45, %v531_v39 }
 0x12e   : > { %vm4294_vm2 = vcmp.lt.s32.totalorder %v4293_v32, 0  ;;  %v5637_v30 = vmul.u32.u64.low %v541_v46, %v536_v52  ;;  %v5638_v9 = vmul.u32.u64.high %v541_v46, %v536_v52, %v5637_v30  ;;  %vm4310_vm3 = vcmp.lt.s32.totalorder %v5606_v25, 0 }
 0x12f   : > { %v682_v58 = vsel %vm599_vm12, %v681_v3, %v680_v10  ;;  %v5647_v57 = vsel %vm599_vm12, %v683_v34, %v5508_v40  ;;  %v876_v31 = vsel %vm4294_vm2, 0, %v4293_v32  ;;  %v861_v0 = vadd.s32 %v5529_v37, %v5517_v51  ;;  %v8253_v51 = vld [vmem:[#allocation12_spill] sm:$0xff] }
 0x130   : > { %v685_v47 = vsel %vm5615_vm13, %v8246_v18, %v682_v58  ;;  %v877_v33 = vsub.s32 32, %v876_v31  ;;  %v881_v42 = vsub.s32 4294967266, %v876_v31  ;;  %v878_v5 = vshll.u32 %v5601_v20, %v876_v31 }
 0x131   : > { %v548_v8 = vmul.u32 %v541_v46, %v532_v11  ;;  %vm550_vm4 = vc.u32 %v5634_v62, %v5637_v30  ;;  %v708_v40 = vand.u32 8388607, %v701_v12  ;;  %4630 = vcosq.f32 %v685_v47 }
 0x132   : > { %v879_v34 = vshrl.u32 %v861_v0, %v877_v33  ;;  %v882_v21 = vadd.s32 127, %v881_v42  ;;  %v551_v55 = vadd.s32 1, %v5638_v9  ;;  %v718_v13 = vshll.u32 %v8238_v36, %v8252_v29 }
 0x133   : > { %v719_v37 = vshrl.u32 %v8244_v14, %v8253_v51  ;;  %v721_v20 = vshll.u32 %v8244_v14, %v8252_v29  ;;  %v722_v43 = vshrl.u32 %v8242_v61, %v8253_v51  ;;  %v724_v52 = vshll.u32 %v8242_v61, %v8252_v29 }
 0x134   : > { %v880_v45 = vor.u32 %v879_v34, %v878_v5  ;;  %v883_v39 = vshll.u32 %v882_v21, 23  ;;  %v552_v10 = vsel %vm550_vm4, %v551_v55, %v5638_v9  ;;  %vm807_vm5 = vcmp.lt.s32.totalorder %v5027_v7, 0 }
 0x135   : > { %v553_v50 = vadd.s32 %v552_v10, %v548_v8  ;;  %v720_v46 = vor.u32 %v719_v37, %v718_v13  ;;  %v723_v54 = vor.u32 %v722_v43, %v721_v20  ;;  %v725_v32 = vshrl.u32 %v8239_v60, %v8253_v51 }
 0x136   : > { %v5677_v3 = vsel %vm4310_vm3, 0, %v5606_v25  ;;  %4632 = vsinq.f32 %v685_v47  ;;  %v8254_v63 = vand.u32 2147483647, %v5027_v7  ;;  %v884_v9 = vor.u32 4788187, %v883_v39 }
 0x137   : > { %v709_v58 = vor.u32 8388608, %v708_v40  ;;  %v891_v31 = vsub.s32 4, %v5581_v48  ;;  %v554_v0 = vadd.s32 536870912, %v553_v50  ;;  %v726_v33 = vor.u32 %v725_v32, %v724_v52 }
 0x138   : > { %vm5681_vm6 = vcmp.le.f32.partialorder %v8254_v63, 0.7853982  ;;  %vm735_vm7 = vcmp.lt.s32.totalorder %v5145_v38, 3  ;;  %v885_v42 = vand.u32 2147483647, %v884_v9  ;;  %v887_v5 = vcvt.s32.f32 %v880_v45 }
 0x139   : > { %vm733_vm8 = vcmp.lt.s32.totalorder %v5145_v38, 1  ;;  %v747_v25 = vsel %vm735_vm7, %v5298_v27, %v5538_v19  ;;  %v5692_v47 = vshrl.u32 %v554_v0, 30  ;;  %vm734_vm9 = vcmp.lt.s32.totalorder %v5145_v38, 2 }
 0x13a   : > { %v741_v8 = vsel %vm733_vm8, %v720_v46, %v723_v54  ;;  %v745_v40 = vsel %vm733_vm8, %v723_v54, %v726_v33  ;;  %v888_v34 = vmul.f32 %v887_v5, %v885_v42  ;;  %v743_v21 = vsel %vm735_vm7, %v726_v33, %v5464_v17 }
 0x13b   : > { %v748_v55 = vsel %vm734_vm9, %v745_v40, %v747_v25  ;;  %v749_v29 = vshll.u32 %v709_v58, 8  ;;  %v1277_v27 = vadd.s32 %v5374_v53, %v5383_v56  ;;  %v1297_v19 = vsub.s32 4294967266, %v5677_v3  ;;  %v4631_v20 = vpop.eup %4630 }
 0x13c   : > { %v686_v13 = vsel %vm5615_vm13, 0, %v5647_v57  ;;  %v556_v37 = vshll.u32 %v5692_v47, 30  ;;  %v889_v43 = vxor.u32 2147483648, %v888_v34  ;;  %v738_v17 = vsel %vm736_vm14, %v726_v33, 2102212464 }
 0x13d   : > { %v5713_v45 = vmul.u32.u64.low %v749_v29, %v748_v55  ;;  %v5714_v39 = vmul.u32.u64.high %v749_v29, %v748_v55, %v5713_v45  ;;  %v1193_v10 = vsub.s32 4294967266, %v5604_v41  ;;  %v717_v53 = vshrl.u32 %v8238_v36, %v8253_v51 }
 0x13e   : > { %v5717_v52 = vsub.s32 %v553_v50, %v556_v37  ;;  %v744_v56 = vsel %vm734_vm9, %v741_v8, %v743_v21  ;;  %v1191_v23 = vshrl.u32 %v5630_v6, %v1189_v49  ;;  %v690_v57 = vadd.s32 3, %v686_v13 }
 0x13f   : > { %v890_v32 = vsel %vm807_vm5, %v889_v43, %v888_v34  ;;  %v892_v63 = vsel %vm807_vm5, %v891_v31, %v5581_v48  ;;  %v737_v9 = vsel %vm733_vm8, %v717_v53, %v720_v46  ;;  %v739_v6 = vsel %vm735_vm7, %v723_v54, %v738_v17 }
 0x140   : > { %v893_v50 = vsel %vm5681_vm6, %v5027_v7, %v890_v32  ;;  %v559_v51 = vsub.s32 0, %v5717_v52  ;;  %v4633_v49 = vpop.eup %4632  ;;  %v1298_v58 = vadd.s32 127, %v1297_v19  ;;  %v1194_v48 = vadd.s32 127, %v1193_v10 }
 0x141   : > { %4634 = vcosq.f32 %v893_v50  ;;  %v5739_v0 = vmul.u32.u64.low %v749_v29, %v744_v56  ;;  %v5740_v33 = vmul.u32.u64.high %v749_v29, %v744_v56, %v5739_v0  ;;  %v894_v31 = vsel %vm5681_vm6, 0, %v892_v63 }
 0x142   : > { %4636 = vsinq.f32 %v893_v50  ;;  %v4280_v42 = vmin.u32 %v559_v51, %v5717_v52  ;;  %v1190_v46 = vshll.u32 %v5472_v59, %v5604_v41  ;;  %v1293_v5 = vsub.s32 32, %v5677_v3 }
 0x143   : > { %v691_v54 = vand.u32 3, %v690_v57  ;;  %v740_v25 = vsel %vm734_vm9, %v737_v9, %v739_v6  ;;  %v694_v8 = vxor.u32 2147483648, %v4633_v49  ;;  %v697_v40 = vxor.u32 2147483648, %v4631_v20 }
 0x144   : > { %v561_v34 = vclz %v4280_v42  ;;  %vm758_vm14 = vc.u32 %v5714_v39, %v5739_v0  ;;  %v5753_v11 = vor.u32 %v1191_v23, %v1190_v46  ;;  %v1299_v21 = vshll.u32 %v1298_v58, 23 }
 0x145   : > { %v898_v55 = vadd.s32 3, %v894_v31  ;;  %v759_v19 = vadd.s32 1, %v5740_v33  ;;  %v1195_v13 = vshll.u32 %v1194_v48, 23  ;;  %v1294_v59 = vshll.u32 %v5543_v2, %v5677_v3 }
 0x146   : > { %vm689_vm10 = vweird.f32 %v8246_v18  ;;  %v4281_v38 = vadd.s32 4294967294, %v561_v34  ;;  %v756_v41 = vmul.u32 %v749_v29, %v740_v25  ;;  %v1295_v37 = vshrl.u32 %v1277_v27, %v1293_v5 }
 0x147   : > { %vm693_vm11 = vcmp.eq.s32.totalorder %v691_v54, 0  ;;  %vm696_vm12 = vcmp.eq.s32.totalorder %v691_v54, 2  ;;  %v760_v43 = vsel %vm758_vm14, %v759_v19, %v5740_v33  ;;  %v1300_v53 = vor.u32 4788187, %v1299_v21 }
 0x148   : > { %v695_v17 = vsel %vm693_vm11, %v4631_v20, %v694_v8  ;;  %v698_v45 = vsel %vm696_vm12, %v697_v40, %v4633_v49  ;;  %vm4282_vm13 = vcmp.lt.s32.totalorder %v4281_v38, 0  ;;  %v761_v10 = vadd.s32 %v760_v43, %v756_v41 }
 0x149   : > { %vm692_vm15 = vcmp.lt.s32.totalorder %v691_v54, 2  ;;  %v899_v56 = vand.u32 3, %v898_v55  ;;  %v564_v23 = vsel %vm4282_vm13, 0, %v4281_v38  ;;  %v549_v2 = vadd.s32 %v5637_v30, %v5634_v62 }
 0x14a   : > { %v565_v3 = vsub.s32 32, %v564_v23  ;;  %v569_v57 = vsub.s32 4294967266, %v564_v23  ;;  %v762_v32 = vadd.s32 536870912, %v761_v10  ;;  %v1196_v27 = vor.u32 4788187, %v1195_v13 }
 0x14b   : > { %v4635_v29 = vpop.eup %4634  ;;  %v1296_v63 = vor.u32 %v1295_v37, %v1294_v59  ;;  %v699_v50 = vsel %vm692_vm15, %v695_v17, %v698_v45  ;;  %v566_v51 = vshll.u32 %v5717_v52, %v564_v23  ;;  %v1301_v33 = vand.u32 2147483647, %v1300_v53  ;;  %v8259_v23 = vld [vmem:[#allocation5_spill] sm:$0xff] }
 0x14c   : > { %v4637_v20 = vpop.eup %4636  ;;  %v905_v9 = vxor.u32 2147483648, %v4635_v29  ;;  %v567_v6 = vshrl.u32 %v549_v2, %v565_v3  ;;  %v570_v49 = vadd.s32 127, %v569_v57  ;;  %v5763_v58 = vshrl.u32 %v762_v32, 30  ;;  %v8263_v57 = vld [vmem:[#allocation9_spill] sm:$0xff] }
 0x14d   : > { %vm901_vm0 = vcmp.eq.s32.totalorder %v899_v56, 0  ;;  %v902_v48 = vxor.u32 2147483648, %v4637_v20  ;;  %vm904_vm1 = vcmp.eq.s32.totalorder %v899_v56, 2  ;;  %v1303_v46 = vcvt.s32.f32 %v1296_v63 }
 0x14e   : > { %v906_v62 = vsel %vm904_vm1, %v905_v9, %v4637_v20  ;;  %v568_v30 = vor.u32 %v567_v6, %v566_v51  ;;  %v571_v31 = vshll.u32 %v570_v49, 23  ;;  %v764_v42 = vshll.u32 %v5763_v58, 30 }
 0x14f   : > { %v700_v5 = vsel %vm689_vm10, nan, %v699_v50  ;;  %vm900_vm2 = vcmp.lt.s32.totalorder %v899_v56, 2  ;;  %v903_v52 = vsel %vm901_vm0, %v4635_v29, %v902_v48  ;;  %vm897_vm3 = vweird.f32 %v5027_v7 }
 0x150   : > { %v907_v54 = vsel %vm900_vm2, %v903_v52, %v906_v62  ;;  %v572_v25 = vor.u32 4788187, %v571_v31  ;;  %v765_v8 = vsub.s32 %v761_v10, %v764_v42  ;;  %v8257_v40 = vshll.u32 %v5252_v16, %v5487_v24  ;;  %v8258_v24 = vld [vmem:[#allocation8_spill] sm:$0xff] }
 0x151   : > { %v1197_v21 = vand.u32 2147483647, %v1196_v27  ;;  %v1304_v55 = vmul.f32 %v1303_v46, %v1301_v33  ;;  %v908_v19 = vsel %vm897_vm3, nan, %v907_v54  ;;  %v575_v38 = vcvt.s32.f32 %v568_v30 }
 0x152   : > { %v984_v34 = vor.u32 %v5575_v4, %v8257_v40  ;;  %v1330_v13 = vpack.c.bf16 %v908_v19, %v700_v5  ;;  %v573_v59 = vand.u32 2147483647, %v572_v25  ;;  %v767_v18 = vsub.s32 0, %v765_v8 }
 0x153   : > { %v989_v41 = vand.u32 2147483647, %v5578_v35  ;;  %v1097_v37 = vxor.u32 2147483648, %v5626_v28  ;;  %v1199_v7 = vcvt.s32.f32 %v5753_v11  ;;  %vm1015_vm4 = vcmp.lt.s32.totalorder %v8258_v24, 0 }
 0x154   : > { %1374 = vmatprep.subr.bf16.mxu0 %v1330_v13  ;;  %v576_v43 = vmul.f32 %v575_v38, %v573_v59  ;;  %v4288_v17 = vmin.u32 %v767_v18, %v765_v8  ;;  %v991_v45 = vcvt.s32.f32 %v984_v34  ;;  %v1305_v4 = vxor.u32 2147483648, %v1304_v55 }
 0x155   : > { %v1200_v16 = vmul.f32 %v1199_v7, %v1197_v21  ;;  %v1098_v56 = vsel %vm1015_vm4, %v1097_v37, %v5626_v28  ;;  %vm911_vm5 = vcmp.lt.s32.totalorder %v8259_v23, 0  ;;  %v8260_v35 = vand.u32 2147483647, %v8258_v24  ;;  %v8267_v28 = vld [vmem:[#allocation10_spill] sm:$0xff] }
 0x156   : > { %v769_v10 = vclz %v4288_v17  ;;  %v992_v53 = vmul.f32 %v991_v45, %v989_v41  ;;  %v577_v2 = vxor.u32 2147483648, %v576_v43  ;;  %v8264_v32 = vand.u32 2147483647, %v8263_v57 }
 0x157   : > { %vm5783_vm6 = vcmp.le.f32.partialorder %v8260_v35, 0.7853982  ;;  %vm1119_vm8 = vcmp.lt.s32.totalorder %v8263_v57, 0  ;;  %v1201_v27 = vxor.u32 2147483648, %v1200_v16  ;;  %vm1223_vm9 = vcmp.lt.s32.totalorder %v8267_v28, 0 }
 0x158   : > { %v4289_v3 = vadd.s32 4294967294, %v769_v10  ;;  %vm5789_vm7 = vcmp.le.f32.partialorder %v8264_v32, 0.7853982  ;;  %v1101_v63 = vsel %vm5783_vm6, %v8258_v24, %v1098_v56  ;;  %v8268_v50 = vand.u32 2147483647, %v8267_v28  ;;  %v8278_v10 = vld [vmem:[#allocation13_spill] sm:$0xff] }
 0x159   : > { %v1306_v20 = vsel %vm1223_vm9, %v1305_v4, %v1304_v55  ;;  %v993_v9 = vxor.u32 2147483648, %v992_v53  ;;  %vm495_vm11 = vcmp.lt.s32.totalorder %v5031_v15, 0  ;;  %v579_v6 = vsub.s32 4, %v5692_v47 }
 0x15a   : > { %vm5800_vm14 = vcmp.le.f32.partialorder %v8268_v50, 0.7853982  ;;  %vm4290_vm10 = vcmp.lt.s32.totalorder %v4289_v3, 0  ;;  %v578_v33 = vsel %vm495_vm11, %v577_v2, %v576_v43  ;;  %v757_v48 = vadd.s32 %v5739_v0, %v5714_v39  ;;  %v8274_v39 = vld [vmem:[#allocation14_spill] sm:$0xff] }
 0x15b   : > { %v772_v49 = vsel %vm4290_vm10, 0, %v4289_v3  ;;  %4638 = vcosq.f32 %v1101_v63  ;;  %v1202_v31 = vsel %vm1119_vm8, %v1201_v27, %v1200_v16  ;;  %v1309_v42 = vsel %vm5800_vm14, %v8267_v28, %v1306_v20 }
 0x15c   : > { %v773_v62 = vsub.s32 32, %v772_v49  ;;  %v777_v30 = vsub.s32 4294967266, %v772_v49  ;;  %v8271_v46 = vand.u32 2147483647, %v5031_v15  ;;  %v774_v52 = vshll.u32 %v765_v8, %v772_v49 }
 0x15d   : > { %v1099_v0 = vsub.s32 4, %v8274_v39  ;;  %v994_v40 = vsel %vm911_vm5, %v993_v9, %v992_v53  ;;  %4640 = vsinq.f32 %v1101_v63  ;;  %v1307_v21 = vsub.s32 4, %v5481_v22 }
 0x15e   : > { %vm5819_vm12 = vcmp.le.f32.partialorder %v8271_v46, 0.7853982  ;;  %v775_v54 = vshrl.u32 %v757_v48, %v773_v62  ;;  %v778_v25 = vadd.s32 127, %v777_v30  ;;  %4642 = vcosq.f32 %v1309_v42 }
 0x15f   : > { %v581_v34 = vsel %vm5819_vm12, %v5031_v15, %v578_v33  ;;  %v580_v55 = vsel %vm495_vm11, %v579_v6, %v5692_v47  ;;  %v8275_v13 = vand.u32 2147483647, %v8259_v23  ;;  %v1205_v38 = vsel %vm5789_vm7, %v8263_v57, %v1202_v31 }
 0x160   : > { %v776_v8 = vor.u32 %v775_v54, %v774_v52  ;;  %v779_v19 = vshll.u32 %v778_v25, 23  ;;  %4644 = vsinq.f32 %v1309_v42  ;;  %v1100_v47 = vsel %vm1015_vm4, %v1099_v0, %v8274_v39 }
 0x161   : > { %vm5835_vm13 = vcmp.le.f32.partialorder %v8275_v13, 0.7853982  ;;  %4646 = vcosq.f32 %v581_v34  ;;  %v582_v37 = vsel %vm5819_vm12, 0, %v580_v55  ;;  %v1308_v7 = vsel %vm1223_vm9, %v1307_v21, %v5481_v22 }
 0x162   : > { %v997_v18 = vsel %vm5835_vm13, %v8259_v23, %v994_v40  ;;  %v780_v41 = vor.u32 4788187, %v779_v19  ;;  %4648 = vsinq.f32 %v581_v34  ;;  %v1203_v43 = vsub.s32 4, %v5419_v1 }
 0x163   : > { %4650 = vcosq.f32 %v1205_v38  ;;  %v783_v45 = vcvt.s32.f32 %v776_v8  ;;  %v787_v16 = vsub.s32 4, %v5763_v58  ;;  %v1102_v4 = vsel %vm5783_vm6, 0, %v1100_v47 }
 0x164   : > { %v781_v17 = vand.u32 2147483647, %v780_v41  ;;  %4652 = vsinq.f32 %v1205_v38  ;;  %v995_v53 = vsub.s32 4, %v8278_v10  ;;  %v586_v56 = vadd.s32 3, %v582_v37 }
 0x165   : > { %4654 = vcosq.f32 %v997_v18  ;;  %v1310_v2 = vsel %vm5800_vm14, 0, %v1308_v7  ;;  %v4639_v22 = vpop.eup %4638  ;;  %vm703_vm15 = vcmp.lt.s32.totalorder %v8251_v26, 0  ;;  %v1204_v3 = vsel %vm1119_vm8, %v1203_v43, %v5419_v1 }
 0x166   : > { %v784_v35 = vmul.f32 %v783_v45, %v781_v17  ;;  %4656 = vsinq.f32 %v997_v18  ;;  %v788_v11 = vsel %vm703_vm15, %v787_v16, %v5763_v58  ;;  %v1106_v27 = vadd.s32 3, %v1102_v4 }
 0x167   : > { %v4641_v63 = vpop.eup %4640  ;;  %v1314_v50 = vadd.s32 3, %v1310_v2  ;;  %v996_v20 = vsel %vm911_vm5, %v995_v53, %v8278_v10  ;;  %v5868_v9 = vand.u32 3, %v586_v56  ;;  %vm5872_vm0 = vcmp.le.f32.partialorder %v701_v12, 0.7853982 }
 0x168   : > { %v785_v32 = vxor.u32 2147483648, %v784_v35  ;;  %v4643_v51 = vpop.eup %4642  ;;  %v1206_v58 = vsel %vm5789_vm7, 0, %v1204_v3  ;;  %v790_v48 = vsel %vm5872_vm0, 0, %v788_v11  ;;  %v1107_v30 = vand.u32 3, %v1106_v27 }
 0x169   : > { %v1110_v31 = vxor.u32 2147483648, %v4641_v63  ;;  %v998_v12 = vsel %vm5835_vm13, 0, %v996_v20  ;;  %v1113_v46 = vxor.u32 2147483648, %v4639_v22  ;;  %v1315_v29 = vand.u32 3, %v1314_v50 }
 0x16a   : > { %v786_v1 = vsel %vm703_vm15, %v785_v32, %v784_v35  ;;  %v4645_v49 = vpop.eup %4644  ;;  %v1210_v5 = vadd.s32 3, %v1206_v58  ;;  %vm588_vm1 = vcmp.lt.s32.totalorder %v5868_v9, 2  ;;  %vm589_vm2 = vcmp.eq.s32.totalorder %v5868_v9, 0 }
 0x16b   : > { %v789_v33 = vsel %vm5872_vm0, %v8251_v26, %v786_v1  ;;  %v4647_v62 = vpop.eup %4646  ;;  %v794_v54 = vadd.s32 3, %v790_v48  ;;  %vm592_vm3 = vcmp.eq.s32.totalorder %v5868_v9, 2  ;;  %v1318_v39 = vxor.u32 2147483648, %v4645_v49 }
 0x16c   : > { %4658 = vcosq.f32 %v789_v33  ;;  %v4649_v42 = vpop.eup %4648  ;;  %v1321_v0 = vxor.u32 2147483648, %v4643_v51  ;;  %v1002_v40 = vadd.s32 3, %v998_v12  ;;  %v593_v55 = vxor.u32 2147483648, %v4647_v62 }
 0x16d   : > { %4660 = vsinq.f32 %v789_v33  ;;  %v4651_v52 = vpop.eup %4650  ;;  %v590_v21 = vxor.u32 2147483648, %v4649_v42  ;;  %vm1109_vm4 = vcmp.eq.s32.totalorder %v1107_v30, 0  ;;  %vm1112_vm5 = vcmp.eq.s32.totalorder %v1107_v30, 2 }
 0x16e   : > { %v4653_v25 = vpop.eup %4652  ;;  %vm1313_vm6 = vweird.f32 %v8267_v28  ;;  %vm585_vm7 = vweird.f32 %v5031_v15  ;;  %v1111_v19 = vsel %vm1109_vm4, %v4639_v22, %v1110_v31  ;;  %v1114_v13 = vsel %vm1112_vm5, %v1113_v46, %v4641_v63 }
 0x16f   : > { %v4655_v34 = vpop.eup %4654  ;;  %vm1317_vm8 = vcmp.eq.s32.totalorder %v1315_v29, 0  ;;  %v1211_v59 = vand.u32 3, %v1210_v5  ;;  %v795_v38 = vand.u32 3, %v794_v54  ;;  %vm1105_vm9 = vweird.f32 %v8258_v24  ;;  %v4624_v24 = vld [vmem:[%s8127_s2] sm:$0xff]  }
 0x170   : > { %v4657_v8 = vpop.eup %4656  ;;  %vm1320_vm14 = vcmp.eq.s32.totalorder %v1315_v29, 2  ;;  %v1214_v18 = vxor.u32 2147483648, %v4653_v25  ;;  %v1217_v41 = vxor.u32 2147483648, %v4651_v52  ;;  %vm793_vm10 = vweird.f32 %v8251_v26  ;;  %v4625_v26 = vld [vmem:[%s8127_s2 + $0x8] sm:$0xff]  }
 0x171   : > { %vm1108_vm11 = vcmp.lt.s32.totalorder %v1107_v30, 2  ;;  %v1319_v47 = vsel %vm1317_vm8, %v4643_v51, %v1318_v39  ;;  %v1322_v37 = vsel %vm1320_vm14, %v1321_v0, %v4645_v49  ;;  %v1003_v7 = vand.u32 3, %v1002_v40 }
 0x172   : > { %v591_v43 = vsel %vm589_vm2, %v4647_v62, %v590_v21  ;;  %v594_v17 = vsel %vm592_vm3, %v593_v55, %v4649_v42  ;;  %v1006_v45 = vxor.u32 2147483648, %v4657_v8  ;;  %v1009_v16 = vxor.u32 2147483648, %v4655_v34  ;;  %v5920_v42 = vpop.permute.xlu1 %1344 }
 0x173   : > { %v1115_v4 = vsel %vm1108_vm11, %v1111_v19, %v1114_v13  ;;  %vm1316_vm12 = vcmp.lt.s32.totalorder %v1315_v29, 2  ;;  %vm1213_vm13 = vcmp.eq.s32.totalorder %v1211_v59, 0  ;;  %vm1216_vm15 = vcmp.eq.s32.totalorder %v1211_v59, 2 }
 0x174   : > { %vm800_vm0 = vcmp.eq.s32.totalorder %v795_v38, 2  ;;  %v1323_v53 = vsel %vm1316_vm12, %v1319_v47, %v1322_v37  ;;  %v1215_v56 = vsel %vm1213_vm13, %v4651_v52, %v1214_v18  ;;  %v1218_v35 = vsel %vm1216_vm15, %v1217_v41, %v4653_v25 }
 0x175   : > { %v595_v22 = vsel %vm588_vm1, %v591_v43, %v594_v17  ;;  %vm1005_vm2 = vcmp.eq.s32.totalorder %v1003_v7, 0  ;;  %vm1008_vm4 = vcmp.eq.s32.totalorder %v1003_v7, 2  ;;  %vm1212_vm3 = vcmp.lt.s32.totalorder %v1211_v59, 2 }
 0x176   : > { %v4659_v10 = vpop.eup %4658  ;;  %v1007_v11 = vsel %vm1005_vm2, %v4655_v34, %v1006_v45  ;;  %v1010_v27 = vsel %vm1008_vm4, %v1009_v16, %v4657_v8  ;;  %vm797_vm5 = vcmp.eq.s32.totalorder %v795_v38, 0  ;;  %v1324_v50 = vsel %vm1313_vm6, nan, %v1323_v53 }
 0x177   : > { %v4661_v2 = vpop.eup %4660  ;;  %v801_v3 = vxor.u32 2147483648, %v4659_v10  ;;  %v1219_v20 = vsel %vm1212_vm3, %v1215_v56, %v1218_v35  ;;  %v596_v51 = vsel %vm585_vm7, nan, %v595_v22  ;;  %vm796_vm8 = vcmp.lt.s32.totalorder %v795_v38, 2 }
 0x178   : > { %v798_v32 = vxor.u32 2147483648, %v4661_v2  ;;  %vm1004_vm14 = vcmp.lt.s32.totalorder %v1003_v7, 2  ;;  %v1116_v1 = vsel %vm1105_vm9, nan, %v1115_v4  ;;  %vm1209_vm1 = vweird.f32 %v8263_v57 }
 0x179   : > { %v802_v63 = vsel %vm800_vm0, %v801_v3, %v4661_v2  ;;  %v1011_v58 = vsel %vm1004_vm14, %v1007_v11, %v1010_v27  ;;  %v1332_v33 = vpack.c.bf16 %v1324_v50, %v1116_v1  ;;  %v1220_v28 = vsel %vm1209_vm1, nan, %v1219_v20 }
 0x17a   : > { %v799_v6 = vsel %vm797_vm5, %v4659_v10, %v798_v32  ;;  %vm1001_vm6 = vweird.f32 %v8259_v23  ;;  %vm8213_vm7 = vcmask 261120   ;;  %v8281_v57 = vmov 0   ;;  %v1340_v23 = vpop.permute.xlu0 %1339 }
 0x17b   : > { %v803_v9 = vsel %vm796_vm8, %v799_v6, %v802_v63  ;;  %v1012_v15 = vsel %vm1001_vm6, nan, %v1011_v58  ;;  %v8284_v35 = vmov 1326507024  }
 0x17c   : > { %v804_v49 = vsel %vm793_vm10, nan, %v803_v9  ;;  %v1331_v62 = vpack.c.bf16 %v1220_v28, %v1012_v15 }
 0x17d   : > { %v1329_v48 = vpack.c.bf16 %v804_v49, %v596_v51 }
 0x17f   : > { %1375 = vmatpush1.bf16.msra.mxu0 %v1329_v48 }
 0x180   : > { %1376 = vmatprep.subr.bf16.mxu0 %v1332_v33 }
 0x183   : > { %1377 = vmatpush1.bf16.msra.mxu0 %v1331_v62 }
 0x186   : > { %4313 = vmatmul.mubr.msk.bf16.vlgmr.msra.gmra.mrb[0].mxu0 %vm8213_vm7, %v4624_v24 }
 0x187   : > { %1416 = vmatprep.mubr.bf16.mxu0 %v8281_v57 }
 0x18e   : > { %4314 = vmatmul.mubr.msk.bf16.gmra.mrb[4].mxu0 %vm8213_vm7, %v4625_v26 }
 0x18f   : > { %3272 = vmatprep.mubr.bf16.mxu0 %v8281_v57 }
 0x259   : > { %v1408_v30 = vpop.f32.mrb[0].mxu0 }
 0x25a   : > { %v5918_v31 = vadd.f32 %v1408_v30, %v1340_v23  ;;  %v1410_v12 = vpop.f32.mrb[1].mxu0 }
 0x25b   : > { %v1412_v46 = vpop.f32.mrb[2].mxu0  ;;  %v5973_v15 = vadd.f32 %v1410_v12, %v1340_v23 }
 0x25c   : > { %8282 = vst [vmem:[#allocation7_spill] sm:$0xff] %v5918_v31  ;;  %v1430_v29 = vand.u32 2139095040, %v5918_v31  ;;  %v5924_v5 = vadd.f32 %v1412_v46, %v5920_v42  ;;  %v5926_v52 = vpop.f32.mrb[3].mxu0  ;;  %v8180_v55 = vand.u32 2147483647, %v5918_v31 }
 0x25d   : > { %8285 = vst [vmem:[#allocation6_spill] sm:$0xff] %v5973_v15  ;;  %v1534_v23 = vand.u32 2139095040, %v5973_v15 }
 0x25e   : > { %8283 = vst [vmem:[#allocation15_spill] sm:$0xff] %v5924_v5  ;;  %v1431_v54 = vshrl.u32 %v1430_v29, 23  ;;  %v1638_v39 = vand.u32 2139095040, %v5924_v5  ;;  %v1434_v38 = vand.u32 8388607, %v8180_v55 }
 0x25f   : > { %v8178_v43 = vand.u32 2147483647, %v5924_v5 }
 0x260   : > { %v4315_v25 = vadd.s32 4294967169, %v1431_v54  ;;  %v1639_v8 = vshrl.u32 %v1638_v39, 23  ;;  %v1435_v27 = vor.u32 8388608, %v1434_v38  ;;  %v5984_v39 = vpop.permute.xlu0 %1349 }
 0x261   : > { %v1418_v0 = vpop.f32.mrb[4].mxu0  ;;  %v1642_v6 = vand.u32 8388607, %v8178_v43 }
 0x262   : > { %v1437_v40 = vadd.s32 1, %v4315_v25  ;;  %v5929_v34 = vpop.f32.mrb[5].mxu0  ;;  %v4323_v41 = vadd.s32 4294967169, %v1639_v8  ;;  %v1475_v48 = vshll.u32 %v1435_v27, 8  ;;  %v5989_v8 = vadd.f32 %v1418_v0, %v5984_v39 }
 0x263   : > { %v5931_v21 = vpop.f32.mrb[6].mxu0  ;;  %v1643_v26 = vor.u32 8388608, %v1642_v6 }
 0x264   : > { %vm1438_vm9 = vcmp.gt.s32.totalorder %v1437_v40, 0  ;;  %v5934_v19 = vpop.f32.mrb[7].mxu0  ;;  %v1645_v11 = vadd.s32 1, %v4323_v41  ;;  %8286 = vst [vmem:[#allocation11_spill] sm:$0xff] %v5989_v8 }
 0x265   : > { %v1439_v13 = vsel %vm1438_vm9, %v1437_v40, 0  ;;  %v5995_v41 = vshll.u32 %v1643_v26, 8 }
 0x266   : > { %v1441_v59 = vand.u32 31, %v1439_v13  ;;  %v5938_v47 = vshrl.u32 %v1439_v13, 5  ;;  %vm1646_vm15 = vcmp.gt.s32.totalorder %v1645_v11, 0 }
 0x267   : > { %v1647_v30 = vsel %vm1646_vm15, %v1645_v11, 0 }
 0x268   : > { %v1442_v18 = vsub.s32 32, %v1441_v59  ;;  %v1444_v37 = vshll.u32 %v8238_v36, %v1441_v59  ;;  %v1447_v7 = vshll.u32 %v8244_v14, %v1441_v59  ;;  %v1450_v16 = vshll.u32 %v8242_v61, %v1441_v59 }
 0x269   : > { %v1453_v10 = vshll.u32 %v8239_v60, %v1441_v59  ;;  %v1456_v56 = vshll.u32 %v8240_v44, %v1441_v59  ;;  %vm1459_vm10 = vcmp.lt.s32.totalorder %v5938_v47, 1  ;;  %vm1462_vm11 = vcmp.lt.s32.totalorder %v5938_v47, 4 }
 0x26a   : > { %v1445_v17 = vshrl.u32 %v8244_v14, %v1442_v18  ;;  %v1448_v45 = vshrl.u32 %v8242_v61, %v1442_v18  ;;  %v1451_v4 = vshrl.u32 %v8239_v60, %v1442_v18  ;;  %v1454_v53 = vshrl.u32 %v8240_v44, %v1442_v18 }
 0x26b   : > { %v1457_v2 = vshrl.u32 %v8284_v35, %v1442_v18  ;;  %vm1461_vm12 = vcmp.lt.s32.totalorder %v5938_v47, 3  ;;  %vm1460_vm13 = vcmp.lt.s32.totalorder %v5938_v47, 2  ;;  %v1649_v25 = vand.u32 31, %v1647_v30 }
 0x26c   : > { %v1446_v22 = vor.u32 %v1445_v17, %v1444_v37  ;;  %v1449_v3 = vor.u32 %v1448_v45, %v1447_v7  ;;  %v1452_v32 = vor.u32 %v1451_v4, %v1450_v16  ;;  %v1455_v63 = vor.u32 %v1454_v53, %v1453_v10 }
 0x26d   : > { %v1458_v50 = vor.u32 %v1457_v2, %v1456_v56  ;;  %v1443_v40 = vshrl.u32 %v8238_v36, %v1442_v18  ;;  %v1650_v12 = vsub.s32 32, %v1649_v25  ;;  %v1648_v38 = vshrl.u32 %v1647_v30, 5 }
 0x26e   : > { %v1467_v20 = vsel %vm1459_vm10, %v1446_v22, %v1449_v3  ;;  %v1471_v51 = vsel %vm1459_vm10, %v1449_v3, %v1452_v32  ;;  %v1468_v9 = vsel %vm1462_vm11, %v1455_v63, 920167782  ;;  %v1464_v46 = vsel %vm1462_vm11, %v1452_v32, 2102212464 }
 0x26f   : > { %v1472_v1 = vsel %vm1462_vm11, %v1458_v50, 1326507024  ;;  %v1469_v58 = vsel %vm1461_vm12, %v1452_v32, %v1468_v9  ;;  %v1463_v13 = vsel %vm1459_vm10, %v1443_v40, %v1446_v22  ;;  %v1465_v59 = vsel %vm1461_vm12, %v1449_v3, %v1464_v46 }
 0x270   : > { %v1473_v49 = vsel %vm1461_vm12, %v1455_v63, %v1472_v1  ;;  %v1470_v33 = vsel %vm1460_vm13, %v1467_v20, %v1469_v58  ;;  %v1652_v37 = vshll.u32 %v8238_v36, %v1649_v25  ;;  %v1653_v7 = vshrl.u32 %v8244_v14, %v1650_v12 }
 0x271   : > { %v1474_v28 = vsel %vm1460_vm13, %v1471_v51, %v1473_v49  ;;  %v5975_v62 = vmul.u32.u64.low %v1475_v48, %v1470_v33  ;;  %v5976_v24 = vmul.u32.u64.high %v1475_v48, %v1470_v33, %v5975_v62  ;;  %v1655_v18 = vshll.u32 %v8244_v14, %v1649_v25 }
 0x272   : > { %v5981_v29 = vmul.u32.u64.low %v1475_v48, %v1474_v28  ;;  %v5982_v54 = vmul.u32.u64.high %v1475_v48, %v1474_v28, %v5981_v29  ;;  %v1656_v17 = vshrl.u32 %v8242_v61, %v1650_v12  ;;  %v1658_v0 = vshll.u32 %v8242_v61, %v1649_v25 }
 0x273   : > { %v1659_v45 = vshrl.u32 %v8239_v60, %v1650_v12  ;;  %v1661_v16 = vshll.u32 %v8239_v60, %v1649_v25  ;;  %v1662_v4 = vshrl.u32 %v8240_v44, %v1650_v12  ;;  %v1654_v10 = vor.u32 %v1653_v7, %v1652_v37 }
 0x274   : > { %v1657_v53 = vor.u32 %v1656_v17, %v1655_v18  ;;  %v1664_v56 = vshll.u32 %v8240_v44, %v1649_v25  ;;  %v1665_v2 = vshrl.u32 %v8284_v35, %v1650_v12  ;;  %v1466_v22 = vsel %vm1460_vm13, %v1463_v13, %v1465_v59 }
 0x275   : > { %v1485_v3 = vadd.s32 1, %v5976_v24  ;;  %v1660_v32 = vor.u32 %v1659_v45, %v1658_v0  ;;  %v1663_v11 = vor.u32 %v1662_v4, %v1661_v16  ;;  %vm1484_vm0 = vc.u32 %v5982_v54, %v5975_v62 }
 0x276   : > { %v1666_v27 = vor.u32 %v1665_v2, %v1664_v56  ;;  %vm1667_vm2 = vcmp.lt.s32.totalorder %v1648_v38, 1  ;;  %vm1670_vm4 = vcmp.lt.s32.totalorder %v1648_v38, 4  ;;  %vm1669_vm3 = vcmp.lt.s32.totalorder %v1648_v38, 3 }
 0x277   : > { %v1675_v63 = vsel %vm1667_vm2, %v1654_v10, %v1657_v53  ;;  %v1676_v50 = vsel %vm1670_vm4, %v1663_v11, 920167782  ;;  %v1846_v20 = vand.u32 2139095040, %v5989_v8  ;;  %vm1668_vm5 = vcmp.lt.s32.totalorder %v1648_v38, 2 }
 0x278   : > { %v1677_v47 = vsel %vm1669_vm3, %v1660_v32, %v1676_v50  ;;  %v1679_v51 = vsel %vm1667_vm2, %v1657_v53, %v1660_v32  ;;  %v1680_v6 = vsel %vm1670_vm4, %v1666_v27, 1326507024  ;;  %v1486_v9 = vsel %vm1484_vm0, %v1485_v3, %v5976_v24 }
 0x279   : > { %v1678_v1 = vsel %vm1668_vm5, %v1675_v63, %v1677_v47  ;;  %v1681_v58 = vsel %vm1669_vm3, %v1663_v11, %v1680_v6  ;;  %v1482_v49 = vmul.u32 %v1475_v48, %v1466_v22  ;;  %v1535_v30 = vshrl.u32 %v1534_v23, 23 }
 0x27a   : > { %v1682_v33 = vsel %vm1668_vm5, %v1679_v51, %v1681_v58  ;;  %v6023_v28 = vmul.u32.u64.low %v5995_v41, %v1678_v1  ;;  %v6024_v26 = vmul.u32.u64.high %v5995_v41, %v1678_v1, %v6023_v28  ;;  %v6033_v24 = vadd.f32 %v5926_v52, %v5920_v42 }
 0x27b   : > { %v6028_v46 = vmul.u32.u64.low %v5995_v41, %v1682_v33  ;;  %v6029_v29 = vmul.u32.u64.high %v5995_v41, %v1682_v33, %v6028_v46  ;;  %v1487_v25 = vadd.s32 %v1486_v9, %v1482_v49  ;;  %v1847_v40 = vshrl.u32 %v1846_v20, 23 }
 0x27c   : > { %v1672_v48 = vsel %vm1670_vm4, %v1660_v32, 2102212464  ;;  %v4319_v59 = vadd.s32 4294967169, %v1535_v30  ;;  %v1651_v37 = vshrl.u32 %v8238_v36, %v1650_v12  ;;  %v1742_v7 = vand.u32 2139095040, %v6033_v24 }
 0x27d   : > { %v4331_v13 = vadd.s32 4294967169, %v1847_v40  ;;  %v1488_v18 = vadd.s32 536870912, %v1487_v25  ;;  %v1673_v0 = vsel %vm1669_vm3, %v1657_v53, %v1672_v48  ;;  %v1693_v45 = vadd.s32 1, %v6024_v26 }
 0x27e   : > { %v1671_v17 = vsel %vm1667_vm2, %v1651_v37, %v1654_v10  ;;  %v1541_v42 = vadd.s32 1, %v4319_v59  ;;  %vm1692_vm14 = vc.u32 %v6029_v29, %v6023_v28  ;;  %v1743_v52 = vshrl.u32 %v1742_v7, 23 }
 0x27f   : > { %v1853_v23 = vadd.s32 1, %v4331_v13  ;;  %v6043_v4 = vshrl.u32 %v1488_v18, 30  ;;  %v1674_v12 = vsel %vm1668_vm5, %v1671_v17, %v1673_v0  ;;  %v8182_v56 = vand.u32 2147483647, %v5989_v8 }
 0x280   : > { %v1694_v10 = vsel %vm1692_vm14, %v1693_v45, %v6024_v26  ;;  %v6050_v53 = vadd.f32 %v5929_v34, %v5984_v39  ;;  %vm1542_vm1 = vcmp.gt.s32.totalorder %v1541_v42, 0  ;;  %v1690_v3 = vmul.u32 %v5995_v41, %v1674_v12 }
 0x281   : > { %vm1854_vm8 = vcmp.gt.s32.totalorder %v1853_v23, 0  ;;  %8287 = vst [vmem:[#allocation12_spill] sm:$0xff] %v6043_v4  ;;  %v4327_v32 = vadd.s32 4294967169, %v1743_v52  ;;  %v1490_v11 = vshll.u32 %v6043_v4, 30  ;;  %v1850_v38 = vand.u32 8388607, %v8182_v56 }
 0x282   : > { %v1855_v16 = vsel %vm1854_vm8, %v1853_v23, 0  ;;  %8288 = vst [vmem:[#allocation8_spill] sm:$0xff] %v6050_v53  ;;  %v6058_v50 = vadd.s32 %v1694_v10, %v1690_v3  ;;  %v1950_v6 = vand.u32 2139095040, %v6050_v53  ;;  %v1543_v9 = vsel %vm1542_vm1, %v1541_v42, 0 }
 0x283   : > { %v1857_v2 = vand.u32 31, %v1855_v16  ;;  %v6067_v1 = vshrl.u32 %v1855_v16, 5  ;;  %v6071_v40 = vsub.s32 %v1487_v25, %v1490_v11  ;;  %v8179_v13 = vand.u32 2147483647, %v5973_v15 }
 0x284   : > { %v1696_v48 = vadd.s32 536870912, %v6058_v50  ;;  %v1749_v59 = vadd.s32 1, %v4327_v32  ;;  %v1851_v37 = vor.u32 8388608, %v1850_v38  ;;  %v1951_v18 = vshrl.u32 %v1950_v6, 23 }
 0x285   : > { %v1858_v22 = vsub.s32 32, %v1857_v2  ;;  %v1860_v20 = vshll.u32 %v8238_v36, %v1857_v2  ;;  %v1863_v34 = vshll.u32 %v8244_v14, %v1857_v2  ;;  %v1866_v41 = vshll.u32 %v8242_v61, %v1857_v2 }
 0x286   : > { %v1869_v47 = vshll.u32 %v8239_v60, %v1857_v2  ;;  %v1872_v30 = vshll.u32 %v8240_v44, %v1857_v2  ;;  %v6075_v23 = vand.u32 31, %v1543_v9  ;;  %vm1875_vm6 = vcmp.lt.s32.totalorder %v6067_v1, 1 }
 0x287   : > { %v1861_v27 = vshrl.u32 %v8244_v14, %v1858_v22  ;;  %v1864_v63 = vshrl.u32 %v8242_v61, %v1858_v22  ;;  %v1867_v39 = vshrl.u32 %v8239_v60, %v1858_v22  ;;  %v1870_v51 = vshrl.u32 %v8240_v44, %v1858_v22 }
 0x288   : > { %v1873_v46 = vshrl.u32 %v8284_v35, %v1858_v22  ;;  %vm1877_vm9 = vcmp.lt.s32.totalorder %v6067_v1, 3  ;;  %vm1878_vm10 = vcmp.lt.s32.totalorder %v6067_v1, 4  ;;  %v1493_v42 = vsub.s32 0, %v6071_v40 }
 0x289   : > { %v1862_v58 = vor.u32 %v1861_v27, %v1860_v20  ;;  %v1865_v49 = vor.u32 %v1864_v63, %v1863_v34  ;;  %v1868_v33 = vor.u32 %v1867_v39, %v1866_v41  ;;  %v1871_v26 = vor.u32 %v1870_v51, %v1869_v47  ;;  %v6115_v51 = vpop.permute.xlu1 %1354 }
 0x28a   : > { %v1874_v7 = vor.u32 %v1873_v46, %v1872_v30  ;;  %v6089_v52 = vshrl.u32 %v1696_v48, 30  ;;  %vm1876_vm11 = vcmp.lt.s32.totalorder %v6067_v1, 2  ;;  %v1891_v2 = vshll.u32 %v1851_v37, 8 }
 0x28b   : > { %v1883_v25 = vsel %vm1875_vm6, %v1862_v58, %v1865_v49  ;;  %v1884_v17 = vsel %vm1878_vm10, %v1871_v26, 920167782  ;;  %v1887_v0 = vsel %vm1875_vm6, %v1865_v49, %v1868_v33  ;;  %v4335_v10 = vadd.s32 4294967169, %v1951_v18 }
 0x28c   : > { %v1888_v45 = vsel %vm1878_vm10, %v1874_v7, 1326507024  ;;  %8289 = vst [vmem:[#allocation5_spill] sm:$0xff] %v6089_v52  ;;  %v1885_v16 = vsel %vm1877_vm9, %v1868_v33, %v1884_v17  ;;  %vm1750_vm12 = vcmp.gt.s32.totalorder %v1749_v59, 0  ;;  %v6102_v11 = vand.u32 8388607, %v8179_v13 }
 0x28d   : > { %v1889_v12 = vsel %vm1877_vm9, %v1871_v26, %v1888_v45  ;;  %v1886_v3 = vsel %vm1876_vm11, %v1883_v25, %v1885_v16  ;;  %v6105_v38 = vsub.s32 32, %v6075_v23  ;;  %v1957_v20 = vadd.s32 1, %v4335_v10 }
 0x28e   : > { %v1890_v32 = vsel %vm1876_vm11, %v1887_v0, %v1889_v12  ;;  %v4316_v34 = vmin.u32 %v1493_v42, %v6071_v40  ;;  %v1698_v39 = vshll.u32 %v6089_v52, 30  ;;  %v1880_v41 = vsel %vm1878_vm10, %v1868_v33, 2102212464 }
 0x28f   : > { %v6107_v27 = vmul.u32.u64.low %v1891_v2, %v1890_v32  ;;  %v6108_v63 = vmul.u32.u64.high %v1891_v2, %v1890_v32, %v6107_v27  ;;  %v8181_v47 = vand.u32 2147483647, %v6050_v53  ;;  %v1859_v6 = vshrl.u32 %v8238_v36, %v1858_v22 }
 0x290   : > { %v6118_v26 = vmul.u32.u64.low %v1891_v2, %v1886_v3  ;;  %v6119_v30 = vmul.u32.u64.high %v1891_v2, %v1886_v3, %v6118_v26  ;;  %vm1958_vm13 = vcmp.gt.s32.totalorder %v1957_v20, 0  ;;  %v6122_v46 = vshrl.u32 %v1543_v9, 5 }
 0x291   : > { %v6126_v48 = vshll.u32 %v8239_v60, %v6075_v23  ;;  %v1959_v37 = vsel %vm1958_vm13, %v1957_v20, 0  ;;  %v6130_v33 = vadd.f32 %v5931_v21, %v6115_v51  ;;  %v1558_v7 = vshrl.u32 %v8240_v44, %v6105_v38 }
 0x292   : > { %v1879_v22 = vsel %vm1875_vm6, %v1859_v6, %v1862_v58  ;;  %v1881_v18 = vsel %vm1877_vm9, %v1865_v49, %v1880_v41  ;;  %v1961_v9 = vand.u32 31, %v1959_v37  ;;  %v1495_v25 = vclz %v4316_v34 }
 0x293   : > { %8290 = vst [vmem:[#allocation9_spill] sm:$0xff] %v6130_v33  ;;  %v6140_v17 = vshrl.u32 %v8284_v35, %v6105_v38  ;;  %v6143_v0 = vsel %vm1750_vm12, %v1749_v59, 0  ;;  %v1954_v21 = vand.u32 8388607, %v8181_v47  ;;  %v6148_v45 = vsub.s32 %v6058_v50, %v1698_v39 }
 0x294   : > { %vm1900_vm15 = vc.u32 %v6108_v63, %v6118_v26  ;;  %v1901_v58 = vadd.s32 1, %v6119_v30  ;;  %v1962_v49 = vsub.s32 32, %v1961_v9  ;;  %v1882_v42 = vsel %vm1876_vm11, %v1879_v22, %v1881_v18 }
 0x295   : > { %v1960_v16 = vshrl.u32 %v1959_v37, 5  ;;  %v1964_v12 = vshll.u32 %v8238_v36, %v1961_v9  ;;  %v2054_v59 = vand.u32 2139095040, %v6130_v33  ;;  %v1967_v3 = vshll.u32 %v8244_v14, %v1961_v9 }
 0x296   : > { %v1965_v10 = vshrl.u32 %v8244_v14, %v1962_v49  ;;  %v1968_v50 = vshrl.u32 %v8242_v61, %v1962_v49  ;;  %v1970_v32 = vshll.u32 %v8242_v61, %v1961_v9  ;;  %v1902_v27 = vsel %vm1900_vm15, %v1901_v58, %v6119_v30 }
 0x297   : > { %v1971_v20 = vshrl.u32 %v8239_v60, %v1962_v49  ;;  %v1973_v1 = vshll.u32 %v8239_v60, %v1961_v9  ;;  %v1974_v34 = vshrl.u32 %v8240_v44, %v1962_v49  ;;  %v1976_v6 = vshll.u32 %v8240_v44, %v1961_v9 }
 0x298   : > { %v1966_v39 = vor.u32 %v1965_v10, %v1964_v12  ;;  %v1969_v41 = vor.u32 %v1968_v50, %v1967_v3  ;;  %v1977_v37 = vshrl.u32 %v8284_v35, %v1962_v49  ;;  %v1898_v22 = vmul.u32 %v1891_v2, %v1882_v42 }
 0x299   : > { %v1955_v18 = vor.u32 8388608, %v1954_v21  ;;  %v1972_v43 = vor.u32 %v1971_v20, %v1970_v32  ;;  %v1975_v13 = vor.u32 %v1974_v34, %v1973_v1  ;;  %v4317_v55 = vadd.s32 4294967294, %v1495_v25 }
 0x29a   : > { %v1701_v47 = vsub.s32 0, %v6148_v45  ;;  %v1978_v30 = vor.u32 %v1977_v37, %v1976_v6  ;;  %v2055_v58 = vshrl.u32 %v2054_v59, 23  ;;  %v6168_v56 = vadd.s32 %v1902_v27, %v1898_v22 }
 0x29b   : > { %v1963_v57 = vshrl.u32 %v8238_v36, %v1962_v49  ;;  %vm1979_vm0 = vcmp.lt.s32.totalorder %v1960_v16, 1  ;;  %vm1982_vm2 = vcmp.lt.s32.totalorder %v1960_v16, 4  ;;  %vm1981_vm4 = vcmp.lt.s32.totalorder %v1960_v16, 3 }
 0x29c   : > { %v1984_v12 = vsel %vm1982_vm2, %v1972_v43, 2102212464  ;;  %v1987_v9 = vsel %vm1979_vm0, %v1966_v39, %v1969_v41  ;;  %v1988_v10 = vsel %vm1982_vm2, %v1975_v13, 920167782  ;;  %vm1980_vm3 = vcmp.lt.s32.totalorder %v1960_v16, 2 }
 0x29d   : > { %v1989_v2 = vsel %vm1981_vm4, %v1972_v43, %v1988_v10  ;;  %v1991_v21 = vsel %vm1979_vm0, %v1969_v41, %v1972_v43  ;;  %v1995_v42 = vshll.u32 %v1955_v18, 8  ;;  %v1983_v3 = vsel %vm1979_vm0, %v1963_v57, %v1966_v39 }
 0x29e   : > { %v1990_v25 = vsel %vm1980_vm3, %v1987_v9, %v1989_v2  ;;  %v1992_v50 = vsel %vm1982_vm2, %v1978_v30, 1326507024  ;;  %v4339_v32 = vadd.s32 4294967169, %v2055_v58  ;;  %v1985_v59 = vsel %vm1981_vm4, %v1969_v41, %v1984_v12 }
 0x29f   : > { %v1993_v27 = vsel %vm1981_vm4, %v1975_v13, %v1992_v50  ;;  %v6172_v20 = vmul.u32.u64.low %v1995_v42, %v1990_v25  ;;  %v6173_v1 = vmul.u32.u64.high %v1995_v42, %v1990_v25, %v6172_v20  ;;  %v6178_v49 = vshll.u32 %v8240_v44, %v6075_v23 }
 0x2a0   : > { %v1904_v34 = vadd.s32 536870912, %v6168_v56  ;;  %v1994_v43 = vsel %vm1980_vm3, %v1991_v21, %v1993_v27  ;;  %v2061_v6 = vadd.s32 1, %v4339_v32  ;;  %vm4318_vm5 = vcmp.lt.s32.totalorder %v4317_v55, 0 }
 0x2a1   : > { %v6183_v57 = vor.u32 %v1558_v7, %v6126_v48  ;;  %v6185_v39 = vmul.u32.u64.low %v1995_v42, %v1994_v43  ;;  %v6186_v41 = vmul.u32.u64.high %v1995_v42, %v1994_v43, %v6185_v39  ;;  %v6191_v37 = vand.u32 31, %v6143_v0 }
 0x2a2   : > { %v1986_v22 = vsel %vm1980_vm3, %v1983_v3, %v1985_v59  ;;  %vm2062_vm8 = vcmp.gt.s32.totalorder %v2061_v6, 0  ;;  %v4324_v18 = vmin.u32 %v1701_v47, %v6148_v45  ;;  %v2005_v30 = vadd.s32 1, %v6173_v1 }
 0x2a3   : > { %v8184_v58 = vand.u32 2147483647, %v6130_v33  ;;  %v2063_v48 = vsel %vm2062_vm8, %v2061_v6, 0  ;;  %v6197_v7 = vsel %vm4318_vm5, 0, %v4317_v55  ;;  %vm1566_vm14 = vcmp.lt.s32.totalorder %v6122_v46, 4 }
 0x2a4   : > { %v6200_v12 = vshrl.u32 %v1904_v34, 30  ;;  %v2065_v9 = vand.u32 31, %v2063_v48  ;;  %v6205_v16 = vsel %vm1566_vm14, %v6183_v57, 920167782  ;;  %v6208_v10 = vshrl.u32 %v6143_v0, 5 }
 0x2a5   : > { %v2002_v47 = vmul.u32 %v1995_v42, %v1986_v22  ;;  %vm2004_vm1 = vc.u32 %v6186_v41, %v6172_v20  ;;  %v1483_v55 = vadd.s32 %v5975_v62, %v5982_v54  ;;  %v6215_v2 = vsub.s32 32, %v6191_v37 }
 0x2a6   : > { %8291 = vst [vmem:[#allocation10_spill] sm:$0xff] %v6200_v12  ;;  %v2006_v21 = vsel %vm2004_vm1, %v2005_v30, %v6173_v1  ;;  %v2066_v3 = vsub.s32 32, %v2065_v9  ;;  %v1503_v25 = vsub.s32 4294967266, %v6197_v7  ;;  %v1703_v50 = vclz %v4324_v18 }
 0x2a7   : > { %v2007_v32 = vadd.s32 %v2006_v21, %v2002_v47  ;;  %v2058_v0 = vand.u32 8388607, %v8184_v58  ;;  %v1906_v42 = vshll.u32 %v6200_v12, 30  ;;  %v2068_v34 = vshll.u32 %v8238_v36, %v2065_v9 }
 0x2a8   : > { %v2069_v59 = vshrl.u32 %v8244_v14, %v2066_v3  ;;  %v2072_v27 = vshrl.u32 %v8242_v61, %v2066_v3  ;;  %v2075_v62 = vshrl.u32 %v8239_v60, %v2066_v3  ;;  %v2071_v1 = vshll.u32 %v8244_v14, %v2065_v9 }
 0x2a9   : > { %v2008_v54 = vadd.s32 536870912, %v2007_v32  ;;  %v2078_v43 = vshrl.u32 %v8240_v44, %v2066_v3  ;;  %v2064_v6 = vshrl.u32 %v2063_v48, 5  ;;  %v2074_v39 = vshll.u32 %v8242_v61, %v2065_v9 }
 0x2aa   : > { %v2077_v22 = vshll.u32 %v8239_v60, %v2065_v9  ;;  %v6232_v18 = vadd.f32 %v5934_v19, %v6115_v51  ;;  %v1766_v30 = vshrl.u32 %v8240_v44, %v6215_v2  ;;  %v2070_v21 = vor.u32 %v2069_v59, %v2068_v34 }
 0x2ab   : > { %v6236_v47 = vshrl.u32 %v2008_v54, 30  ;;  %v2073_v58 = vor.u32 %v2072_v27, %v2071_v1  ;;  %v2076_v13 = vor.u32 %v2075_v62, %v2074_v39  ;;  %v2080_v52 = vshll.u32 %v8240_v44, %v2065_v9 }
 0x2ac   : > { %8292 = vst [vmem:[#allocation14_spill] sm:$0xff] %v6232_v18  ;;  %v2079_v12 = vor.u32 %v2078_v43, %v2077_v22  ;;  %v2081_v48 = vshrl.u32 %v8284_v35, %v2066_v3  ;;  %v1499_v33 = vsub.s32 32, %v6197_v7  ;;  %v1504_v4 = vadd.s32 127, %v1503_v25 }
 0x2ad   : > { %8293 = vst [vmem:[#allocation13_spill] sm:$0xff] %v6236_v47  ;;  %v6242_v15 = vsub.s32 %v6168_v56, %v1906_v42  ;;  %v2059_v19 = vor.u32 8388608, %v2058_v0  ;;  %v4325_v51 = vadd.s32 4294967294, %v1703_v50  ;;  %vm2083_vm6 = vcmp.lt.s32.totalorder %v2064_v6, 1 }
 0x2ae   : > { %v2082_v53 = vor.u32 %v2081_v48, %v2080_v52  ;;  %v2158_v54 = vand.u32 2139095040, %v6232_v18  ;;  %v2010_v59 = vshll.u32 %v6236_v47, 30  ;;  %v2067_v27 = vshrl.u32 %v8238_v36, %v2066_v3 }
 0x2af   : > { %vm2086_vm9 = vcmp.lt.s32.totalorder %v2064_v6, 4  ;;  %v2091_v9 = vsel %vm2083_vm6, %v2070_v21, %v2073_v58  ;;  %v2095_v1 = vsel %vm2083_vm6, %v2073_v58, %v2076_v13  ;;  %v1909_v25 = vsub.s32 0, %v6242_v15 }
 0x2b0   : > { %v2088_v62 = vsel %vm2086_vm9, %v2076_v13, 2102212464  ;;  %v2092_v34 = vsel %vm2086_vm9, %v2079_v12, 920167782  ;;  %v2096_v43 = vsel %vm2086_vm9, %v2082_v53, 1326507024  ;;  %v2087_v50 = vsel %vm2083_vm6, %v2067_v27, %v2070_v21 }
 0x2b1   : > { %vm2084_vm10 = vcmp.lt.s32.totalorder %v2064_v6, 2  ;;  %vm2085_vm11 = vcmp.lt.s32.totalorder %v2064_v6, 3  ;;  %v2099_v56 = vshll.u32 %v2059_v19, 8  ;;  %v2159_v42 = vshrl.u32 %v2158_v54, 23 }
 0x2b2   : > { %v2093_v52 = vsel %vm2085_vm11, %v2076_v13, %v2092_v34  ;;  %v2097_v0 = vsel %vm2085_vm11, %v2079_v12, %v2096_v43  ;;  %v6248_v39 = vsub.s32 %v2007_v32, %v2010_v59  ;;  %v2089_v22 = vsel %vm2085_vm11, %v2073_v58, %v2088_v62 }
 0x2b3   : > { %v2094_v3 = vsel %vm2084_vm10, %v2091_v9, %v2093_v52  ;;  %v2098_v48 = vsel %vm2084_vm10, %v2095_v1, %v2097_v0  ;;  %v1501_v31 = vshrl.u32 %v1483_v55, %v1499_v33  ;;  %v1505_v19 = vshll.u32 %v1504_v4, 23 }
 0x2b4   : > { %v6252_v47 = vmul.u32.u64.low %v2099_v56, %v2098_v48  ;;  %v6253_v8 = vmul.u32.u64.high %v2099_v56, %v2098_v48, %v6252_v47  ;;  %v6255_v53 = vmul.u32.u64.low %v2099_v56, %v2094_v3  ;;  %v6256_v5 = vmul.u32.u64.high %v2099_v56, %v2094_v3, %v6255_v53 }
 0x2b5   : > { %v1769_v13 = vshrl.u32 %v8284_v35, %v6215_v2  ;;  %v4343_v12 = vadd.s32 4294967169, %v2159_v42  ;;  %v1500_v58 = vshll.u32 %v6071_v40, %v6197_v7  ;;  %v1765_v32 = vshll.u32 %v8239_v60, %v6191_v37 }
 0x2b6   : > { %8294 = vst [vmem:[#allocation16_spill] sm:$0xff] %v6255_v53  ;;  %v1768_v21 = vshll.u32 %v8240_v44, %v6191_v37  ;;  %v4332_v47 = vmin.u32 %v1909_v25, %v6242_v15  ;;  %v2013_v54 = vsub.s32 0, %v6248_v39  ;;  %v2090_v33 = vsel %vm2084_vm10, %v2087_v50, %v2089_v22 }
 0x2b7   : > { %v8205_v4 = vand.u32 2147483647, %v6232_v18  ;;  %v2165_v55 = vadd.s32 1, %v4343_v12  ;;  %vm4326_vm12 = vcmp.lt.s32.totalorder %v4325_v51, 0  ;;  %v6271_v59 = vor.u32 %v1766_v30, %v1765_v32 }
 0x2b8   : > { %vm2108_vm13 = vc.u32 %v6253_v8, %v6255_v53  ;;  %v2109_v40 = vadd.s32 1, %v6256_v5  ;;  %v6276_v7 = vor.u32 %v1501_v31, %v1500_v58  ;;  %v6278_v27 = vor.u32 4788187, %v1505_v19 }
 0x2b9   : > { %v1770_v9 = vor.u32 %v1769_v13, %v1768_v21  ;;  %vm2166_vm15 = vcmp.gt.s32.totalorder %v2165_v55, 0  ;;  %v1911_v62 = vclz %v4332_v47  ;;  %v2106_v6 = vmul.u32 %v2099_v56, %v2090_v33 }
 0x2ba   : > { %v2110_v34 = vsel %vm2108_vm13, %v2109_v40, %v6256_v5  ;;  %v2167_v1 = vsel %vm2166_vm15, %v2165_v55, 0  ;;  %v8295_v30 = vor.u32 %v6140_v17, %v6178_v49  ;;  %v6288_v25 = vsel %vm4326_vm12, 0, %v4325_v51 }
 0x2bb   : > { %v4336_v31 = vmin.u32 %v2013_v54, %v6248_v39  ;;  %v2162_v50 = vand.u32 8388607, %v8205_v4  ;;  %v6295_v56 = vadd.s32 %v6023_v28, %v6029_v29  ;;  %vm1774_vm0 = vcmp.lt.s32.totalorder %v6208_v10, 4 }
 0x2bc   : > { %v6286_v43 = vsel %vm1566_vm14, %v8295_v30, 1326507024  ;;  %v2111_v5 = vadd.s32 %v2110_v34, %v2106_v6  ;;  %v2169_v52 = vand.u32 31, %v2167_v1  ;;  %v6303_v51 = vsel %vm1774_vm0, %v6271_v59, 920167782 }
 0x2bd   : > { %v6307_v0 = vsel %vm1774_vm0, %v1770_v9, 1326507024  ;;  %v1707_v28 = vsub.s32 32, %v6288_v25  ;;  %v6310_v29 = vadd.s32 4294967294, %v1911_v62  ;;  %v2015_v3 = vclz %v4336_v31 }
 0x2be   : > { %v2112_v42 = vadd.s32 536870912, %v2111_v5  ;;  %v2170_v22 = vsub.s32 32, %v2169_v52  ;;  %v2163_v48 = vor.u32 8388608, %v2162_v50  ;;  %v2168_v19 = vshrl.u32 %v2167_v1, 5 }
 0x2bf   : > { %v2172_v13 = vshll.u32 %v8238_v36, %v2169_v52  ;;  %v2175_v32 = vshll.u32 %v8244_v14, %v2169_v52  ;;  %v2178_v47 = vshll.u32 %v8242_v61, %v2169_v52  ;;  %v2181_v33 = vshll.u32 %v8239_v60, %v2169_v52 }
 0x2c0   : > { %v6313_v12 = vshrl.u32 %v2112_v42, 30  ;;  %v2173_v58 = vshrl.u32 %v8244_v14, %v2170_v22  ;;  %v2176_v21 = vshrl.u32 %v8242_v61, %v2170_v22  ;;  %v2179_v54 = vshrl.u32 %v8239_v60, %v2170_v22 }
 0x2c1   : > { %v2182_v55 = vshrl.u32 %v8240_v44, %v2170_v22  ;;  %v1548_v6 = vshll.u32 %v8238_v36, %v6075_v23  ;;  %vm4334_vm2 = vcmp.lt.s32.totalorder %v6310_v29, 0  ;;  %v2184_v30 = vshll.u32 %v8240_v44, %v2169_v52 }
 0x2c2   : > { %8296 = vst [vmem:[#allocation17_spill] sm:$0xff] %v6313_v12  ;;  %v2114_v40 = vshll.u32 %v6313_v12, 30  ;;  %v2174_v9 = vor.u32 %v2173_v58, %v2172_v13  ;;  %v2177_v62 = vor.u32 %v2176_v21, %v2175_v32  ;;  %v2180_v34 = vor.u32 %v2179_v54, %v2178_v47 }
 0x2c3   : > { %v2183_v1 = vor.u32 %v2182_v55, %v2181_v33  ;;  %v2185_v31 = vshrl.u32 %v8284_v35, %v2170_v22  ;;  %v2203_v50 = vshll.u32 %v2163_v48, 8  ;;  %v1549_v42 = vshrl.u32 %v8244_v14, %v6105_v38 }
 0x2c4   : > { %v1551_v4 = vshll.u32 %v8244_v14, %v6075_v23  ;;  %v1552_v13 = vshrl.u32 %v8242_v61, %v6105_v38  ;;  %v2171_v58 = vshrl.u32 %v8238_v36, %v2170_v22  ;;  %vm2187_vm4 = vcmp.lt.s32.totalorder %v2168_v19, 1 }
 0x2c5   : > { %v2186_v32 = vor.u32 %v2185_v31, %v2184_v30  ;;  %vm2190_vm3 = vcmp.lt.s32.totalorder %v2168_v19, 4  ;;  %vm2189_vm5 = vcmp.lt.s32.totalorder %v2168_v19, 3  ;;  %v2195_v52 = vsel %vm2187_vm4, %v2174_v9, %v2177_v62 }
 0x2c6   : > { %v2192_v21 = vsel %vm2190_vm3, %v2180_v34, 2102212464  ;;  %v2196_v47 = vsel %vm2190_vm3, %v2183_v1, 920167782  ;;  %v6335_v54 = vsub.s32 %v2111_v5, %v2114_v40  ;;  %vm2188_vm8 = vcmp.lt.s32.totalorder %v2168_v19, 2 }
 0x2c7   : > { %v2197_v48 = vsel %vm2189_vm5, %v2180_v34, %v2196_v47  ;;  %v2199_v33 = vsel %vm2187_vm4, %v2177_v62, %v2180_v34  ;;  %v2191_v55 = vsel %vm2187_vm4, %v2171_v58, %v2174_v9  ;;  %v2193_v49 = vsel %vm2189_vm5, %v2177_v62, %v2192_v21 }
 0x2c8   : > { %v2198_v17 = vsel %vm2188_vm8, %v2195_v52, %v2197_v48  ;;  %v2200_v35 = vsel %vm2190_vm3, %v2186_v32, 1326507024  ;;  %v4337_v44 = vadd.s32 4294967294, %v2015_v3  ;;  %v1550_v31 = vor.u32 %v1549_v42, %v1548_v6 }
 0x2c9   : > { %v2201_v12 = vsel %vm2189_vm5, %v2183_v1, %v2200_v35  ;;  %v6337_v18 = vmul.u32.u64.low %v2203_v50, %v2198_v17  ;;  %v6338_v22 = vmul.u32.u64.high %v2203_v50, %v2198_v17, %v6337_v18  ;;  %v1553_v53 = vor.u32 %v1552_v13, %v1551_v4 }
 0x2ca   : > { %v2202_v30 = vsel %vm2188_vm8, %v2199_v33, %v2201_v12  ;;  %v1554_v5 = vshll.u32 %v8242_v61, %v6075_v23  ;;  %v2194_v40 = vsel %vm2188_vm8, %v2191_v55, %v2193_v49  ;;  %v1555_v9 = vshrl.u32 %v8239_v60, %v6105_v38 }
 0x2cb   : > { %v6343_v19 = vmul.u32.u64.low %v2203_v50, %v2202_v30  ;;  %v6344_v47 = vmul.u32.u64.high %v2203_v50, %v2202_v30, %v6343_v19  ;;  %v1708_v35 = vshll.u32 %v6148_v45, %v6288_v25  ;;  %v1709_v17 = vshrl.u32 %v6295_v56, %v1707_v28 }
 0x2cc   : > { %v1711_v3 = vsub.s32 4294967266, %v6288_v25  ;;  %v2117_v12 = vsub.s32 0, %v6335_v54  ;;  %v2213_v4 = vadd.s32 1, %v6338_v22  ;;  %v1539_v23 = vor.u32 8388608, %v6102_v11 }
 0x2cd   : > { %v1547_v49 = vshrl.u32 %v8238_v36, %v6105_v38  ;;  %v1556_v62 = vor.u32 %v1555_v9, %v1554_v5  ;;  %v6360_v6 = vsel %vm4334_vm2, 0, %v6310_v29  ;;  %vm4338_vm1 = vcmp.lt.s32.totalorder %v4337_v44, 0 }
 0x2ce   : > { %v2210_v45 = vmul.u32 %v2203_v50, %v2194_v40  ;;  %vm1563_vm6 = vcmp.lt.s32.totalorder %v6122_v46, 1  ;;  %vm2212_vm9 = vc.u32 %v6344_v47, %v6337_v18  ;;  %vm1565_vm10 = vcmp.lt.s32.totalorder %v6122_v46, 3 }
 0x2cf   : > { %v1568_v11 = vsel %vm1566_vm14, %v1556_v62, 2102212464  ;;  %v1571_v25 = vsel %vm1563_vm6, %v1550_v31, %v1553_v53  ;;  %v4340_v38 = vmin.u32 %v2117_v12, %v6335_v54  ;;  %v2214_v56 = vsel %vm2212_vm9, %v2213_v4, %v6338_v22 }
 0x2d0   : > { %vm1564_vm11 = vcmp.lt.s32.totalorder %v6122_v46, 2  ;;  %v1577_v28 = vsel %vm1565_vm10, %v6183_v57, %v6286_v43  ;;  %v2215_v29 = vadd.s32 %v2214_v56, %v2210_v45  ;;  %v1573_v34 = vsel %vm1565_vm10, %v1556_v62, %v6205_v16 }
 0x2d1   : > { %v1575_v1 = vsel %vm1563_vm6, %v1553_v53, %v1556_v62  ;;  %v1579_v50 = vshll.u32 %v1539_v23, 8  ;;  %v1919_v42 = vsub.s32 4294967266, %v6360_v6  ;;  %v1567_v13 = vsel %vm1563_vm6, %v1547_v49, %v1550_v31 }
 0x2d2   : > { %v1569_v58 = vsel %vm1565_vm10, %v1553_v53, %v1568_v11  ;;  %v1574_v32 = vsel %vm1564_vm11, %v1571_v25, %v1573_v34  ;;  %v2216_v21 = vadd.s32 536870912, %v2215_v29  ;;  %v1578_v52 = vsel %vm1564_vm11, %v1575_v1, %v1577_v28 }
 0x2d3   : > { %v6379_v48 = vmul.u32.u64.low %v1579_v50, %v1574_v32  ;;  %v6380_v33 = vmul.u32.u64.high %v1579_v50, %v1574_v32, %v6379_v48  ;;  %v6384_v57 = vsel %vm4338_vm1, 0, %v4337_v44  ;;  %v2119_v16 = vclz %v4340_v38 }
 0x2d4   : > { %v6386_v43 = vmul.u32.u64.low %v1579_v50, %v1578_v52  ;;  %v6387_v55 = vmul.u32.u64.high %v1579_v50, %v1578_v52, %v6386_v43  ;;  %v8297_v53 = vand.u32 2147483647, %v6278_v27  ;;  %v8298_v22 = vcvt.s32.f32 %v6276_v7 }
 0x2d5   : > { %v1915_v31 = vsub.s32 32, %v6360_v6  ;;  %v6396_v5 = vshrl.u32 %v2216_v21, 30  ;;  %v1570_v40 = vsel %vm1564_vm11, %v1567_v13, %v1569_v58  ;;  %v6400_v19 = vor.u32 %v1709_v17, %v1708_v35 }
 0x2d6   : > { %v6393_v30 = vmul.f32 %v8298_v22, %v8297_v53  ;;  %v6402_v44 = vadd.s32 127, %v1711_v3  ;;  %v1899_v9 = vadd.s32 %v6118_v26, %v6108_v63  ;;  %v1920_v12 = vadd.s32 127, %v1919_v42 }
 0x2d7   : > { %v1916_v7 = vshll.u32 %v6242_v15, %v6360_v6  ;;  %v2023_v27 = vsub.s32 4294967266, %v6384_v57  ;;  %v2218_v4 = vshll.u32 %v6396_v5, 30  ;;  %v1589_v23 = vadd.s32 1, %v6380_v33 }
 0x2d8   : > { %v4341_v49 = vadd.s32 4294967294, %v2119_v16  ;;  %v1586_v46 = vmul.u32 %v1579_v50, %v1570_v40  ;;  %vm1588_vm14 = vc.u32 %v6387_v55, %v6379_v48  ;;  %v1739_v35 = vand.u32 2147483647, %v6033_v24 }
 0x2d9   : > { %v1917_v17 = vshrl.u32 %v1899_v9, %v1915_v31  ;;  %v6414_v3 = vsub.s32 %v2215_v29, %v2218_v4  ;;  %v1590_v63 = vsel %vm1588_vm14, %v1589_v23, %v6380_v33  ;;  %v1757_v15 = vshrl.u32 %v8244_v14, %v6215_v2 }
 0x2da   : > { %v1921_v26 = vshll.u32 %v1920_v12, 23  ;;  %v1591_v62 = vadd.s32 %v1590_v63, %v1586_v46  ;;  %v1756_v6 = vshll.u32 %v8238_v36, %v6191_v37  ;;  %v1760_v45 = vshrl.u32 %v8242_v61, %v6215_v2 }
 0x2db   : > { %v2221_v11 = vsub.s32 0, %v6414_v3  ;;  %v1759_v25 = vshll.u32 %v8244_v14, %v6191_v37  ;;  %v1762_v38 = vshll.u32 %v8242_v61, %v6191_v37  ;;  %v1763_v56 = vshrl.u32 %v8239_v60, %v6215_v2 }
 0x2dc   : > { %v2024_v28 = vadd.s32 127, %v2023_v27  ;;  %vm4342_vm12 = vcmp.lt.s32.totalorder %v4341_v49, 0  ;;  %v1592_v29 = vadd.s32 536870912, %v1591_v62  ;;  %v1746_v34 = vand.u32 8388607, %v1739_v35 }
 0x2dd   : > { %v4344_v1 = vmin.u32 %v2221_v11, %v6414_v3  ;;  %v1758_v50 = vor.u32 %v1757_v15, %v1756_v6  ;;  %v1761_v42 = vor.u32 %v1760_v45, %v1759_v25  ;;  %v1764_v13 = vor.u32 %v1763_v56, %v1762_v38 }
 0x2de   : > { %v1713_v58 = vshll.u32 %v6402_v44, 23  ;;  %v1918_v32 = vor.u32 %v1917_v17, %v1916_v7  ;;  %v1922_v21 = vor.u32 4788187, %v1921_v26  ;;  %v6434_v52 = vshrl.u32 %v1592_v29, 30 }
 0x2df   : > { %v2019_v37 = vsub.s32 32, %v6384_v57  ;;  %v6437_v33 = vsel %vm4342_vm12, 0, %v4341_v49  ;;  %v2223_v16 = vclz %v4344_v1  ;;  %vm1773_vm13 = vcmp.lt.s32.totalorder %v6208_v10, 3 }
 0x2e0   : > { %v1594_v43 = vshll.u32 %v6434_v52, 30  ;;  %v1747_v53 = vor.u32 8388608, %v1746_v34  ;;  %vm1771_vm15 = vcmp.lt.s32.totalorder %v6208_v10, 1  ;;  %v1785_v22 = vsel %vm1773_vm13, %v6271_v59, %v6307_v0 }
 0x2e1   : > { %v2025_v31 = vshll.u32 %v2024_v28, 23  ;;  %v4345_v40 = vadd.s32 4294967294, %v2223_v16  ;;  %v1779_v44 = vsel %vm1771_vm15, %v1758_v50, %v1761_v42  ;;  %v1781_v9 = vsel %vm1773_vm13, %v1764_v13, %v6303_v51 }
 0x2e2   : > { %v6451_v12 = vsub.s32 %v1591_v62, %v1594_v43  ;;  %vm1772_vm2 = vcmp.lt.s32.totalorder %v6208_v10, 2  ;;  %v1776_v7 = vsel %vm1774_vm0, %v1764_v13, 2102212464  ;;  %v1783_v27 = vsel %vm1771_vm15, %v1761_v42, %v1764_v13 }
 0x2e3   : > { %v2127_v59 = vsub.s32 4294967266, %v6437_v33  ;;  %vm4346_vm4 = vcmp.lt.s32.totalorder %v4345_v40, 0  ;;  %v1755_v0 = vshrl.u32 %v8238_v36, %v6215_v2  ;;  %v1786_v4 = vsel %vm1772_vm2, %v1783_v27, %v1785_v22 }
 0x2e4   : > { %v6463_v51 = vsel %vm4346_vm4, 0, %v4345_v40  ;;  %v1597_v23 = vsub.s32 0, %v6451_v12  ;;  %v1782_v49 = vsel %vm1772_vm2, %v1779_v44, %v1781_v9  ;;  %v1787_v46 = vshll.u32 %v1747_v53, 8  ;;  %v8300_v44 = vld [vmem:[#allocation7_spill] sm:$0xff] }
 0x2e5   : > { %v1923_v17 = vand.u32 2147483647, %v1922_v21  ;;  %v2003_v63 = vadd.s32 %v6172_v20, %v6186_v41  ;;  %v1775_v15 = vsel %vm1771_vm15, %v1755_v0, %v1758_v50  ;;  %v1777_v2 = vsel %vm1773_vm13, %v1761_v42, %v1776_v7 }
 0x2e6   : > { %v2231_v26 = vsub.s32 4294967266, %v6463_v51  ;;  %v4320_v62 = vmin.u32 %v1597_v23, %v6451_v12  ;;  %v6476_v6 = vmul.u32.u64.low %v1787_v46, %v1786_v4  ;;  %v6477_v45 = vmul.u32.u64.high %v1787_v46, %v1786_v4, %v6476_v6 }
 0x2e7   : > { %v2021_v11 = vshrl.u32 %v2003_v63, %v2019_v37  ;;  %v2128_v25 = vadd.s32 127, %v2127_v59  ;;  %v6479_v38 = vmul.u32.u64.low %v1787_v46, %v1782_v49  ;;  %v6480_v56 = vmul.u32.u64.high %v1787_v46, %v1782_v49, %v6479_v38 }
 0x2e8   : > { %v1714_v20 = vor.u32 4788187, %v1713_v58  ;;  %v1925_v41 = vcvt.s32.f32 %v1918_v32  ;;  %v2026_v28 = vor.u32 4788187, %v2025_v31  ;;  %v1599_v29 = vclz %v4320_v62  ;;  %v8299_v32 = vld [vmem:[#allocation16_spill] sm:$0xff] }
 0x2e9   : > { %v1717_v34 = vcvt.s32.f32 %v6400_v19  ;;  %v2020_v1 = vshll.u32 %v6248_v39, %v6384_v57  ;;  %v2123_v50 = vsub.s32 32, %v6437_v33  ;;  %v1778_v42 = vsel %vm1772_vm2, %v1775_v15, %v1777_v2 }
 0x2ea   : > { %v1926_v13 = vmul.f32 %v1925_v41, %v1923_v17  ;;  %v2232_v21 = vadd.s32 127, %v2231_v26  ;;  %v4321_v37 = vadd.s32 4294967294, %v1599_v29  ;;  %vm1796_vm0 = vc.u32 %v6477_v45, %v6479_v38 }
 0x2eb   : > { %v2022_v58 = vor.u32 %v2021_v11, %v2020_v1  ;;  %v2107_v16 = vadd.s32 %v8299_v32, %v6253_v8  ;;  %v2129_v43 = vshll.u32 %v2128_v25, 23  ;;  %v1797_v19 = vadd.s32 1, %v6480_v56 }
 0x2ec   : > { %v2027_v53 = vand.u32 2147483647, %v2026_v28  ;;  %v2227_v39 = vsub.s32 32, %v6463_v51  ;;  %vm4322_vm3 = vcmp.lt.s32.totalorder %v4321_v37, 0  ;;  %v1794_v57 = vmul.u32 %v1787_v46, %v1778_v42  ;;  %v8302_v28 = vld [vmem:[#allocation11_spill] sm:$0xff] }
 0x2ed   : > { %v2125_v10 = vshrl.u32 %v2107_v16, %v2123_v50  ;;  %v2211_v22 = vadd.s32 %v6337_v18, %v6344_v47  ;;  %v1602_v31 = vsel %vm4322_vm3, 0, %v4321_v37  ;;  %v1798_v40 = vsel %vm1796_vm0, %v1797_v19, %v6480_v56  ;;  %v8307_v16 = vld [vmem:[#allocation6_spill] sm:$0xff] }
 0x2ee   : > { %vm1429_vm5 = vcmp.lt.s32.totalorder %v8300_v44, 0  ;;  %v2233_v9 = vshll.u32 %v2232_v21, 23  ;;  %v1603_v7 = vsub.s32 32, %v1602_v31  ;;  %v1607_v8 = vsub.s32 4294967266, %v1602_v31 }
 0x2ef   : > { %v1799_v27 = vadd.s32 %v1798_v40, %v1794_v57  ;;  %v1715_v59 = vand.u32 2147483647, %v1714_v20  ;;  %v2029_v0 = vcvt.s32.f32 %v2022_v58  ;;  %v2124_v4 = vshll.u32 %v6335_v54, %v6437_v33  ;;  %v8301_v33 = vld [vmem:[#allocation15_spill] sm:$0xff]  ;;  %v8306_v58 = vld [vmem:[#allocation8_spill] sm:$0xff] }
 0x2f0   : > { %v2130_v23 = vor.u32 4788187, %v2129_v43  ;;  %v2229_v49 = vshrl.u32 %v2211_v22, %v2227_v39  ;;  %v1587_v46 = vadd.s32 %v6379_v48, %v6387_v55  ;;  %v1608_v18 = vadd.s32 127, %v1607_v8  ;;  %v8330_v22 = vld [vmem:[#allocation13_spill] sm:$0xff] }
 0x2f1   : > { %v1800_v47 = vadd.s32 536870912, %v1799_v27  ;;  %v1927_v17 = vxor.u32 2147483648, %v1926_v13  ;;  %v2030_v63 = vmul.f32 %v2029_v0, %v2027_v53  ;;  %v2126_v15 = vor.u32 %v2125_v10, %v2124_v4 }
 0x2f2   : > { %v2228_v2 = vshll.u32 %v6414_v3, %v6463_v51  ;;  %v2234_v26 = vor.u32 4788187, %v2233_v9  ;;  %v1605_v62 = vshrl.u32 %v1587_v46, %v1603_v7  ;;  %v1609_v6 = vshll.u32 %v1608_v18, 23 }
 0x2f3   : > { %v6505_v11 = vshrl.u32 %v1800_v47, 30  ;;  %v1511_v54 = vxor.u32 2147483648, %v6393_v30  ;;  %vm1637_vm8 = vcmp.lt.s32.totalorder %v8301_v33, 0  ;;  %v1718_v25 = vmul.f32 %v1717_v34, %v1715_v59 }
 0x2f4   : > { %v2131_v56 = vand.u32 2147483647, %v2130_v23  ;;  %v2230_v48 = vor.u32 %v2229_v49, %v2228_v2  ;;  %v1604_v55 = vshll.u32 %v6451_v12, %v1602_v31  ;;  %v1610_v20 = vor.u32 4788187, %v1609_v6  ;;  %v8314_v31 = vld [vmem:[#allocation12_spill] sm:$0xff]  ;;  %v8318_v23 = vld [vmem:[#allocation9_spill] sm:$0xff] }
 0x2f5   : > { %v1802_v41 = vshll.u32 %v6505_v11, 30  ;;  %v8303_v29 = vand.u32 2147483647, %v8302_v28  ;;  %vm1845_vm6 = vcmp.lt.s32.totalorder %v8302_v28, 0  ;;  %v2031_v51 = vxor.u32 2147483648, %v2030_v63  ;;  %v8322_v2 = vld [vmem:[#allocation14_spill] sm:$0xff] }
 0x2f6   : > { %v2133_v1 = vcvt.s32.f32 %v2126_v15  ;;  %v1928_v34 = vsel %vm1845_vm6, %v1927_v17, %v1926_v13  ;;  %v2235_v50 = vand.u32 2147483647, %v2234_v26  ;;  %v1606_v42 = vor.u32 %v1605_v62, %v1604_v55 }
 0x2f7   : > { %vm6513_vm1 = vcmp.le.f32.partialorder %v8303_v29, 0.7853982  ;;  %v6520_v21 = vsub.s32 %v1799_v27, %v1802_v41  ;;  %v1512_v12 = vsel %vm1429_vm5, %v1511_v54, %v6393_v30  ;;  %v1719_v37 = vxor.u32 2147483648, %v1718_v25 }
 0x2f8   : > { %vm1949_vm9 = vcmp.lt.s32.totalorder %v8306_v58, 0  ;;  %v2134_v32 = vmul.f32 %v2133_v1, %v2131_v56  ;;  %vm1533_vm10 = vcmp.lt.s32.totalorder %v8307_v16, 0  ;;  %v8308_v43 = vand.u32 2147483647, %v8306_v58 }
 0x2f9   : > { %v2237_v13 = vcvt.s32.f32 %v2230_v48  ;;  %v1611_v53 = vand.u32 2147483647, %v1610_v20  ;;  %v1805_v39 = vsub.s32 0, %v6520_v21  ;;  %v1931_v30 = vsel %vm6513_vm1, %v8302_v28, %v1928_v34 }
 0x2fa   : > { %vm6529_vm11 = vcmp.le.f32.partialorder %v8308_v43, 0.7853982  ;;  %v2032_v57 = vsel %vm1949_vm9, %v2031_v51, %v2030_v63  ;;  %v8311_v10 = vand.u32 2147483647, %v8300_v44  ;;  %v1513_v40 = vsub.s32 4, %v8314_v31 }
 0x2fb   : > { %v2238_v9 = vmul.f32 %v2237_v13, %v2235_v50  ;;  %v8315_v7 = vand.u32 2147483647, %v8307_v16  ;;  %v1613_v27 = vcvt.s32.f32 %v1606_v42  ;;  %v4328_v59 = vmin.u32 %v1805_v39, %v6520_v21  ;;  %v8329_v50 = vld [vmem:[#allocation5_spill] sm:$0xff] }
 0x2fc   : > { %vm6541_vm14 = vcmp.le.f32.partialorder %v8311_v10, 0.7853982  ;;  %v1720_v4 = vsel %vm1637_vm8, %v1719_v37, %v1718_v25  ;;  %v8319_v49 = vand.u32 2147483647, %v8318_v23  ;;  %vm2053_vm15 = vcmp.lt.s32.totalorder %v8318_v23, 0 }
 0x2fd   : > { %vm6548_vm12 = vcmp.le.f32.partialorder %v8315_v7, 0.7853982  ;;  %v1515_v0 = vsel %vm6541_vm14, %v8300_v44, %v1512_v12  ;;  %v2135_v18 = vxor.u32 2147483648, %v2134_v32  ;;  %4662 = vcosq.f32 %v1931_v30 }
 0x2fe   : > { %vm6560_vm13 = vcmp.le.f32.partialorder %v8319_v49, 0.7853982  ;;  %v1614_v47 = vmul.f32 %v1613_v27, %v1611_v53  ;;  %v1617_v17 = vsub.s32 4, %v6434_v52  ;;  %v1807_v63 = vclz %v4328_v59 }
 0x2ff   : > { %v2035_v15 = vsel %vm6529_vm11, %v8306_v58, %v2032_v57  ;;  %vm2157_vm2 = vcmp.lt.s32.totalorder %v8322_v2, 0  ;;  %v1514_v26 = vsel %vm1429_vm5, %v1513_v40, %v8314_v31  ;;  %4664 = vcosq.f32 %v1515_v0 }
 0x300   : > { %v2239_v62 = vxor.u32 2147483648, %v2238_v9  ;;  %v4329_v6 = vadd.s32 4294967294, %v1807_v63  ;;  %4666 = vsinq.f32 %v1515_v0  ;;  %v8323_v54 = vand.u32 2147483647, %v8301_v33 }
 0x301   : > { %4668 = vsinq.f32 %v1931_v30  ;;  %v2136_v56 = vsel %vm2053_vm15, %v2135_v18, %v2134_v32  ;;  %v8326_v48 = vand.u32 2147483647, %v8322_v2  ;;  %v1615_v41 = vxor.u32 2147483648, %v1614_v47 }
 0x302   : > { %vm6575_vm4 = vcmp.le.f32.partialorder %v8323_v54, 0.7853982  ;;  %v1618_v29 = vsel %vm1533_vm10, %v1617_v17, %v6434_v52  ;;  %vm4330_vm3 = vcmp.lt.s32.totalorder %v4329_v6, 0  ;;  %v1516_v51 = vsel %vm6541_vm14, 0, %v1514_v26 }
 0x303   : > { %vm6583_vm0 = vcmp.le.f32.partialorder %v8326_v48, 0.7853982  ;;  %v1723_v20 = vsel %vm6575_vm4, %v8301_v33, %v1720_v4  ;;  %4670 = vcosq.f32 %v2035_v15  ;;  %v1795_v1 = vadd.s32 %v6479_v38, %v6477_v45 }
 0x304   : > { %v1810_v34 = vsel %vm4330_vm3, 0, %v4329_v6  ;;  %v1721_v42 = vsub.s32 4, %v8329_v50  ;;  %v2240_v12 = vsel %vm2157_vm2, %v2239_v62, %v2238_v9  ;;  %4672 = vcosq.f32 %v1723_v20 }
 0x305   : > { %v1811_v37 = vsub.s32 32, %v1810_v34  ;;  %v1815_v32 = vsub.s32 4294967266, %v1810_v34  ;;  %v2139_v52 = vsel %vm6560_vm13, %v8318_v23, %v2136_v56  ;;  %v1620_v43 = vsel %vm6548_vm12, 0, %v1618_v29  ;;  %v8333_v29 = vld [vmem:[#allocation17_spill] sm:$0xff] }
 0x306   : > { %v1520_v13 = vadd.s32 3, %v1516_v51  ;;  %4674 = vsinq.f32 %v1723_v20  ;;  %v1616_v45 = vsel %vm1533_vm10, %v1615_v41, %v1614_v47  ;;  %v1812_v38 = vshll.u32 %v6520_v21, %v1810_v34 }
 0x307   : > { %v1813_v53 = vshrl.u32 %v1795_v1, %v1811_v37  ;;  %v1816_v39 = vadd.s32 127, %v1815_v32  ;;  %v2243_v30 = vsel %vm6583_vm0, %v8322_v2, %v2240_v12  ;;  %v1825_v57 = vsub.s32 4, %v6505_v11  ;;  %v6616_v40 = vpop.eup %4662 }
 0x308   : > { %v1722_v10 = vsel %vm1637_vm8, %v1721_v42, %v8329_v50  ;;  %v2033_v31 = vsub.s32 4, %v8330_v22  ;;  %4676 = vsinq.f32 %v2035_v15  ;;  %vm1741_vm5 = vcmp.lt.s32.totalorder %v6033_v24, 0 }
 0x309   : > { %v1814_v21 = vor.u32 %v1813_v53, %v1812_v38  ;;  %v1817_v9 = vshll.u32 %v1816_v39, 23  ;;  %v4665_v7 = vpop.eup %4664  ;;  %4678 = vcosq.f32 %v2139_v52  ;;  %v1619_v27 = vsel %vm6548_vm12, %v8307_v16, %v1616_v45 }
 0x30a   : > { %vm6624_vm10 = vcmp.le.f32.partialorder %v1739_v35, 0.7853982  ;;  %v2241_v0 = vsub.s32 4, %v6396_v5  ;;  %v4667_v4 = vpop.eup %4666  ;;  %4680 = vcosq.f32 %v2243_v30  ;;  %v1624_v49 = vadd.s32 3, %v1620_v43 }
 0x30b   : > { %v1818_v18 = vor.u32 4788187, %v1817_v9  ;;  %v1724_v47 = vsel %vm6575_vm4, 0, %v1722_v10  ;;  %v6631_v17 = vpop.eup %4668  ;;  %4682 = vsinq.f32 %v2243_v30  ;;  %v1826_v8 = vsel %vm1741_vm5, %v1825_v57, %v6505_v11 }
 0x30c   : > { %v1521_v35 = vand.u32 3, %v1520_v13  ;;  %v2034_v63 = vsel %vm1949_vm9, %v2033_v31, %v8330_v22  ;;  %4684 = vcosq.f32 %v1619_v27  ;;  %v1821_v26 = vcvt.s32.f32 %v1814_v21 }
 0x30d   : > { %v1819_v15 = vand.u32 2147483647, %v1818_v18  ;;  %v1527_v62 = vxor.u32 2147483648, %v4665_v7  ;;  %v6639_v6 = vpop.eup %4670  ;;  %4686 = vsinq.f32 %v1619_v27  ;;  %v1524_v54 = vxor.u32 2147483648, %v4667_v4 }
 0x30e   : > { %v1728_v25 = vadd.s32 3, %v1724_v47  ;;  %v2242_v56 = vsel %vm2157_vm2, %v2241_v0, %v6396_v5  ;;  %v4673_v48 = vpop.eup %4672  ;;  %v1828_v20 = vsel %vm6624_vm10, 0, %v1826_v8  ;;  %v2036_v41 = vsel %vm6529_vm11, 0, %v2034_v63  ;;  %v8334_v5 = vld [vmem:[#allocation10_spill] sm:$0xff] }
 0x30f   : > { %v1822_v11 = vmul.f32 %v1821_v26, %v1819_v15  ;;  %v2137_v51 = vsub.s32 4, %v8333_v29  ;;  %4688 = vsinq.f32 %v2139_v52  ;;  %v6649_v34 = vand.u32 3, %v1624_v49 }
 0x310   : > { %v4675_v1 = vpop.eup %4674  ;;  %vm1526_vm8 = vcmp.eq.s32.totalorder %v1521_v35, 2  ;;  %v2244_v42 = vsel %vm6583_vm0, 0, %v2242_v56  ;;  %v1929_v12 = vsub.s32 4, %v8334_v5  ;;  %v1832_v37 = vadd.s32 3, %v1828_v20 }
 0x311   : > { %v1823_v50 = vxor.u32 2147483648, %v1822_v11  ;;  %vm1523_vm9 = vcmp.eq.s32.totalorder %v1521_v35, 0  ;;  %v1528_v32 = vsel %vm1526_vm8, %v1527_v62, %v4667_v4  ;;  %v2040_v43 = vadd.s32 3, %v2036_v41 }
 0x312   : > { %v4677_v13 = vpop.eup %4676  ;;  %v1525_v45 = vsel %vm1523_vm9, %v4665_v7, %v1524_v54  ;;  %v1729_v38 = vand.u32 3, %v1728_v25  ;;  %v2138_v52 = vsel %vm2053_vm15, %v2137_v51, %v8333_v29  ;;  %v1732_v39 = vxor.u32 2147483648, %v4675_v1 }
 0x313   : > { %v1824_v19 = vsel %vm1741_vm5, %v1823_v50, %v1822_v11  ;;  %v6659_v53 = vpop.eup %4678  ;;  %v1735_v30 = vxor.u32 2147483648, %v4673_v48  ;;  %v2248_v57 = vadd.s32 3, %v2244_v42  ;;  %vm1522_vm11 = vcmp.lt.s32.totalorder %v1521_v35, 2 }
 0x314   : > { %v1827_v55 = vsel %vm6624_vm10, %v6033_v24, %v1824_v19  ;;  %v4681_v10 = vpop.eup %4680  ;;  %vm1727_vm14 = vweird.f32 %v8301_v33  ;;  %v1930_v22 = vsel %vm1845_vm6, %v1929_v12, %v8334_v5  ;;  %vm1627_vm12 = vcmp.eq.s32.totalorder %v6649_v34, 0 }
 0x315   : > { %4690 = vcosq.f32 %v1827_v55  ;;  %v4683_v31 = vpop.eup %4682  ;;  %vm1630_vm15 = vcmp.eq.s32.totalorder %v6649_v34, 2  ;;  %v6670_v21 = vand.u32 3, %v1832_v37  ;;  %v2041_v9 = vand.u32 3, %v2040_v43 }
 0x316   : > { %4692 = vsinq.f32 %v1827_v55  ;;  %v2140_v7 = vsel %vm6560_vm13, 0, %v2138_v52  ;;  %v4685_v27 = vpop.eup %4684  ;;  %v6674_v59 = vsel %vm1522_vm11, %v1525_v45, %v1528_v32  ;;  %vm1730_vm2 = vcmp.lt.s32.totalorder %v1729_v38, 2 }
 0x317   : > { %vm1731_vm4 = vcmp.eq.s32.totalorder %v1729_v38, 0  ;;  %vm1734_vm0 = vcmp.eq.s32.totalorder %v1729_v38, 2  ;;  %v4687_v0 = vpop.eup %4686  ;;  %v2249_v18 = vand.u32 3, %v2248_v57  ;;  %v1932_v47 = vsel %vm6513_vm1, 0, %v1930_v22 }
 0x318   : > { %v1733_v4 = vsel %vm1731_vm4, %v4673_v48, %v1732_v39  ;;  %v1736_v49 = vsel %vm1734_vm0, %v1735_v30, %v4675_v1  ;;  %vm1626_vm6 = vcmp.lt.s32.totalorder %v6649_v34, 2  ;;  %v2044_v8 = vxor.u32 2147483648, %v4677_v13 }
 0x319   : > { %v2252_v35 = vxor.u32 2147483648, %v4683_v31  ;;  %v2255_v63 = vxor.u32 2147483648, %v4681_v10  ;;  %v2144_v46 = vadd.s32 3, %v2140_v7  ;;  %v4689_v15 = vpop.eup %4688  ;;  %vm2042_vm5 = vcmp.lt.s32.totalorder %v2041_v9, 2 }
 0x31a   : > { %v2047_v26 = vxor.u32 2147483648, %v6639_v6  ;;  %vm2247_vm10 = vweird.f32 %v8322_v2  ;;  %v1628_v62 = vxor.u32 2147483648, %v4687_v0  ;;  %v1631_v54 = vxor.u32 2147483648, %v4685_v27 }
 0x31b   : > { %vm1834_vm1 = vcmp.lt.s32.totalorder %v6670_v21, 2  ;;  %v1737_v3 = vsel %vm1730_vm2, %v1733_v4, %v1736_v49  ;;  %v1936_v25 = vadd.s32 3, %v1932_v47  ;;  %vm1623_vm8 = vweird.f32 %v8307_v16  ;;  %v2279_v49 = vpop.permute.xlu1 %2278 }
 0x31c   : > { %vm1831_vm9 = vweird.f32 %v6033_v24  ;;  %vm2039_vm11 = vweird.f32 %v8306_v58  ;;  %vm2043_vm4 = vcmp.eq.s32.totalorder %v2041_v9, 0  ;;  %vm2046_vm0 = vcmp.eq.s32.totalorder %v2041_v9, 2 }
 0x31d   : > { %vm2251_vm7 = vcmp.eq.s32.totalorder %v2249_v18, 0  ;;  %vm2254_vm13 = vcmp.eq.s32.totalorder %v2249_v18, 2  ;;  %vm1519_vm3 = vweird.f32 %v8300_v44  ;;  %v2045_v56 = vsel %vm2043_vm4, %v6639_v6, %v2044_v8 }
 0x31e   : > { %v2253_v48 = vsel %vm2251_vm7, %v4681_v10, %v2252_v35  ;;  %v2256_v11 = vsel %vm2254_vm13, %v2255_v63, %v4683_v31  ;;  %v2145_v20 = vand.u32 3, %v2144_v46  ;;  %v1738_v41 = vsel %vm1727_vm14, nan, %v1737_v3 }
 0x31f   : > { %v2048_v29 = vsel %vm2046_vm0, %v2047_v26, %v4677_v13  ;;  %v2148_v51 = vxor.u32 2147483648, %v4689_v15  ;;  %v2151_v1 = vxor.u32 2147483648, %v6659_v53  ;;  %v4691_v50 = vpop.eup %4690  ;;  %v1629_v42 = vsel %vm1627_vm12, %v4685_v27, %v1628_v62  ;;  %v4626_v27 = vld [vmem:[%s8129_s4] sm:$0xff]  }
 0x320   : > { %v1632_v5 = vsel %vm1630_vm15, %v1631_v54, %v4687_v0  ;;  %vm2250_vm2 = vcmp.lt.s32.totalorder %v2249_v18, 2  ;;  %v1937_v12 = vand.u32 3, %v1936_v25  ;;  %v4693_v6 = vpop.eup %4692  ;;  %v1839_v37 = vxor.u32 2147483648, %v4691_v50 }
 0x321   : > { %v2257_v32 = vsel %vm2250_vm2, %v2253_v48, %v2256_v11  ;;  %v1940_v43 = vxor.u32 2147483648, %v6631_v17  ;;  %v1943_v33 = vxor.u32 2147483648, %v6616_v40  ;;  %v1836_v13 = vxor.u32 2147483648, %v4693_v6 }
 0x322   : > { %v2049_v19 = vsel %vm2042_vm5, %v2045_v56, %v2048_v29  ;;  %vm2147_vm7 = vcmp.eq.s32.totalorder %v2145_v20, 0  ;;  %vm2150_vm14 = vcmp.eq.s32.totalorder %v2145_v20, 2  ;;  %v1633_v45 = vsel %vm1626_vm6, %v1629_v42, %v1632_v5 }
 0x323   : > { %vm8335_vm12 = vcmp.eq.s32.totalorder %v6670_v21, 2  ;;  %v2149_v52 = vsel %vm2147_vm7, %v6659_v53, %v2148_v51  ;;  %v2152_v55 = vsel %vm2150_vm14, %v2151_v1, %v4689_v15  ;;  %vm8336_vm15 = vcmp.eq.s32.totalorder %v6670_v21, 0 }
 0x324   : > { %v1840_v38 = vsel %vm8335_vm12, %v1839_v37, %v4693_v6  ;;  %v1837_v39 = vsel %vm8336_vm15, %v4691_v50, %v1836_v13  ;;  %v2258_v30 = vsel %vm2247_vm10, nan, %v2257_v32  ;;  %vm1939_vm13 = vcmp.eq.s32.totalorder %v1937_v12, 0 }
 0x325   : > { %vm1942_vm4 = vcmp.eq.s32.totalorder %v1937_v12, 2  ;;  %v1841_v57 = vsel %vm1834_vm1, %v1837_v39, %v1840_v38  ;;  %v1941_v34 = vsel %vm1939_vm13, %v6616_v40, %v1940_v43  ;;  %vm2146_vm6 = vcmp.lt.s32.totalorder %v2145_v20, 2 }
 0x326   : > { %v1944_v10 = vsel %vm1942_vm4, %v1943_v33, %v6631_v17  ;;  %v1634_v53 = vsel %vm1623_vm8, nan, %v1633_v45  ;;  %v1842_v22 = vsel %vm1831_vm9, nan, %v1841_v57  ;;  %v2050_v2 = vsel %vm2039_vm11, nan, %v2049_v19 }
 0x327   : > { %v2153_v31 = vsel %vm2146_vm6, %v2149_v52, %v2152_v55  ;;  %v2264_v9 = vpack.c.bf16 %v1842_v22, %v1634_v53  ;;  %v1530_v21 = vsel %vm1519_vm3, nan, %v6674_v59  ;;  %v2266_v7 = vpack.c.bf16 %v2258_v30, %v2050_v2 }
 0x328   : > { %vm1938_vm5 = vcmp.lt.s32.totalorder %v1937_v12, 2  ;;  %v2263_v40 = vpack.c.bf16 %v1738_v41, %v1530_v21  ;;  %vm2143_vm10 = vweird.f32 %v8318_v23  ;;  %vm1935_vm1 = vweird.f32 %v8302_v28  ;;  %v4627_v23 = vld [vmem:[%s8129_s4 + $0x8] sm:$0xff]   ;;  %v2274_v28 = vpop.permute.xlu0 %2273 }
 0x329   : > { %v1945_v17 = vsel %vm1938_vm5, %v1941_v34, %v1944_v10  ;;  %2307 = vmatprep.subr.bf16.mxu1 %v2264_v9  ;;  %v2154_v16 = vsel %vm2143_vm10, nan, %v2153_v31  ;;  %vm8337_vm3 = vcmask 261120   ;;  %v8338_v44 = vmov 0  }
 0x32a   : > { %2308 = vmatpush1.bf16.msra.mxu1 %v2263_v40  ;;  %v1946_v24 = vsel %vm1935_vm1, nan, %v1945_v17  ;;  %vm8339_vm8 = vmmov %vm8337_vm3  ;;  %v8340_v31 = vmov 920167782  }
 0x32b   : > { %2309 = vmatprep.subr.bf16.mxu1 %v2266_v7  ;;  %v2265_v58 = vpack.c.bf16 %v2154_v16, %v1946_v24  ;;  %v8341_v24 = vmov 1326507024  }
 0x32e   : > { %2310 = vmatpush1.bf16.msra.mxu1 %v2265_v58 }
 0x331   : > { %4349 = vmatmul.mubr.msk.bf16.vlgmr.msra.gmra.mrb[0].mxu1 %vm8337_vm3, %v4626_v27 }
 0x332   : > { %2349 = vmatprep.mubr.bf16.mxu1 %v8338_v44 }
 0x339   : > { %4350 = vmatmul.mubr.msk.bf16.gmra.mrb[4].mxu1 %vm8339_vm8, %v4627_v23 }
 0x33a   : > { %4171 = vmatprep.mubr.bf16.mxu1 %v8338_v44 }
 0x404   : > { %v2341_v59 = vpop.f32.mrb[0].mxu1 }
 0x405   : > { %v6734_v0 = vadd.f32 %v2341_v59, %v2274_v28  ;;  %v2343_v4 = vpop.f32.mrb[1].mxu1 }
 0x406   : > { %v6736_v18 = vadd.f32 %v2343_v4, %v2274_v28  ;;  %v2345_v47 = vpop.f32.mrb[2].mxu1 }
 0x407   : > { %v2360_v8 = vand.u32 2147483647, %v6734_v0  ;;  %v2363_v35 = vand.u32 2139095040, %v6734_v0  ;;  %v6740_v63 = vadd.f32 %v2345_v47, %v2279_v49  ;;  %v2347_v46 = vpop.f32.mrb[3].mxu1 }
 0x408   : > { %v2464_v15 = vand.u32 2147483647, %v6736_v18  ;;  %v2467_v26 = vand.u32 2139095040, %v6736_v18  ;;  %v6751_v1 = vadd.f32 %v2347_v46, %v2279_v49 }
 0x409   : > { %v2364_v62 = vshrl.u32 %v2363_v35, 23  ;;  %v2367_v54 = vand.u32 8388607, %v2360_v8  ;;  %v2571_v56 = vand.u32 2139095040, %v6740_v63  ;;  %v2568_v5 = vand.u32 2147483647, %v6740_v63 }
 0x40a   : > { %v2468_v3 = vshrl.u32 %v2467_v26, 23  ;;  %v2471_v25 = vand.u32 8388607, %v2464_v15  ;;  %v2675_v39 = vand.u32 2139095040, %v6751_v1 }
 0x40b   : > { %v4351_v48 = vadd.s32 4294967169, %v2364_v62  ;;  %v2572_v20 = vshrl.u32 %v2571_v56, 23  ;;  %v2368_v29 = vor.u32 8388608, %v2367_v54  ;;  %v6766_v52 = vand.u32 8388607, %v2568_v5 }
 0x40c   : > { %v4355_v11 = vadd.s32 4294967169, %v2468_v3  ;;  %v6749_v41 = vpop.f32.mrb[4].mxu1  ;;  %v2472_v50 = vor.u32 8388608, %v2471_v25 }
 0x40d   : > { %v2370_v51 = vadd.s32 1, %v4351_v48  ;;  %v4359_v12 = vadd.s32 4294967169, %v2572_v20  ;;  %v6754_v6 = vpop.f32.mrb[5].mxu1  ;;  %v6760_v19 = vshll.u32 %v2368_v29, 8 }
 0x40e   : > { %v2474_v42 = vadd.s32 1, %v4355_v11  ;;  %v6756_v37 = vpop.f32.mrb[6].mxu1  ;;  %v6762_v38 = vshll.u32 %v2472_v50, 8 }
 0x40f   : > { %vm2371_vm9 = vcmp.gt.s32.totalorder %v2370_v51, 0  ;;  %v6758_v43 = vpop.f32.mrb[7].mxu1  ;;  %v6768_v55 = vadd.s32 1, %v4359_v12 }
 0x410   : > { %v2372_v32 = vsel %vm2371_vm9, %v2370_v51, 0  ;;  %vm2475_vm11 = vcmp.gt.s32.totalorder %v2474_v42, 0 }
 0x411   : > { %v2373_v33 = vshrl.u32 %v2372_v32, 5  ;;  %v2374_v13 = vand.u32 31, %v2372_v32  ;;  %v2476_v45 = vsel %vm2475_vm11, %v2474_v42, 0  ;;  %vm2579_vm12 = vcmp.gt.s32.totalorder %v6768_v55, 0 }
 0x412   : > { %v6772_v34 = vshrl.u32 %v2476_v45, 5  ;;  %v2478_v10 = vand.u32 31, %v2476_v45 }
 0x413   : > { %v2375_v30 = vsub.s32 32, %v2374_v13  ;;  %v2377_v57 = vshll.u32 %v8238_v36, %v2374_v13  ;;  %v2380_v53 = vshll.u32 %v8244_v14, %v2374_v13  ;;  %v2383_v22 = vshll.u32 %v8242_v61, %v2374_v13 }
 0x414   : > { %v2386_v2 = vshll.u32 %v8239_v60, %v2374_v13  ;;  %v2389_v9 = vshll.u32 %v8340_v31, %v2374_v13  ;;  %vm2392_vm0 = vcmp.lt.s32.totalorder %v2373_v33, 1  ;;  %vm2393_vm2 = vcmp.lt.s32.totalorder %v2373_v33, 2 }
 0x415   : > { %v2378_v21 = vshrl.u32 %v8244_v14, %v2375_v30  ;;  %v2381_v7 = vshrl.u32 %v8242_v61, %v2375_v30  ;;  %v2384_v40 = vshrl.u32 %v8239_v60, %v2375_v30  ;;  %v2376_v17 = vshrl.u32 %v8238_v36, %v2375_v30 }
 0x416   : > { %v2387_v16 = vshrl.u32 %v8340_v31, %v2375_v30  ;;  %v2390_v58 = vshrl.u32 %v8341_v24, %v2375_v30  ;;  %v2479_v59 = vsub.s32 32, %v2478_v10  ;;  %vm2394_vm7 = vcmp.lt.s32.totalorder %v2373_v33, 3 }
 0x417   : > { %v2379_v27 = vor.u32 %v2378_v21, %v2377_v57  ;;  %v2382_v23 = vor.u32 %v2381_v7, %v2380_v53  ;;  %v2385_v28 = vor.u32 %v2384_v40, %v2383_v22  ;;  %vm2395_vm14 = vcmp.lt.s32.totalorder %v2373_v33, 4 }
 0x418   : > { %v2388_v4 = vor.u32 %v2387_v16, %v2386_v2  ;;  %v2391_v49 = vor.u32 %v2390_v58, %v2389_v9  ;;  %v2481_v25 = vshll.u32 %v8238_v36, %v2478_v10  ;;  %v2482_v11 = vshrl.u32 %v8244_v14, %v2479_v59 }
 0x419   : > { %v2396_v47 = vsel %vm2392_vm0, %v2376_v17, %v2379_v27  ;;  %v2397_v35 = vsel %vm2395_vm14, %v2385_v28, 2102212464  ;;  %v2400_v46 = vsel %vm2392_vm0, %v2379_v27, %v2382_v23  ;;  %v2404_v26 = vsel %vm2392_vm0, %v2382_v23, %v2385_v28 }
 0x41a   : > { %v2398_v62 = vsel %vm2394_vm7, %v2382_v23, %v2397_v35  ;;  %v2401_v54 = vsel %vm2395_vm14, %v2388_v4, 920167782  ;;  %v2405_v3 = vsel %vm2395_vm14, %v2391_v49, 1326507024  ;;  %v2484_v20 = vshll.u32 %v8244_v14, %v2478_v10 }
 0x41b   : > { %v2402_v56 = vsel %vm2394_vm7, %v2385_v28, %v2401_v54  ;;  %v2406_v48 = vsel %vm2394_vm7, %v2388_v4, %v2405_v3  ;;  %v2399_v29 = vsel %vm2393_vm2, %v2396_v47, %v2398_v62  ;;  %v2485_v42 = vshrl.u32 %v8242_v61, %v2479_v59 }
 0x41c   : > { %v2403_v51 = vsel %vm2393_vm2, %v2400_v46, %v2402_v56  ;;  %v2407_v50 = vsel %vm2393_vm2, %v2404_v26, %v2406_v48  ;;  %v2483_v30 = vor.u32 %v2482_v11, %v2481_v25  ;;  %v2487_v53 = vshll.u32 %v8242_v61, %v2478_v10 }
 0x41d   : > { %v6796_v12 = vmul.u32.u64.low %v6760_v19, %v2407_v50  ;;  %v6797_v32 = vmul.u32.u64.high %v6760_v19, %v2407_v50, %v6796_v12  ;;  %v6800_v13 = vmul.u32.u64.low %v6760_v19, %v2403_v51  ;;  %v6801_v45 = vmul.u32.u64.high %v6760_v19, %v2403_v51, %v6800_v13 }
 0x41e   : > { %v2486_v57 = vor.u32 %v2485_v42, %v2484_v20  ;;  %v2488_v22 = vshrl.u32 %v8239_v60, %v2479_v59  ;;  %v2480_v33 = vshrl.u32 %v8238_v36, %v2479_v59  ;;  %v2490_v2 = vshll.u32 %v8239_v60, %v2478_v10 }
 0x41f   : > { %v2491_v9 = vshrl.u32 %v8340_v31, %v2479_v59  ;;  %v2494_v21 = vshrl.u32 %v8341_v24, %v2479_v59  ;;  %v2415_v7 = vmul.u32 %v6760_v19, %v2399_v29  ;;  %v2493_v17 = vshll.u32 %v8340_v31, %v2478_v10 }
 0x420   : > { %v2489_v40 = vor.u32 %v2488_v22, %v2487_v53  ;;  %vm2496_vm15 = vcmp.lt.s32.totalorder %v6772_v34, 1  ;;  %vm2417_vm13 = vc.u32 %v6797_v32, %v6800_v13  ;;  %v2418_v16 = vadd.s32 1, %v6801_v45 }
 0x421   : > { %v2492_v58 = vor.u32 %v2491_v9, %v2490_v2  ;;  %vm2497_vm4 = vcmp.lt.s32.totalorder %v6772_v34, 2  ;;  %v2495_v27 = vor.u32 %v2494_v21, %v2493_v17  ;;  %vm2498_vm6 = vcmp.lt.s32.totalorder %v6772_v34, 3 }
 0x422   : > { %vm2499_vm5 = vcmp.lt.s32.totalorder %v6772_v34, 4  ;;  %v2504_v23 = vsel %vm2496_vm15, %v2483_v30, %v2486_v57  ;;  %v2419_v19 = vsel %vm2417_vm13, %v2418_v16, %v6801_v45  ;;  %v2508_v59 = vsel %vm2496_vm15, %v2486_v57, %v2489_v40 }
 0x423   : > { %v2501_v28 = vsel %vm2499_vm5, %v2489_v40, 2102212464  ;;  %v2505_v10 = vsel %vm2499_vm5, %v2492_v58, 920167782  ;;  %v2420_v4 = vadd.s32 %v2419_v19, %v2415_v7  ;;  %v2500_v49 = vsel %vm2496_vm15, %v2480_v33, %v2483_v30 }
 0x424   : > { %v2506_v47 = vsel %vm2498_vm6, %v2489_v40, %v2505_v10  ;;  %v2509_v35 = vsel %vm2499_vm5, %v2495_v27, 1326507024  ;;  %v2502_v46 = vsel %vm2498_vm6, %v2486_v57, %v2501_v28  ;;  %v2580_v54 = vsel %vm2579_vm12, %v6768_v55, 0 }
 0x425   : > { %v2507_v26 = vsel %vm2497_vm4, %v2504_v23, %v2506_v47  ;;  %v2510_v62 = vsel %vm2498_vm6, %v2492_v58, %v2509_v35  ;;  %v2421_v3 = vadd.s32 536870912, %v2420_v4  ;;  %v2503_v51 = vsel %vm2497_vm4, %v2500_v49, %v2502_v46 }
 0x426   : > { %v2511_v25 = vsel %vm2497_vm4, %v2508_v59, %v2510_v62  ;;  %v6828_v56 = vmul.u32.u64.low %v6762_v38, %v2507_v26  ;;  %v6829_v48 = vmul.u32.u64.high %v6762_v38, %v2507_v26, %v6828_v56  ;;  %v2576_v55 = vor.u32 8388608, %v6766_v52 }
 0x427   : > { %v6833_v11 = vmul.u32.u64.low %v6762_v38, %v2511_v25  ;;  %v6834_v20 = vmul.u32.u64.high %v6762_v38, %v2511_v25, %v6833_v11  ;;  %v6836_v29 = vshrl.u32 %v2421_v3, 30  ;;  %v2582_v50 = vand.u32 31, %v2580_v54 }
 0x428   : > { %v2522_v12 = vadd.s32 1, %v6829_v48  ;;  %v2676_v30 = vshrl.u32 %v2675_v39, 23  ;;  %v2519_v57 = vmul.u32 %v6762_v38, %v2503_v51  ;;  %v2581_v53 = vshrl.u32 %v2580_v54, 5 }
 0x429   : > { %v2423_v42 = vshll.u32 %v6836_v29, 30  ;;  %v2583_v45 = vsub.s32 32, %v2582_v50  ;;  %vm2521_vm10 = vc.u32 %v6834_v20, %v6828_v56  ;;  %v2585_v52 = vshll.u32 %v8238_v36, %v2582_v50 }
 0x42a   : > { %v2523_v34 = vsel %vm2521_vm10, %v2522_v12, %v6829_v48  ;;  %v6852_v33 = vshll.u32 %v2576_v55, 8  ;;  %v2588_v21 = vshll.u32 %v8244_v14, %v2582_v50  ;;  %v2591_v7 = vshll.u32 %v8242_v61, %v2582_v50 }
 0x42b   : > { %v6848_v22 = vsub.s32 %v2420_v4, %v2423_v42  ;;  %v2524_v2 = vadd.s32 %v2523_v34, %v2519_v57  ;;  %v2586_v9 = vshrl.u32 %v8244_v14, %v2583_v45  ;;  %v2589_v39 = vshrl.u32 %v8242_v61, %v2583_v45 }
 0x42c   : > { %v2592_v40 = vshrl.u32 %v8239_v60, %v2583_v45  ;;  %v4363_v17 = vadd.s32 4294967169, %v2676_v30  ;;  %vm2600_vm1 = vcmp.lt.s32.totalorder %v2581_v53, 1  ;;  %v2594_v28 = vshll.u32 %v8239_v60, %v2582_v50 }
 0x42d   : > { %v2426_v38 = vsub.s32 0, %v6848_v22  ;;  %v2525_v16 = vadd.s32 536870912, %v2524_v2  ;;  %v2587_v58 = vor.u32 %v2586_v9, %v2585_v52  ;;  %v2590_v27 = vor.u32 %v2589_v39, %v2588_v21 }
 0x42e   : > { %v2593_v19 = vor.u32 %v2592_v40, %v2591_v7  ;;  %v2595_v10 = vshrl.u32 %v8340_v31, %v2583_v45  ;;  %v2597_v4 = vshll.u32 %v8340_v31, %v2582_v50  ;;  %v2598_v49 = vshrl.u32 %v8341_v24, %v2583_v45 }
 0x42f   : > { %v4352_v23 = vmin.u32 %v2426_v38, %v6848_v22  ;;  %v6863_v59 = vshrl.u32 %v2525_v16, 30  ;;  %vm2601_vm3 = vcmp.lt.s32.totalorder %v2581_v53, 2  ;;  %vm2602_vm8 = vcmp.lt.s32.totalorder %v2581_v53, 3 }
 0x430   : > { %v2596_v35 = vor.u32 %v2595_v10, %v2594_v28  ;;  %vm2603_vm9 = vcmp.lt.s32.totalorder %v2581_v53, 4  ;;  %v2599_v26 = vor.u32 %v2598_v49, %v2597_v4  ;;  %v2608_v62 = vsel %vm2600_vm1, %v2587_v58, %v2590_v27 }
 0x431   : > { %v2428_v47 = vclz %v4352_v23  ;;  %v2527_v46 = vshll.u32 %v6863_v59, 30  ;;  %v2682_v54 = vadd.s32 1, %v4363_v17  ;;  %v2584_v25 = vshrl.u32 %v8238_v36, %v2583_v45 }
 0x432   : > { %v2609_v48 = vsel %vm2603_vm9, %v2596_v35, 920167782  ;;  %v2612_v11 = vsel %vm2600_vm1, %v2590_v27, %v2593_v19  ;;  %v2605_v55 = vsel %vm2603_vm9, %v2593_v19, 2102212464  ;;  %v2613_v42 = vsel %vm2603_vm9, %v2599_v26, 1326507024 }
 0x433   : > { %v4353_v3 = vadd.s32 4294967294, %v2428_v47  ;;  %v6871_v51 = vsub.s32 %v2524_v2, %v2527_v46  ;;  %v2610_v50 = vsel %vm2602_vm8, %v2593_v19, %v2609_v48  ;;  %v2614_v30 = vsel %vm2602_vm8, %v2596_v35, %v2613_v42  ;;  %v6896_v47 = vpop.permute.xlu0 %2283 }
 0x434   : > { %v2611_v12 = vsel %vm2601_vm3, %v2608_v62, %v2610_v50  ;;  %vm2683_vm0 = vcmp.gt.s32.totalorder %v2682_v54, 0  ;;  %v2615_v45 = vsel %vm2601_vm3, %v2612_v11, %v2614_v30  ;;  %v2604_v2 = vsel %vm2600_vm1, %v2584_v25, %v2587_v58 }
 0x435   : > { %vm4354_vm11 = vcmp.lt.s32.totalorder %v4353_v3, 0  ;;  %v2530_v34 = vsub.s32 0, %v6871_v51  ;;  %v2684_v52 = vsel %vm2683_vm0, %v2682_v54, 0  ;;  %v2606_v21 = vsel %vm2602_vm8, %v2590_v27, %v2605_v55 }
 0x436   : > { %v2431_v57 = vsel %vm4354_vm11, 0, %v4353_v3  ;;  %v2672_v39 = vand.u32 2147483647, %v6751_v1  ;;  %v6883_v7 = vmul.u32.u64.low %v6852_v33, %v2615_v45  ;;  %v6884_v40 = vmul.u32.u64.high %v6852_v33, %v2615_v45, %v6883_v7 }
 0x437   : > { %v2436_v9 = vsub.s32 4294967266, %v2431_v57  ;;  %v4356_v38 = vmin.u32 %v2530_v34, %v6871_v51  ;;  %v2686_v17 = vand.u32 31, %v2684_v52  ;;  %v2607_v58 = vsel %vm2601_vm3, %v2604_v2, %v2606_v21 }
 0x438   : > { %v6887_v16 = vmul.u32.u64.low %v6852_v33, %v2611_v12  ;;  %v6888_v23 = vmul.u32.u64.high %v6852_v33, %v2611_v12, %v6887_v16  ;;  %v2679_v27 = vand.u32 8388607, %v2672_v39  ;;  %v2432_v10 = vsub.s32 32, %v2431_v57 }
 0x439   : > { %v2532_v19 = vclz %v4356_v38  ;;  %v2437_v28 = vadd.s32 127, %v2436_v9  ;;  %v2687_v49 = vsub.s32 32, %v2686_v17  ;;  %v2416_v46 = vadd.s32 %v6800_v13, %v6797_v32 }
 0x43a   : > { %vm2625_vm2 = vc.u32 %v6884_v40, %v6887_v16  ;;  %v2626_v35 = vadd.s32 1, %v6888_v23  ;;  %v2623_v53 = vmul.u32 %v6852_v33, %v2607_v58  ;;  %v6904_v26 = vadd.f32 %v6749_v41, %v6896_v47 }
 0x43b   : > { %v4357_v4 = vadd.s32 4294967294, %v2532_v19  ;;  %v2438_v62 = vshll.u32 %v2437_v28, 23  ;;  %v2680_v25 = vor.u32 8388608, %v2679_v27  ;;  %v2434_v48 = vshrl.u32 %v2416_v46, %v2432_v10 }
 0x43c   : > { %v2627_v3 = vsel %vm2625_vm2, %v2626_v35, %v6888_v23  ;;  %v2690_v55 = vshrl.u32 %v8244_v14, %v2687_v49  ;;  %v2693_v50 = vshrl.u32 %v8242_v61, %v2687_v49  ;;  %v2433_v32 = vshll.u32 %v6848_v22, %v2431_v57 }
 0x43d   : > { %vm4358_vm7 = vcmp.lt.s32.totalorder %v4357_v4, 0  ;;  %v2628_v11 = vadd.s32 %v2627_v3, %v2623_v53  ;;  %v2696_v33 = vshrl.u32 %v8239_v60, %v2687_v49  ;;  %v2699_v41 = vshrl.u32 %v8340_v31, %v2687_v49 }
 0x43e   : > { %v6906_v54 = vsel %vm4358_vm7, 0, %v4357_v4  ;;  %v2685_v12 = vshrl.u32 %v2684_v52, 5  ;;  %v2689_v30 = vshll.u32 %v8238_v36, %v2686_v17  ;;  %v2692_v34 = vshll.u32 %v8244_v14, %v2686_v17 }
 0x43f   : > { %v2540_v13 = vsub.s32 4294967266, %v6906_v54  ;;  %v2629_v42 = vadd.s32 536870912, %v2628_v11  ;;  %v2439_v45 = vor.u32 4788187, %v2438_v62  ;;  %v2695_v9 = vshll.u32 %v8242_v61, %v2686_v17 }
 0x440   : > { %v2698_v2 = vshll.u32 %v8239_v60, %v2686_v17  ;;  %v2702_v21 = vshrl.u32 %v8341_v24, %v2687_v49  ;;  %v2435_v22 = vor.u32 %v2434_v48, %v2433_v32  ;;  %v2691_v38 = vor.u32 %v2690_v55, %v2689_v30 }
 0x441   : > { %v6920_v57 = vshrl.u32 %v2629_v42, 30  ;;  %v2694_v7 = vor.u32 %v2693_v50, %v2692_v34  ;;  %v2541_v23 = vadd.s32 127, %v2540_v13  ;;  %v2697_v19 = vor.u32 %v2696_v33, %v2695_v9 }
 0x442   : > { %v2700_v28 = vor.u32 %v2699_v41, %v2698_v2  ;;  %v2701_v52 = vshll.u32 %v8340_v31, %v2686_v17  ;;  %v2520_v58 = vadd.s32 %v6828_v56, %v6834_v20  ;;  %v2688_v10 = vshrl.u32 %v8238_v36, %v2687_v49 }
 0x443   : > { %v2631_v27 = vshll.u32 %v6920_v57, 30  ;;  %v2720_v4 = vshll.u32 %v2680_v25, 8  ;;  %v2440_v35 = vand.u32 2147483647, %v2439_v45  ;;  %v2536_v46 = vsub.s32 32, %v6906_v54 }
 0x444   : > { %v2703_v53 = vor.u32 %v2702_v21, %v2701_v52  ;;  %vm2704_vm14 = vcmp.lt.s32.totalorder %v2685_v12, 1  ;;  %v2442_v62 = vcvt.s32.f32 %v2435_v22  ;;  %vm2707_vm12 = vcmp.lt.s32.totalorder %v2685_v12, 4 }
 0x445   : > { %v6928_v3 = vsub.s32 %v2628_v11, %v2631_v27  ;;  %v2712_v48 = vsel %vm2704_vm14, %v2691_v38, %v2694_v7  ;;  %v2542_v17 = vshll.u32 %v2541_v23, 23  ;;  %vm2706_vm15 = vcmp.lt.s32.totalorder %v2685_v12, 3 }
 0x446   : > { %v2709_v55 = vsel %vm2707_vm12, %v2697_v19, 2102212464  ;;  %v2713_v56 = vsel %vm2707_vm12, %v2700_v28, 920167782  ;;  %vm2705_vm13 = vcmp.lt.s32.totalorder %v2685_v12, 2  ;;  %v2716_v25 = vsel %vm2704_vm14, %v2694_v7, %v2697_v19 }
 0x447   : > { %v2634_v20 = vsub.s32 0, %v6928_v3  ;;  %v2714_v49 = vsel %vm2706_vm15, %v2697_v19, %v2713_v56  ;;  %v2443_v50 = vmul.f32 %v2442_v62, %v2440_v35  ;;  %v2538_v32 = vshrl.u32 %v2520_v58, %v2536_v46 }
 0x448   : > { %v2715_v13 = vsel %vm2705_vm13, %v2712_v48, %v2714_v49  ;;  %v2717_v33 = vsel %vm2707_vm12, %v2703_v53, 1326507024  ;;  %v2708_v41 = vsel %vm2704_vm14, %v2688_v10, %v2691_v38  ;;  %v2710_v42 = vsel %vm2706_vm15, %v2694_v7, %v2709_v55 }
 0x449   : > { %v4360_v11 = vmin.u32 %v2634_v20, %v6928_v3  ;;  %v2718_v30 = vsel %vm2706_vm15, %v2700_v28, %v2717_v33  ;;  %v2543_v34 = vor.u32 4788187, %v2542_v17  ;;  %v2537_v21 = vshll.u32 %v6871_v51, %v6906_v54 }
 0x44a   : > { %v2719_v45 = vsel %vm2705_vm13, %v2716_v25, %v2718_v30  ;;  %v6937_v9 = vmul.u32.u64.low %v2720_v4, %v2715_v13  ;;  %v6938_v2 = vmul.u32.u64.high %v2720_v4, %v2715_v13, %v6937_v9  ;;  %v2711_v52 = vsel %vm2705_vm13, %v2708_v41, %v2710_v42 }
 0x44b   : > { %v2636_v22 = vclz %v4360_v11  ;;  %v6943_v23 = vmul.u32.u64.low %v2720_v4, %v2719_v45  ;;  %v6944_v19 = vmul.u32.u64.high %v2720_v4, %v2719_v45, %v6943_v23  ;;  %v2779_v38 = vand.u32 2139095040, %v6904_v26 }
 0x44c   : > { %v2539_v7 = vor.u32 %v2538_v32, %v2537_v21  ;;  %v2444_v58 = vxor.u32 2147483648, %v2443_v50  ;;  %v2544_v27 = vand.u32 2147483647, %v2543_v34  ;;  %v2730_v10 = vadd.s32 1, %v6938_v2 }
 0x44d   : > { %v4361_v28 = vadd.s32 4294967294, %v2636_v22  ;;  %v2780_v35 = vshrl.u32 %v2779_v38, 23  ;;  %v2727_v46 = vmul.u32 %v2720_v4, %v2711_v52  ;;  %vm2729_vm6 = vc.u32 %v6944_v19, %v6937_v9 }
 0x44e   : > { %v8214_v51 = vand.u32 2147483647, %v6904_v26  ;;  %v2731_v54 = vsel %vm2729_vm6, %v2730_v10, %v6938_v2  ;;  %v6955_v53 = vadd.f32 %v6754_v6, %v6896_v47  ;;  %v2546_v62 = vcvt.s32.f32 %v2539_v7 }
 0x44f   : > { %vm4362_vm4 = vcmp.lt.s32.totalorder %v4361_v28, 0  ;;  %v4367_v12 = vadd.s32 4294967169, %v2780_v35  ;;  %v2732_v17 = vadd.s32 %v2731_v54, %v2727_v46  ;;  %vm2362_vm5 = vcmp.lt.s32.totalorder %v6734_v0, 0 }
 0x450   : > { %v6957_v48 = vsel %vm4362_vm4, 0, %v4361_v28  ;;  %v2445_v4 = vsel %vm2362_vm5, %v2444_v58, %v2443_v50  ;;  %v6962_v56 = vmul.f32 %v2546_v62, %v2544_v27  ;;  %v2783_v49 = vand.u32 8388607, %v8214_v51 }
 0x451   : > { %v2786_v55 = vadd.s32 1, %v4367_v12  ;;  %v2733_v20 = vadd.s32 536870912, %v2732_v17  ;;  %v2644_v25 = vsub.s32 4294967266, %v6957_v48  ;;  %v2883_v6 = vand.u32 2139095040, %v6955_v53 }
 0x452   : > { %vm6970_vm1 = vcmp.le.f32.partialorder %v2360_v8, 0.7853982  ;;  %v2446_v13 = vsub.s32 4, %v6836_v29  ;;  %v2624_v11 = vadd.s32 %v6887_v16, %v6884_v40  ;;  %v2548_v42 = vxor.u32 2147483648, %v6962_v56 }
 0x453   : > { %vm2787_vm10 = vcmp.gt.s32.totalorder %v2786_v55, 0  ;;  %v6974_v32 = vshrl.u32 %v2733_v20, 30  ;;  %v6980_v33 = vsel %vm6970_vm1, %v6734_v0, %v2445_v4  ;;  %v2784_v30 = vor.u32 8388608, %v2783_v49 }
 0x454   : > { %v2788_v50 = vsel %vm2787_vm10, %v2786_v55, 0  ;;  %v8216_v34 = vand.u32 2147483647, %v6955_v53  ;;  %v2640_v45 = vsub.s32 32, %v6957_v48  ;;  %v2645_v2 = vadd.s32 127, %v2644_v25 }
 0x455   : > { %v2790_v41 = vand.u32 31, %v2788_v50  ;;  %v2735_v8 = vshll.u32 %v6974_v32, 30  ;;  %v2884_v22 = vshrl.u32 %v2883_v6, 23  ;;  %v2789_v52 = vshrl.u32 %v2788_v50, 5 }
 0x456   : > { %vm2466_vm3 = vcmp.lt.s32.totalorder %v6736_v18, 0  ;;  %v2641_v55 = vshll.u32 %v6928_v3, %v6957_v48  ;;  %v2642_v25 = vshrl.u32 %v2624_v11, %v2640_v45  ;;  %v2646_v6 = vshll.u32 %v2645_v2, 23 }
 0x457   : > { %v2791_v21 = vsub.s32 32, %v2790_v41  ;;  %v6988_v23 = vsub.s32 %v2732_v17, %v2735_v8  ;;  %v2793_v38 = vshll.u32 %v8238_v36, %v2790_v41  ;;  %v2796_v40 = vshll.u32 %v8244_v14, %v2790_v41 }
 0x458   : > { %v2799_v28 = vshll.u32 %v8242_v61, %v2790_v41  ;;  %v2802_v10 = vshll.u32 %v8239_v60, %v2790_v41  ;;  %v2805_v62 = vshll.u32 %v8340_v31, %v2790_v41  ;;  %v7002_v17 = vshll.u32 %v2784_v30, 8 }
 0x459   : > { %v2794_v16 = vshrl.u32 %v8244_v14, %v2791_v21  ;;  %v2797_v7 = vshrl.u32 %v8242_v61, %v2791_v21  ;;  %v2800_v58 = vshrl.u32 %v8239_v60, %v2791_v21  ;;  %v2738_v27 = vsub.s32 0, %v6988_v23 }
 0x45a   : > { %v2803_v35 = vshrl.u32 %v8340_v31, %v2791_v21  ;;  %v2806_v46 = vshrl.u32 %v8341_v24, %v2791_v21  ;;  %vm2808_vm8 = vcmp.lt.s32.totalorder %v2789_v52, 1  ;;  %vm2811_vm9 = vcmp.lt.s32.totalorder %v2789_v52, 4 }
 0x45b   : > { %v2795_v54 = vor.u32 %v2794_v16, %v2793_v38  ;;  %v2798_v12 = vor.u32 %v2797_v7, %v2796_v40  ;;  %v4364_v4 = vmin.u32 %v2738_v27, %v6988_v23  ;;  %v2801_v20 = vor.u32 %v2800_v58, %v2799_v28 }
 0x45c   : > { %v2804_v49 = vor.u32 %v2803_v35, %v2802_v10  ;;  %v2807_v50 = vor.u32 %v2806_v46, %v2805_v62  ;;  %v4371_v38 = vadd.s32 4294967169, %v2884_v22  ;;  %vm7009_vm11 = vcmp.le.f32.partialorder %v2464_v15, 0.7853982 }
 0x45d   : > { %v2740_v8 = vclz %v4364_v4  ;;  %v2816_v51 = vsel %vm2808_vm8, %v2795_v54, %v2798_v12  ;;  %v2792_v3 = vshrl.u32 %v8238_v36, %v2791_v21  ;;  %vm2809_vm0 = vcmp.lt.s32.totalorder %v2789_v52, 2  ;;  %v7020_v21 = vpop.permute.xlu1 %2288 }
 0x45e   : > { %vm2810_vm2 = vcmp.lt.s32.totalorder %v2789_v52, 3  ;;  %v2817_v48 = vsel %vm2811_vm9, %v2804_v49, 920167782  ;;  %v2813_v11 = vsel %vm2811_vm9, %v2801_v20, 2102212464  ;;  %v2820_v2 = vsel %vm2808_vm8, %v2798_v12, %v2801_v20 }
 0x45f   : > { %v4365_v30 = vadd.s32 4294967294, %v2740_v8  ;;  %v2818_v45 = vsel %vm2810_vm2, %v2801_v20, %v2817_v48  ;;  %v2647_v40 = vor.u32 4788187, %v2646_v6  ;;  %v2812_v16 = vsel %vm2808_vm8, %v2792_v3, %v2795_v54 }
 0x460   : > { %v2819_v7 = vsel %vm2809_vm0, %v2816_v51, %v2818_v45  ;;  %v2821_v22 = vsel %vm2811_vm9, %v2807_v50, 1326507024  ;;  %v2814_v10 = vsel %vm2810_vm2, %v2798_v12, %v2813_v11  ;;  %v2890_v46 = vadd.s32 1, %v4371_v38 }
 0x461   : > { %vm4366_vm7 = vcmp.lt.s32.totalorder %v4365_v30, 0  ;;  %v2822_v28 = vsel %vm2810_vm2, %v2804_v49, %v2821_v22  ;;  %v7016_v15 = vmul.u32.u64.low %v7002_v17, %v2819_v7  ;;  %v7017_v58 = vmul.u32.u64.high %v7002_v17, %v2819_v7, %v7016_v15 }
 0x462   : > { %v2743_v27 = vsel %vm4366_vm7, 0, %v4365_v30  ;;  %v2823_v35 = vsel %vm2809_vm0, %v2820_v2, %v2822_v28  ;;  %v2549_v54 = vsel %vm2466_vm3, %v2548_v42, %v6962_v56  ;;  %v2643_v51 = vor.u32 %v2642_v25, %v2641_v55 }
 0x463   : > { %v2748_v62 = vsub.s32 4294967266, %v2743_v27  ;;  %v7028_v4 = vadd.f32 %v6756_v37, %v7020_v21  ;;  %v7031_v20 = vmul.u32.u64.low %v7002_v17, %v2823_v35  ;;  %v7032_v49 = vmul.u32.u64.high %v7002_v17, %v2823_v35, %v7031_v20 }
 0x464   : > { %v2887_v12 = vand.u32 8388607, %v8216_v34  ;;  %vm2891_vm14 = vcmp.gt.s32.totalorder %v2890_v46, 0  ;;  %v2648_v6 = vand.u32 2147483647, %v2647_v40  ;;  %v2815_v50 = vsel %vm2809_vm0, %v2812_v16, %v2814_v10 }
 0x465   : > { %v2834_v8 = vadd.s32 1, %v7017_v58  ;;  %v2892_v56 = vsel %vm2891_vm14, %v2890_v46, 0  ;;  %v7043_v37 = vsel %vm2362_vm5, %v2446_v13, %v6836_v29  ;;  %4694 = vcosq.f32 %v6980_v33 }
 0x466   : > { %v2744_v42 = vsub.s32 32, %v2743_v27  ;;  %v2894_v55 = vand.u32 31, %v2892_v56  ;;  %v7049_v25 = vsel %vm7009_vm11, %v6736_v18, %v2549_v54  ;;  %v2650_v52 = vcvt.s32.f32 %v2643_v51 }
 0x467   : > { %v2728_v38 = vadd.s32 %v6937_v9, %v6944_v19  ;;  %v2749_v3 = vadd.s32 127, %v2748_v62  ;;  %v2831_v48 = vmul.u32 %v7002_v17, %v2815_v50  ;;  %vm2833_vm12 = vc.u32 %v7032_v49, %v7016_v15 }
 0x468   : > { %v2895_v29 = vsub.s32 32, %v2894_v55  ;;  %v8215_v13 = vand.u32 2147483647, %v7028_v4  ;;  %v2651_v30 = vmul.f32 %v2650_v52, %v2648_v6  ;;  %v2835_v11 = vsel %vm2833_vm12, %v2834_v8, %v7017_v58 }
 0x469   : > { %v2888_v45 = vor.u32 8388608, %v2887_v12  ;;  %v2987_v2 = vand.u32 2139095040, %v7028_v4  ;;  %v2746_v40 = vshrl.u32 %v2728_v38, %v2744_v42  ;;  %v2836_v16 = vadd.s32 %v2835_v11, %v2831_v48 }
 0x46a   : > { %v2898_v7 = vshrl.u32 %v8244_v14, %v2895_v29  ;;  %v2901_v9 = vshrl.u32 %v8242_v61, %v2895_v29  ;;  %v2750_v19 = vshll.u32 %v2749_v3, 23  ;;  %v2897_v17 = vshll.u32 %v8238_v36, %v2894_v55 }
 0x46b   : > { %v2900_v22 = vshll.u32 %v8244_v14, %v2894_v55  ;;  %v2904_v28 = vshrl.u32 %v8239_v60, %v2895_v29  ;;  %v2837_v10 = vadd.s32 536870912, %v2836_v16  ;;  %v2893_v35 = vshrl.u32 %v2892_v56, 5 }
 0x46c   : > { %v2906_v58 = vshll.u32 %v8239_v60, %v2894_v55  ;;  %v2907_v46 = vshrl.u32 %v8340_v31, %v2895_v29  ;;  %v2899_v54 = vor.u32 %v2898_v7, %v2897_v17  ;;  %v2903_v62 = vshll.u32 %v8242_v61, %v2894_v55 }
 0x46d   : > { %v2902_v51 = vor.u32 %v2901_v9, %v2900_v22  ;;  %v2910_v20 = vshrl.u32 %v8341_v24, %v2895_v29  ;;  %vm2570_vm15 = vcmp.lt.s32.totalorder %v6740_v63, 0  ;;  %v2652_v12 = vxor.u32 2147483648, %v2651_v30 }
 0x46e   : > { %v2745_v6 = vshll.u32 %v6988_v23, %v2743_v27  ;;  %v7070_v50 = vshrl.u32 %v2837_v10, 30  ;;  %v2908_v8 = vor.u32 %v2907_v46, %v2906_v58  ;;  %v2751_v42 = vor.u32 4788187, %v2750_v19 }
 0x46f   : > { %v2905_v56 = vor.u32 %v2904_v28, %v2903_v62  ;;  %v2909_v52 = vshll.u32 %v8340_v31, %v2894_v55  ;;  %v7073_v38 = vshll.u32 %v2888_v45, 8  ;;  %v7075_v3 = vpop.eup %4694  ;;  %vm2912_vm13 = vcmp.lt.s32.totalorder %v2893_v35, 1 }
 0x470   : > { %v2747_v48 = vor.u32 %v2746_v40, %v2745_v6  ;;  %v2839_v11 = vshll.u32 %v7070_v50, 30  ;;  %vm2915_vm4 = vcmp.lt.s32.totalorder %v2893_v35, 4  ;;  %vm7080_vm6 = vcmp.le.f32.partialorder %v2568_v5, 0.7853982 }
 0x471   : > { %v2911_v27 = vor.u32 %v2910_v20, %v2909_v52  ;;  %v2920_v7 = vsel %vm2912_vm13, %v2899_v54, %v2902_v51  ;;  %v2921_v55 = vsel %vm2915_vm4, %v2908_v8, 920167782  ;;  %v2988_v45 = vshrl.u32 %v2987_v2, 23 }
 0x472   : > { %v7086_v9 = vsub.s32 %v2836_v16, %v2839_v11  ;;  %v2896_v40 = vshrl.u32 %v8238_v36, %v2895_v29  ;;  %vm2914_vm5 = vcmp.lt.s32.totalorder %v2893_v35, 3  ;;  %v7091_v19 = vadd.f32 %v6758_v43, %v7020_v21 }
 0x473   : > { %v2752_v17 = vand.u32 2147483647, %v2751_v42  ;;  %vm2913_vm10 = vcmp.lt.s32.totalorder %v2893_v35, 2  ;;  %v2917_v5 = vsel %vm2915_vm4, %v2905_v56, 2102212464  ;;  %v2922_v22 = vsel %vm2914_vm5, %v2905_v56, %v2921_v55 }
 0x474   : > { %v2754_v28 = vcvt.s32.f32 %v2747_v48  ;;  %v2842_v10 = vsub.s32 0, %v7086_v9  ;;  %v2923_v2 = vsel %vm2913_vm10, %v2920_v7, %v2922_v22  ;;  %v2924_v16 = vsel %vm2912_vm13, %v2902_v51, %v2905_v56 }
 0x475   : > { %v2916_v29 = vsel %vm2912_vm13, %v2896_v40, %v2899_v54  ;;  %v2925_v58 = vsel %vm2915_vm4, %v2911_v27, 1326507024  ;;  %v7101_v43 = vmul.u32.u64.low %v7073_v38, %v2923_v2  ;;  %v7102_v21 = vmul.u32.u64.high %v7073_v38, %v2923_v2, %v7101_v43 }
 0x476   : > { %vm2674_vm8 = vcmp.lt.s32.totalorder %v6751_v1, 0  ;;  %v4368_v46 = vmin.u32 %v2842_v10, %v7086_v9  ;;  %v2918_v62 = vsel %vm2914_vm5, %v2902_v51, %v2917_v5  ;;  %v2926_v20 = vsel %vm2914_vm5, %v2908_v8, %v2925_v58 }
 0x477   : > { %v4375_v6 = vadd.s32 4294967169, %v2988_v45  ;;  %v2653_v42 = vsel %vm2570_vm15, %v2652_v12, %v2651_v30  ;;  %v2755_v54 = vmul.f32 %v2754_v28, %v2752_v17  ;;  %v2927_v56 = vsel %vm2913_vm10, %v2924_v16, %v2926_v20 }
 0x478   : > { %v3091_v52 = vand.u32 2139095040, %v7091_v19  ;;  %v2844_v48 = vclz %v4368_v46  ;;  %v7114_v11 = vmul.u32.u64.low %v7073_v38, %v2927_v56  ;;  %v7115_v27 = vmul.u32.u64.high %v7073_v38, %v2927_v56, %v7114_v11 }
 0x479   : > { %v2994_v7 = vadd.s32 1, %v4375_v6  ;;  %4696 = vsinq.f32 %v6980_v33  ;;  %v2654_v51 = vsub.s32 4, %v6920_v57  ;;  %v2919_v8 = vsel %vm2913_vm10, %v2916_v29, %v2918_v62 }
 0x47a   : > { %v2938_v55 = vadd.s32 1, %v7102_v21  ;;  %4698 = vcosq.f32 %v7049_v25  ;;  %v7125_v30 = vsel %vm7080_vm6, %v6740_v63, %v2653_v42  ;;  %vm7129_vm9 = vcmp.le.f32.partialorder %v2672_v39, 0.7853982 }
 0x47b   : > { %v2991_v33 = vand.u32 8388607, %v8215_v13  ;;  %vm2995_vm0 = vcmp.gt.s32.totalorder %v2994_v7, 0  ;;  %v2756_v35 = vxor.u32 2147483648, %v2755_v54  ;;  %v4369_v45 = vadd.s32 4294967294, %v2844_v48 }
 0x47c   : > { %v2996_v40 = vsel %vm2995_vm0, %v2994_v7, 0  ;;  %v3092_v17 = vshrl.u32 %v3091_v52, 23  ;;  %4700 = vsinq.f32 %v7049_v25  ;;  %v2935_v22 = vmul.u32 %v7073_v38, %v2919_v8 }
 0x47d   : > { %vm2937_vm2 = vc.u32 %v7115_v27, %v7101_v43  ;;  %v7145_v39 = vsel %vm2570_vm15, %v2654_v51, %v6920_v57  ;;  %4702 = vcosq.f32 %v7125_v30  ;;  %v2998_v10 = vand.u32 31, %v2996_v40 }
 0x47e   : > { %v2939_v28 = vsel %vm2937_vm2, %v2938_v55, %v7102_v21  ;;  %v7151_v2 = vadd.s32 %v7016_v15, %v7032_v49  ;;  %v2992_v16 = vor.u32 8388608, %v2991_v33  ;;  %v2550_v38 = vsub.s32 4, %v6863_v59 }
 0x47f   : > { %v2940_v25 = vadd.s32 %v2939_v28, %v2935_v22  ;;  %v2757_v29 = vsel %vm2674_vm8, %v2756_v35, %v2755_v54  ;;  %vm4370_vm7 = vcmp.lt.s32.totalorder %v4369_v45, 0  ;;  %v2999_v58 = vsub.s32 32, %v2998_v10 }
 0x480   : > { %v4379_v57 = vadd.s32 4294967169, %v3092_v17  ;;  %v2997_v62 = vshrl.u32 %v2996_v40, 5  ;;  %v3001_v20 = vshll.u32 %v8238_v36, %v2998_v10  ;;  %v3004_v21 = vshll.u32 %v8244_v14, %v2998_v10 }
 0x481   : > { %v2941_v46 = vadd.s32 536870912, %v2940_v25  ;;  %v3002_v6 = vshrl.u32 %v8244_v14, %v2999_v58  ;;  %v3005_v15 = vshrl.u32 %v8242_v61, %v2999_v58  ;;  %v3007_v49 = vshll.u32 %v8242_v61, %v2998_v10 }
 0x482   : > { %v3008_v42 = vshrl.u32 %v8239_v60, %v2999_v58  ;;  %v7162_v56 = vsel %vm4370_vm7, 0, %v4369_v45  ;;  %v3010_v52 = vshll.u32 %v8239_v60, %v2998_v10  ;;  %v3011_v48 = vshrl.u32 %v8340_v31, %v2999_v58 }
 0x483   : > { %v7164_v54 = vshrl.u32 %v2941_v46, 30  ;;  %v7168_v11 = vpop.eup %4696  ;;  %v2760_v7 = vsel %vm7129_vm9, %v6751_v1, %v2757_v29  ;;  %v3003_v51 = vor.u32 %v3002_v6, %v3001_v20  ;;  %v3006_v8 = vor.u32 %v3005_v15, %v3004_v21 }
 0x484   : > { %v3009_v55 = vor.u32 %v3008_v42, %v3007_v49  ;;  %v7173_v33 = vpop.eup %4698  ;;  %v3012_v45 = vor.u32 %v3011_v48, %v3010_v52  ;;  %v3032_v40 = vshll.u32 %v2992_v16, 8  ;;  %v2848_v22 = vsub.s32 32, %v7162_v56 }
 0x485   : > { %v2943_v35 = vshll.u32 %v7164_v54, 30  ;;  %v3013_v28 = vshll.u32 %v8340_v31, %v2998_v10  ;;  %v3014_v46 = vshrl.u32 %v8341_v24, %v2999_v58  ;;  %v3098_v13 = vadd.s32 1, %v4379_v57 }
 0x486   : > { %v7180_v34 = vpop.eup %4700  ;;  %vm3016_vm14 = vcmp.lt.s32.totalorder %v2997_v62, 1  ;;  %vm3018_vm12 = vcmp.lt.s32.totalorder %v2997_v62, 3  ;;  %vm3019_vm15 = vcmp.lt.s32.totalorder %v2997_v62, 4  ;;  %v3000_v10 = vshrl.u32 %v8238_v36, %v2999_v58 }
 0x487   : > { %v7182_v29 = vsub.s32 %v2940_v25, %v2943_v35  ;;  %v7184_v20 = vpop.eup %4702  ;;  %v3015_v21 = vor.u32 %v3014_v46, %v3013_v28  ;;  %v3021_v16 = vsel %vm3019_vm15, %v3009_v55, 2102212464  ;;  %v3024_v6 = vsel %vm3016_vm14, %v3003_v51, %v3006_v8 }
 0x488   : > { %v3025_v15 = vsel %vm3019_vm15, %v3012_v45, 920167782  ;;  %vm3017_vm13 = vcmp.lt.s32.totalorder %v2997_v62, 2  ;;  %v2852_v25 = vsub.s32 4294967266, %v7162_v56  ;;  %v3028_v52 = vsel %vm3016_vm14, %v3006_v8, %v3009_v55 }
 0x489   : > { %v2946_v49 = vsub.s32 0, %v7182_v29  ;;  %v3026_v57 = vsel %vm3018_vm12, %v3009_v55, %v3025_v15  ;;  %v3029_v48 = vsel %vm3019_vm15, %v3015_v21, 1326507024  ;;  %v3020_v28 = vsel %vm3016_vm14, %v3000_v10, %v3003_v51 }
 0x48a   : > { %v3027_v42 = vsel %vm3017_vm13, %v3024_v6, %v3026_v57  ;;  %v3022_v46 = vsel %vm3018_vm12, %v3006_v8, %v3021_v16  ;;  %v3030_v5 = vsel %vm3018_vm12, %v3012_v45, %v3029_v48  ;;  %vm3099_vm4 = vcmp.gt.s32.totalorder %v3098_v13, 0 }
 0x48b   : > { %v4372_v35 = vmin.u32 %v2946_v49, %v7182_v29  ;;  %v3031_v58 = vsel %vm3017_vm13, %v3028_v52, %v3030_v5  ;;  %v7198_v17 = vmul.u32.u64.low %v3032_v40, %v3027_v42  ;;  %v7199_v44 = vmul.u32.u64.high %v3032_v40, %v3027_v42, %v7198_v17 }
 0x48c   : > { %v7202_v6 = vmul.u32.u64.low %v3032_v40, %v3031_v58  ;;  %v7203_v57 = vmul.u32.u64.high %v3032_v40, %v3031_v58, %v7202_v6  ;;  %v2551_v55 = vsel %vm2466_vm3, %v2550_v38, %v6863_v59  ;;  %v2657_v51 = vsel %vm7080_vm6, 0, %v7145_v39 }
 0x48d   : > { %v2948_v15 = vclz %v4372_v35  ;;  %4704 = vsinq.f32 %v7125_v30  ;;  %v3023_v5 = vsel %vm3017_vm13, %v3020_v28, %v3022_v46  ;;  %v3100_v8 = vsel %vm3099_vm4, %v3098_v13, 0 }
 0x48e   : > { %v2850_v45 = vshrl.u32 %v7151_v2, %v2848_v22  ;;  %v2853_v21 = vadd.s32 127, %v2852_v25  ;;  %v8350_v16 = vand.u32 2147483647, %v7091_v19  ;;  %v3102_v10 = vand.u32 31, %v3100_v8 }
 0x48f   : > { %4706 = vcosq.f32 %v2760_v7  ;;  %v4373_v42 = vadd.s32 4294967294, %v2948_v15  ;;  %v3042_v59 = vadd.s32 1, %v7199_v44  ;;  %v2553_v23 = vsel %vm7009_vm11, 0, %v2551_v55 }
 0x490   : > { %v3095_v49 = vand.u32 8388607, %v8350_v16  ;;  %v2849_v30 = vshll.u32 %v7086_v9, %v7162_v56  ;;  %v3039_v39 = vmul.u32 %v3032_v40, %v3023_v5  ;;  %vm3041_vm3 = vc.u32 %v7203_v57, %v7198_v17 }
 0x491   : > { %v3103_v13 = vsub.s32 32, %v3102_v10  ;;  %v8351_v2 = vsel %vm6970_vm1, 0, %v7043_v37  ;;  %v7229_v62 = vadd.s32 3, %v2657_v51  ;;  %4708 = vsinq.f32 %v2760_v7 }
 0x492   : > { %v7227_v38 = vadd.s32 3, %v8351_v2  ;;  %v3043_v41 = vsel %vm3041_vm3, %v3042_v59, %v7199_v44  ;;  %v7232_v22 = vor.u32 %v2850_v45, %v2849_v30  ;;  %v2854_v25 = vshll.u32 %v2853_v21, 23 }
 0x493   : > { %v3044_v9 = vadd.s32 %v3043_v41, %v3039_v39  ;;  %v3096_v56 = vor.u32 8388608, %v3095_v49  ;;  %vm4374_vm11 = vcmp.lt.s32.totalorder %v4373_v42, 0  ;;  %v3106_v40 = vshrl.u32 %v8244_v14, %v3103_v13 }
 0x494   : > { %v3109_v52 = vshrl.u32 %v8242_v61, %v3103_v13  ;;  %v2557_v47 = vadd.s32 3, %v2553_v23  ;;  %v3105_v37 = vshll.u32 %v8238_v36, %v3102_v10  ;;  %v3108_v35 = vshll.u32 %v8244_v14, %v3102_v10 }
 0x495   : > { %v3045_v48 = vadd.s32 536870912, %v3044_v9  ;;  %v3112_v7 = vshrl.u32 %v8239_v60, %v3103_v13  ;;  %v3101_v28 = vshrl.u32 %v3100_v8, 5  ;;  %v3111_v44 = vshll.u32 %v8242_v61, %v3102_v10 }
 0x496   : > { %v3114_v46 = vshll.u32 %v8239_v60, %v3102_v10  ;;  %v3115_v58 = vshrl.u32 %v8340_v31, %v3103_v13  ;;  %v7242_v15 = vsel %vm4374_vm11, 0, %v4373_v42  ;;  %v3107_v55 = vor.u32 %v3106_v40, %v3105_v37 }
 0x497   : > { %v7244_v6 = vshrl.u32 %v3045_v48, 30  ;;  %v3110_v51 = vor.u32 %v3109_v52, %v3108_v35  ;;  %v7246_v5 = vpop.eup %4704  ;;  %v3113_v45 = vor.u32 %v3112_v7, %v3111_v44  ;;  %v3117_v16 = vshll.u32 %v8340_v31, %v3102_v10 }
 0x498   : > { %v3116_v21 = vor.u32 %v3115_v58, %v3114_v46  ;;  %v3118_v8 = vshrl.u32 %v8341_v24, %v3103_v13  ;;  %v7250_v49 = vor.u32 4788187, %v2854_v25  ;;  %v2858_v59 = vcvt.s32.f32 %v7232_v22 }
 0x499   : > { %v2936_v42 = vadd.s32 %v7101_v43, %v7115_v27  ;;  %v3047_v23 = vshll.u32 %v7244_v6, 30  ;;  %v7256_v30 = vpop.eup %4706  ;;  %v2956_v39 = vsub.s32 4294967266, %v7242_v15  ;;  %v3136_v41 = vshll.u32 %v3096_v56, 8 }
 0x49a   : > { %v3119_v2 = vor.u32 %v3118_v8, %v3117_v16  ;;  %v2558_v40 = vand.u32 3, %v2557_v47  ;;  %v3104_v10 = vshrl.u32 %v8238_v36, %v3103_v13  ;;  %vm3120_vm1 = vcmp.lt.s32.totalorder %v3101_v28, 1 }
 0x49b   : > { %v7259_v52 = vsub.s32 %v3044_v9, %v3047_v23  ;;  %vm3123_vm6 = vcmp.lt.s32.totalorder %v3101_v28, 4  ;;  %v7262_v25 = vpop.eup %4708  ;;  %vm3122_vm5 = vcmp.lt.s32.totalorder %v3101_v28, 3  ;;  %v3128_v43 = vsel %vm3120_vm1, %v3107_v55, %v3110_v51 }
 0x49c   : > { %v3125_v22 = vsel %vm3123_vm6, %v3113_v45, 2102212464  ;;  %v3129_v27 = vsel %vm3123_vm6, %v3116_v21, 920167782  ;;  %v2952_v48 = vsub.s32 32, %v7242_v15  ;;  %v3124_v35 = vsel %vm3120_vm1, %v3104_v10, %v3107_v55 }
 0x49d   : > { %v3050_v37 = vsub.s32 0, %v7259_v52  ;;  %v3126_v7 = vsel %vm3122_vm5, %v3110_v51, %v3125_v22  ;;  %vm3121_vm10 = vcmp.lt.s32.totalorder %v3101_v28, 2  ;;  %v3130_v56 = vsel %vm3122_vm5, %v3113_v45, %v3129_v27 }
 0x49e   : > { %v3132_v9 = vsel %vm3120_vm1, %v3110_v51, %v3113_v45  ;;  %v3133_v47 = vsel %vm3123_vm6, %v3119_v2, 1326507024  ;;  %v2957_v44 = vadd.s32 127, %v2956_v39  ;;  %v3131_v46 = vsel %vm3121_vm10, %v3128_v43, %v3130_v56 }
 0x49f   : > { %v4376_v13 = vmin.u32 %v3050_v37, %v7259_v52  ;;  %v3134_v58 = vsel %vm3122_vm5, %v3116_v21, %v3133_v47  ;;  %v3127_v16 = vsel %vm3121_vm10, %v3124_v35, %v3126_v7  ;;  %v2561_v28 = vxor.u32 2147483648, %v7180_v34 }
 0x4a0   : > { %v3135_v8 = vsel %vm3121_vm10, %v3132_v9, %v3134_v58  ;;  %v7267_v23 = vmul.u32.u64.low %v3136_v41, %v3131_v46  ;;  %v7268_v24 = vmul.u32.u64.high %v3136_v41, %v3131_v46, %v7267_v23  ;;  %v2856_v55 = vand.u32 2147483647, %v7250_v49 }
 0x4a1   : > { %v3052_v31 = vclz %v4376_v13  ;;  %v7271_v60 = vmul.u32.u64.low %v3136_v41, %v3135_v8  ;;  %v7272_v61 = vmul.u32.u64.high %v3136_v41, %v3135_v8, %v7271_v60  ;;  %v2953_v51 = vshll.u32 %v7182_v29, %v7242_v15 }
 0x4a2   : > { %v2954_v45 = vshrl.u32 %v2936_v42, %v2952_v48  ;;  %v3040_v21 = vadd.s32 %v7198_v17, %v7203_v57  ;;  %v2958_v39 = vshll.u32 %v2957_v44, 23  ;;  %v3143_v10 = vmul.u32 %v3136_v41, %v3127_v16 }
 0x4a3   : > { %v4377_v2 = vadd.s32 4294967294, %v3052_v31  ;;  %vm2556_vm0 = vweird.f32 %v6736_v18  ;;  %v2564_v22 = vxor.u32 2147483648, %v7173_v33  ;;  %v3146_v60 = vadd.s32 1, %v7268_v24 }
 0x4a4   : > { %vm2560_vm2 = vcmp.eq.s32.totalorder %v2558_v40, 0  ;;  %vm2563_vm7 = vcmp.eq.s32.totalorder %v2558_v40, 2  ;;  %v2758_v49 = vsub.s32 4, %v6974_v32  ;;  %vm3145_vm12 = vc.u32 %v7272_v61, %v7267_v23 }
 0x4a5   : > { %vm4378_vm14 = vcmp.lt.s32.totalorder %v4377_v2, 0  ;;  %v2562_v29 = vsel %vm2560_vm2, %v7173_v33, %v2561_v28  ;;  %v2565_v17 = vsel %vm2563_vm7, %v2564_v22, %v7180_v34  ;;  %v2955_v31 = vor.u32 %v2954_v45, %v2953_v51 }
 0x4a6   : > { %v3055_v57 = vsel %vm4378_vm14, 0, %v4377_v2  ;;  %v3147_v15 = vsel %vm3145_vm12, %v3146_v60, %v7268_v24  ;;  %v2759_v42 = vsel %vm2674_vm8, %v2758_v49, %v6974_v32  ;;  %vm2559_vm15 = vcmp.lt.s32.totalorder %v2558_v40, 2 }
 0x4a7   : > { %v3056_v41 = vsub.s32 32, %v3055_v57  ;;  %v3060_v43 = vsub.s32 4294967266, %v3055_v57  ;;  %v3148_v27 = vadd.s32 %v3147_v15, %v3143_v10  ;;  %v7292_v48 = vmul.f32 %v2858_v59, %v2856_v55 }
 0x4a8   : > { %v2959_v37 = vor.u32 4788187, %v2958_v39  ;;  %v2566_v35 = vsel %vm2559_vm15, %v2562_v29, %v2565_v17  ;;  %v2761_v33 = vsel %vm7129_vm9, 0, %v2759_v42  ;;  %v2962_v24 = vcvt.s32.f32 %v2955_v31 }
 0x4a9   : > { %v3058_v34 = vshrl.u32 %v3040_v21, %v3056_v41  ;;  %v3061_v7 = vadd.s32 127, %v3060_v43  ;;  %v3149_v56 = vadd.s32 536870912, %v3148_v27  ;;  %v2765_v9 = vadd.s32 3, %v2761_v33 }
 0x4aa   : > { %v3057_v47 = vshll.u32 %v7259_v52, %v3055_v57  ;;  %v2769_v32 = vxor.u32 2147483648, %v7262_v25  ;;  %v2454_v44 = vand.u32 3, %v7227_v38  ;;  %v2772_v46 = vxor.u32 2147483648, %v7256_v30 }
 0x4ab   : > { %v3062_v13 = vshll.u32 %v3061_v7, 23  ;;  %v7299_v40 = vshrl.u32 %v3149_v56, 30  ;;  %v2766_v59 = vand.u32 3, %v2765_v9  ;;  %v2960_v58 = vand.u32 2147483647, %v2959_v37 }
 0x4ac   : > { %v2567_v12 = vsel %vm2556_vm0, nan, %v2566_v35  ;;  %vm2764_vm8 = vweird.f32 %v6751_v1  ;;  %v2457_v16 = vxor.u32 2147483648, %v7168_v11  ;;  %v3059_v8 = vor.u32 %v3058_v34, %v3057_v47 }
 0x4ad   : > { %v3063_v52 = vor.u32 4788187, %v3062_v13  ;;  %v3151_v28 = vshll.u32 %v7299_v40, 30  ;;  %v2460_v38 = vxor.u32 2147483648, %v7075_v3  ;;  %vm2768_vm9 = vcmp.eq.s32.totalorder %v2766_v59, 0 }
 0x4ae   : > { %vm2771_vm13 = vcmp.eq.s32.totalorder %v2766_v59, 2  ;;  %vm2456_vm4 = vcmp.eq.s32.totalorder %v2454_v44, 0  ;;  %vm2459_vm3 = vcmp.eq.s32.totalorder %v2454_v44, 2  ;;  %vm2767_vm11 = vcmp.lt.s32.totalorder %v2766_v59, 2 }
 0x4af   : > { %v3152_v55 = vsub.s32 %v3148_v27, %v3151_v28  ;;  %v2770_v51 = vsel %vm2768_vm9, %v7256_v30, %v2769_v32  ;;  %v2773_v18 = vsel %vm2771_vm13, %v2772_v46, %v7262_v25  ;;  %v3064_v45 = vand.u32 2147483647, %v3063_v52 }
 0x4b0   : > { %v2774_v21 = vsel %vm2767_vm11, %v2770_v51, %v2773_v18  ;;  %v2662_v39 = vand.u32 3, %v7229_v62  ;;  %v2665_v2 = vxor.u32 2147483648, %v7246_v5  ;;  %v2458_v60 = vsel %vm2456_vm4, %v7075_v3, %v2457_v16 }
 0x4b1   : > { %v3154_v10 = vsub.s32 0, %v3152_v55  ;;  %v2775_v22 = vsel %vm2764_vm8, nan, %v2774_v21  ;;  %v2461_v49 = vsel %vm2459_vm3, %v2460_v38, %v7168_v11  ;;  %v2963_v29 = vmul.f32 %v2962_v24, %v2960_v58 }
 0x4b2   : > { %v3066_v17 = vcvt.s32.f32 %v3059_v8  ;;  %v3197_v31 = vpack.c.bf16 %v2775_v22, %v2567_v12  ;;  %vm2664_vm1 = vcmp.eq.s32.totalorder %v2662_v39, 0  ;;  %vm2455_vm6 = vcmp.lt.s32.totalorder %v2454_v44, 2 }
 0x4b3   : > { %v4380_v30 = vmin.u32 %v3154_v10, %v3152_v55  ;;  %v2666_v25 = vsel %vm2664_vm1, %v7184_v20, %v2665_v2  ;;  %v2668_v62 = vxor.u32 2147483648, %v7184_v20  ;;  %v2462_v15 = vsel %vm2455_vm6, %v2458_v60, %v2461_v49 }
 0x4b4   : > { %v3067_v57 = vmul.f32 %v3066_v17, %v3064_v45  ;;  %3240 = vmatprep.subr.bf16.mxu0 %v3197_v31  ;;  %vm2667_vm5 = vcmp.eq.s32.totalorder %v2662_v39, 2  ;;  %vm2663_vm10 = vcmp.lt.s32.totalorder %v2662_v39, 2  ;;  %v2860_v11 = vxor.u32 2147483648, %v7292_v48 }
 0x4b5   : > { %v3156_v1 = vclz %v4380_v30  ;;  %v2669_v3 = vsel %vm2667_vm5, %v2668_v62, %v7246_v5  ;;  %vm2452_vm0 = vweird.f32 %v6734_v0  ;;  %vm2660_vm2 = vweird.f32 %v6740_v63 }
 0x4b6   : > { %v2670_v42 = vsel %vm2663_vm10, %v2666_v25, %v2669_v3  ;;  %v2964_v41 = vxor.u32 2147483648, %v2963_v29  ;;  %v2463_v27 = vsel %vm2452_vm0, nan, %v2462_v15  ;;  %v3068_v20 = vxor.u32 2147483648, %v3067_v57 }
 0x4b7   : > { %v4381_v43 = vadd.s32 4294967294, %v3156_v1  ;;  %v2671_v37 = vsel %vm2660_vm2, nan, %v2670_v42  ;;  %vm2778_vm7 = vcmp.lt.s32.totalorder %v6904_v26, 0  ;;  %vm2882_vm12 = vcmp.lt.s32.totalorder %v6955_v53, 0 }
 0x4b8   : > { %v3196_v35 = vpack.c.bf16 %v2671_v37, %v2463_v27  ;;  %v2861_v5 = vsel %vm2778_vm7, %v2860_v11, %v7292_v48  ;;  %vm2986_vm15 = vcmp.lt.s32.totalorder %v7028_v4, 0  ;;  %v2965_v63 = vsel %vm2882_vm12, %v2964_v41, %v2963_v29 }
 0x4b9   : > { %vm4382_vm14 = vcmp.lt.s32.totalorder %v4381_v43, 0  ;;  %v3144_v33 = vadd.s32 %v7267_v23, %v7272_v61  ;;  %v8352_v56 = vand.u32 2147483647, %v6904_v26  ;;  %v8355_v48 = vand.u32 2147483647, %v6955_v53 }
 0x4ba   : > { %v3159_v0 = vsel %vm4382_vm14, 0, %v4381_v43  ;;  %3241 = vmatpush1.bf16.msra.mxu0 %v3196_v35  ;;  %v3069_v47 = vsel %vm2986_vm15, %v3068_v20, %v3067_v57  ;;  %v8358_v59 = vand.u32 2147483647, %v7028_v4  ;;  %v3070_v8 = vsub.s32 4, %v7244_v6 }
 0x4bb   : > { %v3160_v34 = vsub.s32 32, %v3159_v0  ;;  %v3164_v7 = vsub.s32 4294967266, %v3159_v0  ;;  %vm7334_vm8 = vcmp.le.f32.partialorder %v8352_v56, 0.7853982  ;;  %vm7340_vm9 = vcmp.le.f32.partialorder %v8355_v48, 0.7853982 }
 0x4bc   : > { %v2864_v61 = vsel %vm7334_vm8, %v6904_v26, %v2861_v5  ;;  %v3161_v23 = vshll.u32 %v3152_v55, %v3159_v0  ;;  %v2968_v13 = vsel %vm7340_vm9, %v6955_v53, %v2965_v63  ;;  %vm7354_vm13 = vcmp.le.f32.partialorder %v8358_v59, 0.7853982 }
 0x4bd   : > { %v3162_v32 = vshrl.u32 %v3144_v33, %v3160_v34  ;;  %v3165_v44 = vadd.s32 127, %v3164_v7  ;;  %v3072_v58 = vsel %vm7354_vm13, %v7028_v4, %v3069_v47  ;;  %4710 = vcosq.f32 %v2864_v61 }
 0x4be   : > { %4712 = vcosq.f32 %v2968_v13  ;;  %v2966_v28 = vsub.s32 4, %v7164_v54  ;;  %v2862_v38 = vsub.s32 4, %v7070_v50  ;;  %v3071_v18 = vsel %vm2986_vm15, %v3070_v8, %v7244_v6 }
 0x4bf   : > { %v3163_v12 = vor.u32 %v3162_v32, %v3161_v23  ;;  %v3166_v16 = vshll.u32 %v3165_v44, 23  ;;  %4714 = vcosq.f32 %v3072_v58  ;;  %v3174_v21 = vsub.s32 4, %v7299_v40 }
 0x4c0   : > { %4716 = vsinq.f32 %v3072_v58  ;;  %v2967_v39 = vsel %vm2882_vm12, %v2966_v28, %v7164_v54  ;;  %v2863_v2 = vsel %vm2778_vm7, %v2862_v38, %v7070_v50  ;;  %v3073_v22 = vsel %vm7354_vm13, 0, %v3071_v18 }
 0x4c1   : > { %v3167_v52 = vor.u32 4788187, %v3166_v16  ;;  %v3170_v51 = vcvt.s32.f32 %v3163_v12  ;;  %4718 = vsinq.f32 %v2968_v13  ;;  %vm3090_vm4 = vcmp.lt.s32.totalorder %v7091_v19, 0 }
 0x4c2   : > { %4720 = vsinq.f32 %v2864_v61  ;;  %v8361_v60 = vand.u32 2147483647, %v7091_v19  ;;  %v2969_v54 = vsel %vm7340_vm9, 0, %v2967_v39  ;;  %v3175_v29 = vsel %vm3090_vm4, %v3174_v21, %v7299_v40  ;;  %v3212_v21 = vpop.permute.xlu1 %3211 }
 0x4c3   : > { %v3168_v55 = vand.u32 2147483647, %v3167_v52  ;;  %v2865_v50 = vsel %vm7334_vm8, 0, %v2863_v2  ;;  %v3077_v25 = vadd.s32 3, %v3073_v22  ;;  %v2973_v57 = vadd.s32 3, %v2969_v54 }
 0x4c4   : > { %vm7379_vm3 = vcmp.le.f32.partialorder %v8361_v60, 0.7853982  ;;  %v2869_v3 = vadd.s32 3, %v2865_v50  ;;  %vm3076_vm9 = vweird.f32 %v7028_v4  ;;  %vm2972_vm13 = vweird.f32 %v6955_v53  ;;  %v4629_v4 = vld [vmem:[%s8131_s6 + $0x8] sm:$0xff]  }
 0x4c5   : > { %v3171_v45 = vmul.f32 %v3170_v51, %v3168_v55  ;;  %v3177_v15 = vsel %vm7379_vm3, 0, %v3175_v29  ;;  %v3078_v41 = vand.u32 3, %v3077_v25  ;;  %v2974_v43 = vand.u32 3, %v2973_v57  ;;  %v4628_v51 = vld [vmem:[%s8131_s6] sm:$0xff]  }
 0x4c6   : > { %v3181_v42 = vadd.s32 3, %v3177_v15  ;;  %v2870_v5 = vand.u32 3, %v2869_v3  ;;  %v8365_v53 = vmov 0  }
 0x4c7   : > { %v3172_v10 = vxor.u32 2147483648, %v3171_v45  ;;  %v4711_v17 = vpop.eup %4710  ;;  %vm3080_vm11 = vcmp.eq.s32.totalorder %v3078_v41, 0  ;;  %vm3083_vm1 = vcmp.eq.s32.totalorder %v3078_v41, 2  ;;  %vm2976_vm6 = vcmp.eq.s32.totalorder %v2974_v43, 0 }
 0x4c8   : > { %v4713_v30 = vpop.eup %4712  ;;  %v2876_v63 = vxor.u32 2147483648, %v4711_v17  ;;  %v3182_v33 = vand.u32 3, %v3181_v42  ;;  %vm2979_vm5 = vcmp.eq.s32.totalorder %v2974_v43, 2  ;;  %vm2872_vm10 = vcmp.eq.s32.totalorder %v2870_v5, 0 }
 0x4c9   : > { %v3173_v49 = vsel %vm3090_vm4, %v3172_v10, %v3171_v45  ;;  %v4715_v62 = vpop.eup %4714  ;;  %v2980_v35 = vxor.u32 2147483648, %v4713_v30  ;;  %vm2875_vm0 = vcmp.eq.s32.totalorder %v2870_v5, 2  ;;  %vm3079_vm2 = vcmp.lt.s32.totalorder %v3078_v41, 2 }
 0x4ca   : > { %v3176_v31 = vsel %vm7379_vm3, %v7091_v19, %v3173_v49  ;;  %v4717_v1 = vpop.eup %4716  ;;  %v3084_v37 = vxor.u32 2147483648, %v4715_v62  ;;  %vm2975_vm7 = vcmp.lt.s32.totalorder %v2974_v43, 2  ;;  %vm3187_vm14 = vcmp.eq.s32.totalorder %v3182_v33, 2 }
 0x4cb   : > { %4722 = vcosq.f32 %v3176_v31  ;;  %v4719_v40 = vpop.eup %4718  ;;  %v3081_v27 = vxor.u32 2147483648, %v4717_v1  ;;  %vm3184_vm12 = vcmp.eq.s32.totalorder %v3182_v33, 0  ;;  %vm2871_vm15 = vcmp.lt.s32.totalorder %v2870_v5, 2 }
 0x4cc   : > { %4724 = vsinq.f32 %v3176_v31  ;;  %v4721_v11 = vpop.eup %4720  ;;  %v2977_v20 = vxor.u32 2147483648, %v4719_v40  ;;  %v3085_v7 = vsel %vm3083_vm1, %v3084_v37, %v4717_v1  ;;  %v2981_v48 = vsel %vm2979_vm5, %v2980_v35, %v4719_v40 }
 0x4cd   : > { %v2873_v0 = vxor.u32 2147483648, %v4721_v11  ;;  %v3082_v34 = vsel %vm3080_vm11, %v4715_v62, %v3081_v27  ;;  %v2877_v23 = vsel %vm2875_vm0, %v2876_v63, %v4721_v11  ;;  %vm3183_vm8 = vcmp.lt.s32.totalorder %v3182_v33, 2 }
 0x4ce   : > { %v2978_v9 = vsel %vm2976_vm6, %v4713_v30, %v2977_v20  ;;  %v3086_v44 = vsel %vm3079_vm2, %v3082_v34, %v3085_v7  ;;  %vm3180_vm4 = vweird.f32 %v7091_v19  ;;  %vm2868_vm3 = vweird.f32 %v6904_v26  ;;  %v3207_v26 = vpop.permute.xlu0 %3206 }
 0x4cf   : > { %v2874_v61 = vsel %vm2872_vm10, %v4711_v17, %v2873_v0  ;;  %v2982_v13 = vsel %vm2975_vm7, %v2978_v9, %v2981_v48  ;;  %v3087_v16 = vsel %vm3076_vm9, nan, %v3086_v44  ;;  %vm8364_vm11 = vcmask 261120  }
 0x4d0   : > { %v2878_v58 = vsel %vm2871_vm15, %v2874_v61, %v2877_v23  ;;  %v2983_v8 = vsel %vm2972_vm13, nan, %v2982_v13  ;;  %vm8366_vm1 = vmmov %vm8364_vm11  ;;  %v8368_v13 = vmov 2102212464  }
 0x4d1   : > { %v2879_v38 = vsel %vm2868_vm3, nan, %v2878_v58 }
 0x4d2   : > { %v3198_v55 = vpack.c.bf16 %v3087_v16, %v2879_v38  ;;  %v8370_v38 = vmov 1326507024  }
 0x4d5   : > { %v4723_v56 = vpop.eup %4722 }
 0x4d6   : > { %v4725_v24 = vpop.eup %4724  ;;  %v3188_v47 = vxor.u32 2147483648, %v4723_v56 }
 0x4d7   : > { %v3185_v32 = vxor.u32 2147483648, %v4725_v24 }
 0x4d8   : > { %v3189_v59 = vsel %vm3187_vm14, %v3188_v47, %v4725_v24 }
 0x4d9   : > { %v3186_v46 = vsel %vm3184_vm12, %v4723_v56, %v3185_v32  ;;  %v8367_v32 = vmov 2131351028  }
 0x4da   : > { %v3190_v12 = vsel %vm3183_vm8, %v3186_v46, %v3189_v59  ;;  %v8369_v46 = vmov 920167782  }
 0x4db   : > { %v3191_v52 = vsel %vm3180_vm4, nan, %v3190_v12 }
 0x4dc   : > { %v3199_v28 = vpack.c.bf16 %v3191_v52, %v2983_v8 }
 0x4de   : > { %3242 = vmatprep.subr.bf16.mxu0 %v3199_v28 }
 0x4df   : > { %3243 = vmatpush1.bf16.msra.mxu0 %v3198_v55 }
 0x4e2   : > { %4385 = vmatmul.mubr.msk.bf16.vlgmr.msra.gmra.mrb[8].mxu0 %vm8364_vm11, %v4628_v51 }
 0x4e3   : > { %3282 = vmatprep.mubr.bf16.mxu0 %v8365_v53 }
 0x4ea   : > { %4386 = vmatmul.mubr.msk.bf16.gmra.mrb[12].mxu0 %vm8366_vm1, %v4629_v4 }
 0x5b5   : > { %v3274_v19 = vpop.f32.mrb[8].mxu0 }
 0x5b6   : > { %v7406_v18 = vadd.f32 %v3274_v19, %v3207_v26  ;;  %v3276_v45 = vpop.f32.mrb[9].mxu0 }
 0x5b7   : > { %v7408_v39 = vadd.f32 %v3276_v45, %v3207_v26  ;;  %v3278_v2 = vpop.f32.mrb[10].mxu0 }
 0x5b8   : > { %v3293_v10 = vand.u32 2147483647, %v7406_v18  ;;  %v3296_v22 = vand.u32 2139095040, %v7406_v18  ;;  %v7412_v60 = vadd.f32 %v3278_v2, %v3212_v21  ;;  %v3280_v6 = vpop.f32.mrb[11].mxu0 }
 0x5b9   : > { %v3397_v49 = vand.u32 2147483647, %v7408_v39  ;;  %v3400_v54 = vand.u32 2139095040, %v7408_v39  ;;  %v7423_v40 = vadd.f32 %v3280_v6, %v3212_v21 }
 0x5ba   : > { %v3297_v29 = vshrl.u32 %v3296_v22, 23  ;;  %v3300_v17 = vand.u32 8388607, %v3293_v10  ;;  %v3504_v30 = vand.u32 2139095040, %v7412_v60  ;;  %v3501_v41 = vand.u32 2147483647, %v7412_v60 }
 0x5bb   : > { %v3401_v50 = vshrl.u32 %v3400_v54, 23  ;;  %v3404_v31 = vand.u32 8388607, %v3397_v49  ;;  %v3608_v9 = vand.u32 2139095040, %v7423_v40 }
 0x5bc   : > { %v4387_v25 = vadd.s32 4294967169, %v3297_v29  ;;  %v3505_v57 = vshrl.u32 %v3504_v30, 23  ;;  %v3301_v1 = vor.u32 8388608, %v3300_v17  ;;  %v7438_v7 = vand.u32 8388607, %v3501_v41 }
 0x5bd   : > { %v4391_v62 = vadd.s32 4294967169, %v3401_v50  ;;  %v7421_v15 = vpop.f32.mrb[12].mxu0  ;;  %v3405_v11 = vor.u32 8388608, %v3404_v31 }
 0x5be   : > { %v3303_v3 = vadd.s32 1, %v4387_v25  ;;  %v4395_v43 = vadd.s32 4294967169, %v3505_v57  ;;  %v7426_v27 = vpop.f32.mrb[13].mxu0  ;;  %v7432_v63 = vshll.u32 %v3301_v1, 8 }
 0x5bf   : > { %v3407_v42 = vadd.s32 1, %v4391_v62  ;;  %v7428_v37 = vpop.f32.mrb[14].mxu0  ;;  %v7434_v34 = vshll.u32 %v3405_v11, 8 }
 0x5c0   : > { %vm3304_vm6 = vcmp.gt.s32.totalorder %v3303_v3, 0  ;;  %v7430_v35 = vpop.f32.mrb[15].mxu0  ;;  %v7440_v56 = vadd.s32 1, %v4395_v43 }
 0x5c1   : > { %v3305_v20 = vsel %vm3304_vm6, %v3303_v3, 0  ;;  %vm3408_vm5 = vcmp.gt.s32.totalorder %v3407_v42, 0 }
 0x5c2   : > { %v3306_v5 = vshrl.u32 %v3305_v20, 5  ;;  %v3307_v0 = vand.u32 31, %v3305_v20  ;;  %v3409_v33 = vsel %vm3408_vm5, %v3407_v42, 0  ;;  %vm3512_vm14 = vcmp.gt.s32.totalorder %v7440_v56, 0 }
 0x5c3   : > { %v7444_v47 = vshrl.u32 %v3409_v33, 5  ;;  %v3411_v61 = vand.u32 31, %v3409_v33 }
 0x5c4   : > { %v3308_v48 = vsub.s32 32, %v3307_v0  ;;  %v3310_v24 = vshll.u32 %v8238_v36, %v3307_v0  ;;  %v3313_v23 = vshll.u32 %v8244_v14, %v3307_v0  ;;  %v3316_v44 = vshll.u32 %v8367_v32, %v3307_v0 }
 0x5c5   : > { %v3319_v59 = vshll.u32 %v8368_v13, %v3307_v0  ;;  %v3322_v58 = vshll.u32 %v8369_v46, %v3307_v0  ;;  %vm3325_vm10 = vcmp.lt.s32.totalorder %v3306_v5, 1  ;;  %vm3326_vm0 = vcmp.lt.s32.totalorder %v3306_v5, 2 }
 0x5c6   : > { %v3311_v12 = vshrl.u32 %v8244_v14, %v3308_v48  ;;  %v3314_v16 = vshrl.u32 %v8367_v32, %v3308_v48  ;;  %v3317_v8 = vshrl.u32 %v8368_v13, %v3308_v48  ;;  %v3309_v52 = vshrl.u32 %v8238_v36, %v3308_v48 }
 0x5c7   : > { %v3320_v28 = vshrl.u32 %v8369_v46, %v3308_v48  ;;  %v3323_v55 = vshrl.u32 %v8370_v38, %v3308_v48  ;;  %v3412_v26 = vsub.s32 32, %v3411_v61  ;;  %vm3327_vm2 = vcmp.lt.s32.totalorder %v3306_v5, 3 }
 0x5c8   : > { %v3312_v51 = vor.u32 %v3311_v12, %v3310_v24  ;;  %v3315_v53 = vor.u32 %v3314_v16, %v3313_v23  ;;  %v3318_v4 = vor.u32 %v3317_v8, %v3316_v44  ;;  %vm3328_vm7 = vcmp.lt.s32.totalorder %v3306_v5, 4 }
 0x5c9   : > { %v3321_v19 = vor.u32 %v3320_v28, %v3319_v59  ;;  %v3324_v45 = vor.u32 %v3323_v55, %v3322_v58  ;;  %v3414_v50 = vshll.u32 %v8238_v36, %v3411_v61  ;;  %v3415_v25 = vshrl.u32 %v8244_v14, %v3412_v26 }
 0x5ca   : > { %v3329_v21 = vsel %vm3325_vm10, %v3309_v52, %v3312_v51  ;;  %v3330_v2 = vsel %vm3328_vm7, %v3318_v4, 2102212464  ;;  %v3333_v22 = vsel %vm3325_vm10, %v3312_v51, %v3315_v53  ;;  %v3337_v6 = vsel %vm3325_vm10, %v3315_v53, %v3318_v4 }
 0x5cb   : > { %v3331_v54 = vsel %vm3327_vm2, %v3315_v53, %v3330_v2  ;;  %v3334_v29 = vsel %vm3328_vm7, %v3321_v19, 920167782  ;;  %v3338_v17 = vsel %vm3328_vm7, %v3324_v45, 1326507024  ;;  %v3417_v62 = vshll.u32 %v8244_v14, %v3411_v61 }
 0x5cc   : > { %v3335_v31 = vsel %vm3327_vm2, %v3318_v4, %v3334_v29  ;;  %v3339_v30 = vsel %vm3327_vm2, %v3321_v19, %v3338_v17  ;;  %v3332_v57 = vsel %vm3326_vm0, %v3329_v21, %v3331_v54  ;;  %v3418_v11 = vshrl.u32 %v8367_v32, %v3412_v26 }
 0x5cd   : > { %v3336_v1 = vsel %vm3326_vm0, %v3333_v22, %v3335_v31  ;;  %v3340_v3 = vsel %vm3326_vm0, %v3337_v6, %v3339_v30  ;;  %v3416_v33 = vor.u32 %v3415_v25, %v3414_v50  ;;  %v3420_v24 = vshll.u32 %v8367_v32, %v3411_v61 }
 0x5ce   : > { %v7468_v42 = vmul.u32.u64.low %v7432_v63, %v3340_v3  ;;  %v7469_v43 = vmul.u32.u64.high %v7432_v63, %v3340_v3, %v7468_v42  ;;  %v7472_v20 = vmul.u32.u64.low %v7432_v63, %v3336_v1  ;;  %v7473_v0 = vmul.u32.u64.high %v7432_v63, %v3336_v1, %v7472_v20 }
 0x5cf   : > { %v3419_v48 = vor.u32 %v3418_v11, %v3417_v62  ;;  %v3421_v23 = vshrl.u32 %v8368_v13, %v3412_v26  ;;  %v3413_v5 = vshrl.u32 %v8238_v36, %v3412_v26  ;;  %v3423_v44 = vshll.u32 %v8368_v13, %v3411_v61 }
 0x5d0   : > { %v3424_v59 = vshrl.u32 %v8369_v46, %v3412_v26  ;;  %v3427_v58 = vshrl.u32 %v8370_v38, %v3412_v26  ;;  %v3348_v12 = vmul.u32 %v7432_v63, %v3332_v57  ;;  %v3426_v8 = vshll.u32 %v8369_v46, %v3411_v61 }
 0x5d1   : > { %v3422_v16 = vor.u32 %v3421_v23, %v3420_v24  ;;  %vm3429_vm12 = vcmp.lt.s32.totalorder %v7444_v47, 1  ;;  %vm3350_vm15 = vc.u32 %v7469_v43, %v7472_v20  ;;  %v3351_v52 = vadd.s32 1, %v7473_v0 }
 0x5d2   : > { %v3425_v28 = vor.u32 %v3424_v59, %v3423_v44  ;;  %vm3430_vm8 = vcmp.lt.s32.totalorder %v7444_v47, 2  ;;  %v3428_v55 = vor.u32 %v3427_v58, %v3426_v8  ;;  %vm3431_vm9 = vcmp.lt.s32.totalorder %v7444_v47, 3 }
 0x5d3   : > { %vm3432_vm13 = vcmp.lt.s32.totalorder %v7444_v47, 4  ;;  %v3437_v51 = vsel %vm3429_vm12, %v3416_v33, %v3419_v48  ;;  %v3352_v63 = vsel %vm3350_vm15, %v3351_v52, %v7473_v0  ;;  %v3441_v4 = vsel %vm3429_vm12, %v3419_v48, %v3422_v16 }
 0x5d4   : > { %v3434_v53 = vsel %vm3432_vm13, %v3422_v16, 2102212464  ;;  %v3438_v61 = vsel %vm3432_vm13, %v3425_v28, 920167782  ;;  %v3353_v26 = vadd.s32 %v3352_v63, %v3348_v12  ;;  %v3433_v19 = vsel %vm3429_vm12, %v3413_v5, %v3416_v33 }
 0x5d5   : > { %v3439_v45 = vsel %vm3431_vm9, %v3422_v16, %v3438_v61  ;;  %v3442_v21 = vsel %vm3432_vm13, %v3428_v55, 1326507024  ;;  %v3435_v2 = vsel %vm3431_vm9, %v3419_v48, %v3434_v53  ;;  %v3513_v54 = vsel %vm3512_vm14, %v7440_v56, 0 }
 0x5d6   : > { %v3440_v22 = vsel %vm3430_vm8, %v3437_v51, %v3439_v45  ;;  %v3443_v6 = vsel %vm3431_vm9, %v3425_v28, %v3442_v21  ;;  %v3354_v29 = vadd.s32 536870912, %v3353_v26  ;;  %v3436_v57 = vsel %vm3430_vm8, %v3433_v19, %v3435_v2 }
 0x5d7   : > { %v3444_v17 = vsel %vm3430_vm8, %v3441_v4, %v3443_v6  ;;  %v7500_v50 = vmul.u32.u64.low %v7434_v34, %v3440_v22  ;;  %v7501_v31 = vmul.u32.u64.high %v7434_v34, %v3440_v22, %v7500_v50  ;;  %v3509_v56 = vor.u32 8388608, %v7438_v7 }
 0x5d8   : > { %v7505_v30 = vmul.u32.u64.low %v7434_v34, %v3444_v17  ;;  %v7506_v25 = vmul.u32.u64.high %v7434_v34, %v3444_v17, %v7505_v30  ;;  %v7508_v62 = vshrl.u32 %v3354_v29, 30  ;;  %v3515_v1 = vand.u32 31, %v3513_v54 }
 0x5d9   : > { %v3455_v11 = vadd.s32 1, %v7501_v31  ;;  %v3609_v0 = vshrl.u32 %v3608_v9, 23  ;;  %v3452_v33 = vmul.u32 %v7434_v34, %v3436_v57  ;;  %v3514_v48 = vshrl.u32 %v3513_v54, 5 }
 0x5da   : > { %v3356_v3 = vshll.u32 %v7508_v62, 30  ;;  %v3516_v42 = vsub.s32 32, %v3515_v1  ;;  %vm3454_vm4 = vc.u32 %v7506_v25, %v7500_v50  ;;  %v3518_v7 = vshll.u32 %v8238_v36, %v3515_v1 }
 0x5db   : > { %v3456_v47 = vsel %vm3454_vm4, %v3455_v11, %v7501_v31  ;;  %v7524_v23 = vshll.u32 %v3509_v56, 8  ;;  %v3521_v59 = vshll.u32 %v8244_v14, %v3515_v1  ;;  %v3524_v58 = vshll.u32 %v8367_v32, %v3515_v1 }
 0x5dc   : > { %v7520_v24 = vsub.s32 %v3353_v26, %v3356_v3  ;;  %v3457_v5 = vadd.s32 %v3456_v47, %v3452_v33  ;;  %v3519_v44 = vshrl.u32 %v8244_v14, %v3516_v42  ;;  %v3522_v9 = vshrl.u32 %v8367_v32, %v3516_v42 }
 0x5dd   : > { %v3525_v12 = vshrl.u32 %v8368_v13, %v3516_v42  ;;  %v4399_v16 = vadd.s32 4294967169, %v3609_v0  ;;  %vm3533_vm3 = vcmp.lt.s32.totalorder %v3514_v48, 1  ;;  %v3527_v63 = vshll.u32 %v8368_v13, %v3515_v1 }
 0x5de   : > { %v3359_v34 = vsub.s32 0, %v7520_v24  ;;  %v3458_v8 = vadd.s32 536870912, %v3457_v5  ;;  %v3520_v52 = vor.u32 %v3519_v44, %v3518_v7  ;;  %v3523_v28 = vor.u32 %v3522_v9, %v3521_v59 }
 0x5df   : > { %v3526_v51 = vor.u32 %v3525_v12, %v3524_v58  ;;  %v3528_v53 = vshrl.u32 %v8369_v46, %v3516_v42  ;;  %v3530_v4 = vshll.u32 %v8369_v46, %v3515_v1  ;;  %v3531_v26 = vshrl.u32 %v8370_v38, %v3516_v42 }
 0x5e0   : > { %v4388_v55 = vmin.u32 %v3359_v34, %v7520_v24  ;;  %v7535_v61 = vshrl.u32 %v3458_v8, 30  ;;  %vm3534_vm11 = vcmp.lt.s32.totalorder %v3514_v48, 2  ;;  %vm3535_vm1 = vcmp.lt.s32.totalorder %v3514_v48, 3 }
 0x5e1   : > { %v3529_v45 = vor.u32 %v3528_v53, %v3527_v63  ;;  %vm3536_vm6 = vcmp.lt.s32.totalorder %v3514_v48, 4  ;;  %v3532_v2 = vor.u32 %v3531_v26, %v3530_v4  ;;  %v3541_v22 = vsel %vm3533_vm3, %v3520_v52, %v3523_v28  ;;  %v7568_v26 = vpop.permute.xlu0 %3216 }
 0x5e2   : > { %v3361_v19 = vclz %v4388_v55  ;;  %v3460_v21 = vshll.u32 %v7535_v61, 30  ;;  %v3615_v6 = vadd.s32 1, %v4399_v16  ;;  %v3517_v29 = vshrl.u32 %v8238_v36, %v3516_v42 }
 0x5e3   : > { %v3542_v17 = vsel %vm3536_vm6, %v3529_v45, 920167782  ;;  %v3545_v31 = vsel %vm3533_vm3, %v3523_v28, %v3526_v51  ;;  %v3538_v57 = vsel %vm3536_vm6, %v3526_v51, 2102212464  ;;  %v3546_v1 = vsel %vm3536_vm6, %v3532_v2, 1326507024 }
 0x5e4   : > { %v4389_v54 = vadd.s32 4294967294, %v3361_v19  ;;  %v7543_v30 = vsub.s32 %v3457_v5, %v3460_v21  ;;  %v3543_v56 = vsel %vm3535_vm1, %v3526_v51, %v3542_v17  ;;  %v3547_v11 = vsel %vm3535_vm1, %v3529_v45, %v3546_v1 }
 0x5e5   : > { %v3544_v3 = vsel %vm3534_vm11, %v3541_v22, %v3543_v56  ;;  %vm3616_vm10 = vcmp.gt.s32.totalorder %v3615_v6, 0  ;;  %v3548_v42 = vsel %vm3534_vm11, %v3545_v31, %v3547_v11  ;;  %v3537_v5 = vsel %vm3533_vm3, %v3517_v29, %v3520_v52 }
 0x5e6   : > { %vm4390_vm5 = vcmp.lt.s32.totalorder %v4389_v54, 0  ;;  %v3463_v33 = vsub.s32 0, %v7543_v30  ;;  %v3617_v47 = vsel %vm3616_vm10, %v3615_v6, 0  ;;  %v3539_v44 = vsel %vm3535_vm1, %v3523_v28, %v3538_v57 }
 0x5e7   : > { %v3364_v0 = vsel %vm4390_vm5, 0, %v4389_v54  ;;  %v3605_v59 = vand.u32 2147483647, %v7423_v40  ;;  %v7555_v34 = vmul.u32.u64.low %v7524_v23, %v3548_v42  ;;  %v7556_v58 = vmul.u32.u64.high %v7524_v23, %v3548_v42, %v7555_v34 }
 0x5e8   : > { %v3369_v7 = vsub.s32 4294967266, %v3364_v0  ;;  %v4392_v9 = vmin.u32 %v3463_v33, %v7543_v30  ;;  %v3619_v12 = vand.u32 31, %v3617_v47  ;;  %v3540_v52 = vsel %vm3534_vm11, %v3537_v5, %v3539_v44 }
 0x5e9   : > { %v7559_v16 = vmul.u32.u64.low %v7524_v23, %v3544_v3  ;;  %v7560_v8 = vmul.u32.u64.high %v7524_v23, %v3544_v3, %v7559_v16  ;;  %v3612_v28 = vand.u32 8388607, %v3605_v59  ;;  %v3365_v63 = vsub.s32 32, %v3364_v0 }
 0x5ea   : > { %v3465_v55 = vclz %v4392_v9  ;;  %v3370_v51 = vadd.s32 127, %v3369_v7  ;;  %v3620_v4 = vsub.s32 32, %v3619_v12  ;;  %v3349_v45 = vadd.s32 %v7472_v20, %v7469_v43 }
 0x5eb   : > { %vm3558_vm0 = vc.u32 %v7556_v58, %v7559_v16  ;;  %v3559_v19 = vadd.s32 1, %v7560_v8  ;;  %v3556_v48 = vmul.u32 %v7524_v23, %v3540_v52  ;;  %v7576_v21 = vadd.f32 %v7421_v15, %v7568_v26 }
 0x5ec   : > { %v4393_v53 = vadd.s32 4294967294, %v3465_v55  ;;  %v3371_v2 = vshll.u32 %v3370_v51, 23  ;;  %v3613_v54 = vor.u32 8388608, %v3612_v28  ;;  %v3367_v29 = vshrl.u32 %v3349_v45, %v3365_v63 }
 0x5ed   : > { %v3560_v6 = vsel %vm3558_vm0, %v3559_v19, %v7560_v8  ;;  %v3623_v31 = vshrl.u32 %v8244_v14, %v3620_v4  ;;  %v3626_v57 = vshrl.u32 %v8367_v32, %v3620_v4  ;;  %v3366_v43 = vshll.u32 %v7520_v24, %v3364_v0 }
 0x5ee   : > { %vm4394_vm2 = vcmp.lt.s32.totalorder %v4393_v53, 0  ;;  %v3561_v17 = vadd.s32 %v3560_v6, %v3556_v48  ;;  %v3629_v23 = vshrl.u32 %v8368_v13, %v3620_v4  ;;  %v3632_v15 = vshrl.u32 %v8369_v46, %v3620_v4 }
 0x5ef   : > { %v7578_v22 = vsel %vm4394_vm2, 0, %v4393_v53  ;;  %v3618_v1 = vshrl.u32 %v3617_v47, 5  ;;  %v3622_v3 = vshll.u32 %v8238_v36, %v3619_v12  ;;  %v3625_v11 = vshll.u32 %v8244_v14, %v3619_v12 }
 0x5f0   : > { %v3473_v20 = vsub.s32 4294967266, %v7578_v22  ;;  %v3562_v56 = vadd.s32 536870912, %v3561_v17  ;;  %v3372_v33 = vor.u32 4788187, %v3371_v2  ;;  %v3628_v42 = vshll.u32 %v8367_v32, %v3619_v12 }
 0x5f1   : > { %v3631_v7 = vshll.u32 %v8368_v13, %v3619_v12  ;;  %v3635_v5 = vshrl.u32 %v8370_v38, %v3620_v4  ;;  %v3368_v24 = vor.u32 %v3367_v29, %v3366_v43  ;;  %v3624_v44 = vor.u32 %v3623_v31, %v3622_v3 }
 0x5f2   : > { %v7592_v0 = vshrl.u32 %v3562_v56, 30  ;;  %v3627_v9 = vor.u32 %v3626_v57, %v3625_v11  ;;  %v3474_v34 = vadd.s32 127, %v3473_v20  ;;  %v3630_v8 = vor.u32 %v3629_v23, %v3628_v42 }
 0x5f3   : > { %v3633_v55 = vor.u32 %v3632_v15, %v3631_v7  ;;  %v3634_v47 = vshll.u32 %v8369_v46, %v3619_v12  ;;  %v3453_v51 = vadd.s32 %v7500_v50, %v7506_v25  ;;  %v3621_v28 = vshrl.u32 %v8238_v36, %v3620_v4 }
 0x5f4   : > { %v3564_v52 = vshll.u32 %v7592_v0, 30  ;;  %v3653_v63 = vshll.u32 %v3613_v54, 8  ;;  %v3373_v53 = vand.u32 2147483647, %v3372_v33  ;;  %v3469_v19 = vsub.s32 32, %v7578_v22 }
 0x5f5   : > { %v3636_v45 = vor.u32 %v3635_v5, %v3634_v47  ;;  %vm3637_vm7 = vcmp.lt.s32.totalorder %v3618_v1, 1  ;;  %v3375_v48 = vcvt.s32.f32 %v3368_v24  ;;  %vm3640_vm14 = vcmp.lt.s32.totalorder %v3618_v1, 4 }
 0x5f6   : > { %v7600_v2 = vsub.s32 %v3561_v17, %v3564_v52  ;;  %v3645_v6 = vsel %vm3637_vm7, %v3624_v44, %v3627_v9  ;;  %v3475_v12 = vshll.u32 %v3474_v34, 23  ;;  %vm3639_vm12 = vcmp.lt.s32.totalorder %v3618_v1, 3 }
 0x5f7   : > { %v3642_v29 = vsel %vm3640_vm14, %v3630_v8, 2102212464  ;;  %v3646_v50 = vsel %vm3640_vm14, %v3633_v55, 920167782  ;;  %vm3638_vm15 = vcmp.lt.s32.totalorder %v3618_v1, 2  ;;  %v3649_v54 = vsel %vm3637_vm7, %v3627_v9, %v3630_v8 }
 0x5f8   : > { %v3567_v25 = vsub.s32 0, %v7600_v2  ;;  %v3647_v4 = vsel %vm3639_vm12, %v3630_v8, %v3646_v50  ;;  %v3376_v31 = vmul.f32 %v3375_v48, %v3373_v53  ;;  %v3471_v57 = vshrl.u32 %v3453_v51, %v3469_v19 }
 0x5f9   : > { %v3648_v43 = vsel %vm3638_vm15, %v3645_v6, %v3647_v4  ;;  %v3650_v20 = vsel %vm3640_vm14, %v3636_v45, 1326507024  ;;  %v3641_v23 = vsel %vm3637_vm7, %v3621_v28, %v3624_v44  ;;  %v3643_v15 = vsel %vm3639_vm12, %v3627_v9, %v3642_v29 }
 0x5fa   : > { %v4396_v17 = vmin.u32 %v3567_v25, %v7600_v2  ;;  %v3651_v56 = vsel %vm3639_vm12, %v3633_v55, %v3650_v20  ;;  %v3476_v3 = vor.u32 4788187, %v3475_v12  ;;  %v3470_v7 = vshll.u32 %v7543_v30, %v7578_v22 }
 0x5fb   : > { %v3652_v11 = vsel %vm3638_vm15, %v3649_v54, %v3651_v56  ;;  %v7609_v33 = vmul.u32.u64.low %v3653_v63, %v3648_v43  ;;  %v7610_v42 = vmul.u32.u64.high %v3653_v63, %v3648_v43, %v7609_v33  ;;  %v3644_v8 = vsel %vm3638_vm15, %v3641_v23, %v3643_v15 }
 0x5fc   : > { %v3569_v5 = vclz %v4396_v17  ;;  %v7615_v24 = vmul.u32.u64.low %v3653_v63, %v3652_v11  ;;  %v7616_v34 = vmul.u32.u64.high %v3653_v63, %v3652_v11, %v7615_v24  ;;  %v3712_v44 = vand.u32 2139095040, %v7576_v21 }
 0x5fd   : > { %v3472_v9 = vor.u32 %v3471_v57, %v3470_v7  ;;  %v3377_v47 = vxor.u32 2147483648, %v3376_v31  ;;  %v3477_v51 = vand.u32 2147483647, %v3476_v3  ;;  %v3663_v52 = vadd.s32 1, %v7610_v42 }
 0x5fe   : > { %v4397_v55 = vadd.s32 4294967294, %v3569_v5  ;;  %v3713_v28 = vshrl.u32 %v3712_v44, 23  ;;  %v3660_v53 = vmul.u32 %v3653_v63, %v3644_v8  ;;  %vm3662_vm9 = vc.u32 %v7616_v34, %v7609_v33 }
 0x5ff   : > { %v8224_v30 = vand.u32 2147483647, %v7576_v21  ;;  %v3664_v22 = vsel %vm3662_vm9, %v3663_v52, %v7610_v42  ;;  %v7627_v19 = vadd.f32 %v7426_v27, %v7568_v26  ;;  %v3479_v45 = vcvt.s32.f32 %v3472_v9 }
 0x600   : > { %vm4398_vm8 = vcmp.lt.s32.totalorder %v4397_v55, 0  ;;  %v4403_v1 = vadd.s32 4294967169, %v3713_v28  ;;  %v3665_v6 = vadd.s32 %v3664_v22, %v3660_v53  ;;  %vm3295_vm13 = vcmp.lt.s32.totalorder %v7406_v18, 0 }
 0x601   : > { %v7629_v48 = vsel %vm4398_vm8, 0, %v4397_v55  ;;  %v3378_v63 = vsel %vm3295_vm13, %v3377_v47, %v3376_v31  ;;  %v7634_v29 = vmul.f32 %v3479_v45, %v3477_v51  ;;  %v3716_v25 = vand.u32 8388607, %v8224_v30 }
 0x602   : > { %v3719_v12 = vadd.s32 1, %v4403_v1  ;;  %v3666_v50 = vadd.s32 536870912, %v3665_v6  ;;  %v3577_v4 = vsub.s32 4294967266, %v7629_v48  ;;  %v3816_v27 = vand.u32 2139095040, %v7627_v19 }
 0x603   : > { %vm7642_vm3 = vcmp.le.f32.partialorder %v3293_v10, 0.7853982  ;;  %v3379_v57 = vsub.s32 4, %v7508_v62  ;;  %v3557_v20 = vadd.s32 %v7559_v16, %v7556_v58  ;;  %v3481_v23 = vxor.u32 2147483648, %v7634_v29 }
 0x604   : > { %vm3720_vm4 = vcmp.gt.s32.totalorder %v3719_v12, 0  ;;  %v7646_v54 = vshrl.u32 %v3666_v50, 30  ;;  %v7652_v43 = vsel %vm7642_vm3, %v7406_v18, %v3378_v63  ;;  %v3717_v15 = vor.u32 8388608, %v3716_v25 }
 0x605   : > { %v3721_v31 = vsel %vm3720_vm4, %v3719_v12, 0  ;;  %v8223_v56 = vand.u32 2147483647, %v7627_v19  ;;  %v3573_v3 = vsub.s32 32, %v7629_v48  ;;  %v3578_v11 = vadd.s32 127, %v3577_v4 }
 0x606   : > { %v3723_v17 = vand.u32 31, %v3721_v31  ;;  %v3668_v10 = vshll.u32 %v7646_v54, 30  ;;  %v3817_v7 = vshrl.u32 %v3816_v27, 23  ;;  %v3722_v24 = vshrl.u32 %v3721_v31, 5 }
 0x607   : > { %vm3399_vm11 = vcmp.lt.s32.totalorder %v7408_v39, 0  ;;  %v7674_v45 = vshll.u32 %v3717_v15, 8  ;;  %v3575_v25 = vshrl.u32 %v3557_v20, %v3573_v3  ;;  %v3579_v4 = vshll.u32 %v3578_v11, 23 }
 0x608   : > { %v3724_v42 = vsub.s32 32, %v3723_v17  ;;  %v7660_v5 = vsub.s32 %v3665_v6, %v3668_v10  ;;  %v3726_v8 = vshll.u32 %v8238_v36, %v3723_v17  ;;  %v3729_v58 = vshll.u32 %v8244_v14, %v3723_v17 }
 0x609   : > { %v3732_v9 = vshll.u32 %v8367_v32, %v3723_v17  ;;  %v3735_v51 = vshll.u32 %v8368_v13, %v3723_v17  ;;  %v3738_v1 = vshll.u32 %v8369_v46, %v3723_v17  ;;  %v3574_v6 = vshll.u32 %v7600_v2, %v7629_v48 }
 0x60a   : > { %v3727_v16 = vshrl.u32 %v8244_v14, %v3724_v42  ;;  %v3730_v44 = vshrl.u32 %v8367_v32, %v3724_v42  ;;  %v3733_v55 = vshrl.u32 %v8368_v13, %v3724_v42  ;;  %v3671_v47 = vsub.s32 0, %v7660_v5 }
 0x60b   : > { %v3736_v52 = vshrl.u32 %v8369_v46, %v3724_v42  ;;  %v3739_v28 = vshrl.u32 %v8370_v38, %v3724_v42  ;;  %vm3741_vm1 = vcmp.lt.s32.totalorder %v3722_v24, 1  ;;  %vm3744_vm6 = vcmp.lt.s32.totalorder %v3722_v24, 4 }
 0x60c   : > { %v3728_v53 = vor.u32 %v3727_v16, %v3726_v8  ;;  %v3731_v22 = vor.u32 %v3730_v44, %v3729_v58  ;;  %v4400_v12 = vmin.u32 %v3671_v47, %v7660_v5  ;;  %v3734_v63 = vor.u32 %v3733_v55, %v3732_v9 }
 0x60d   : > { %v3737_v50 = vor.u32 %v3736_v52, %v3735_v51  ;;  %v3740_v27 = vor.u32 %v3739_v28, %v3738_v1  ;;  %v4407_v8 = vadd.s32 4294967169, %v3817_v7  ;;  %vm7681_vm5 = vcmp.le.f32.partialorder %v3397_v49, 0.7853982 }
 0x60e   : > { %v3673_v31 = vclz %v4400_v12  ;;  %v3749_v10 = vsel %vm3741_vm1, %v3728_v53, %v3731_v22  ;;  %v3725_v2 = vshrl.u32 %v8238_v36, %v3724_v42  ;;  %vm3742_vm10 = vcmp.lt.s32.totalorder %v3722_v24, 2  ;;  %v7692_v42 = vpop.permute.xlu1 %3221 }
 0x60f   : > { %vm3743_vm0 = vcmp.lt.s32.totalorder %v3722_v24, 3  ;;  %v3750_v48 = vsel %vm3744_vm6, %v3737_v50, 920167782  ;;  %v3746_v20 = vsel %vm3744_vm6, %v3734_v63, 2102212464  ;;  %v3753_v11 = vsel %vm3741_vm1, %v3731_v22, %v3734_v63 }
 0x610   : > { %v4401_v15 = vadd.s32 4294967294, %v3673_v31  ;;  %v3751_v3 = vsel %vm3743_vm0, %v3734_v63, %v3750_v48  ;;  %v3580_v58 = vor.u32 4788187, %v3579_v4  ;;  %v3745_v16 = vsel %vm3741_vm1, %v3725_v2, %v3728_v53 }
 0x611   : > { %v3752_v44 = vsel %vm3742_vm10, %v3749_v10, %v3751_v3  ;;  %v3754_v7 = vsel %vm3744_vm6, %v3740_v27, 1326507024  ;;  %v3747_v51 = vsel %vm3743_vm0, %v3731_v22, %v3746_v20  ;;  %v3823_v28 = vadd.s32 1, %v4407_v8 }
 0x612   : > { %vm4402_vm2 = vcmp.lt.s32.totalorder %v4401_v15, 0  ;;  %v3755_v9 = vsel %vm3743_vm0, %v3737_v50, %v3754_v7  ;;  %v7688_v49 = vmul.u32.u64.low %v7674_v45, %v3752_v44  ;;  %v7689_v55 = vmul.u32.u64.high %v7674_v45, %v3752_v44, %v7688_v49 }
 0x613   : > { %v3676_v47 = vsel %vm4402_vm2, 0, %v4401_v15  ;;  %v3756_v52 = vsel %vm3742_vm10, %v3753_v11, %v3755_v9  ;;  %v3482_v53 = vsel %vm3399_vm11, %v3481_v23, %v7634_v29  ;;  %v3576_v1 = vor.u32 %v3575_v25, %v3574_v6 }
 0x614   : > { %v3681_v12 = vsub.s32 4294967266, %v3676_v47  ;;  %v7700_v63 = vadd.f32 %v7428_v37, %v7692_v42  ;;  %v7703_v50 = vmul.u32.u64.low %v7674_v45, %v3756_v52  ;;  %v7704_v4 = vmul.u32.u64.high %v7674_v45, %v3756_v52, %v7703_v50 }
 0x615   : > { %v3820_v22 = vand.u32 8388607, %v8223_v56  ;;  %vm3824_vm7 = vcmp.gt.s32.totalorder %v3823_v28, 0  ;;  %v3581_v27 = vand.u32 2147483647, %v3580_v58  ;;  %v3748_v31 = vsel %vm3742_vm10, %v3745_v16, %v3747_v51 }
 0x616   : > { %v3767_v10 = vadd.s32 1, %v7689_v55  ;;  %v3825_v29 = vsel %vm3824_vm7, %v3823_v28, 0  ;;  %v7715_v37 = vsel %vm3295_vm13, %v3379_v57, %v7508_v62  ;;  %4726 = vcosq.f32 %v7652_v43 }
 0x617   : > { %v3677_v23 = vsub.s32 32, %v3676_v47  ;;  %v3827_v6 = vand.u32 31, %v3825_v29  ;;  %v7721_v25 = vsel %vm7681_vm5, %v7408_v39, %v3482_v53  ;;  %v3583_v24 = vcvt.s32.f32 %v3576_v1 }
 0x618   : > { %v3661_v8 = vadd.s32 %v7609_v33, %v7616_v34  ;;  %v3682_v2 = vadd.s32 127, %v3681_v12  ;;  %v3764_v48 = vmul.u32 %v7674_v45, %v3748_v31  ;;  %vm3766_vm14 = vc.u32 %v7704_v4, %v7688_v49 }
 0x619   : > { %v3828_v62 = vsub.s32 32, %v3827_v6  ;;  %v8222_v57 = vand.u32 2147483647, %v7700_v63  ;;  %v3584_v15 = vmul.f32 %v3583_v24, %v3581_v27  ;;  %v3768_v20 = vsel %vm3766_vm14, %v3767_v10, %v7689_v55 }
 0x61a   : > { %v3821_v3 = vor.u32 8388608, %v3820_v22  ;;  %v3920_v11 = vand.u32 2139095040, %v7700_v63  ;;  %v3679_v58 = vshrl.u32 %v3661_v8, %v3677_v23  ;;  %v3769_v16 = vadd.s32 %v3768_v20, %v3764_v48 }
 0x61b   : > { %v3831_v44 = vshrl.u32 %v8244_v14, %v3828_v62  ;;  %v3834_v33 = vshrl.u32 %v8367_v32, %v3828_v62  ;;  %v3683_v34 = vshll.u32 %v3682_v2, 23  ;;  %v3830_v45 = vshll.u32 %v8238_v36, %v3827_v6 }
 0x61c   : > { %v3833_v7 = vshll.u32 %v8244_v14, %v3827_v6  ;;  %v3837_v9 = vshrl.u32 %v8368_v13, %v3828_v62  ;;  %v3770_v51 = vadd.s32 536870912, %v3769_v16  ;;  %v3826_v52 = vshrl.u32 %v3825_v29, 5 }
 0x61d   : > { %v3839_v55 = vshll.u32 %v8368_v13, %v3827_v6  ;;  %v3840_v28 = vshrl.u32 %v8369_v46, %v3828_v62  ;;  %v3832_v53 = vor.u32 %v3831_v44, %v3830_v45  ;;  %v3836_v12 = vshll.u32 %v8367_v32, %v3827_v6 }
 0x61e   : > { %v3835_v1 = vor.u32 %v3834_v33, %v3833_v7  ;;  %v3843_v50 = vshrl.u32 %v8370_v38, %v3828_v62  ;;  %vm3503_vm12 = vcmp.lt.s32.totalorder %v7412_v60, 0  ;;  %v3585_v22 = vxor.u32 2147483648, %v3584_v15 }
 0x61f   : > { %v3678_v27 = vshll.u32 %v7660_v5, %v3676_v47  ;;  %v7742_v31 = vshrl.u32 %v3770_v51, 30  ;;  %v3841_v10 = vor.u32 %v3840_v28, %v3839_v55  ;;  %v3684_v23 = vor.u32 4788187, %v3683_v34 }
 0x620   : > { %v3838_v29 = vor.u32 %v3837_v9, %v3836_v12  ;;  %v3842_v24 = vshll.u32 %v8369_v46, %v3827_v6  ;;  %v7745_v8 = vshll.u32 %v3821_v3, 8  ;;  %v7747_v2 = vpop.eup %4726  ;;  %vm3845_vm15 = vcmp.lt.s32.totalorder %v3826_v52, 1 }
 0x621   : > { %v3680_v48 = vor.u32 %v3679_v58, %v3678_v27  ;;  %v3772_v20 = vshll.u32 %v7742_v31, 30  ;;  %vm3848_vm8 = vcmp.lt.s32.totalorder %v3826_v52, 4  ;;  %vm7752_vm9 = vcmp.le.f32.partialorder %v3501_v41, 0.7853982 }
 0x622   : > { %v3844_v47 = vor.u32 %v3843_v50, %v3842_v24  ;;  %v3853_v44 = vsel %vm3845_vm15, %v3832_v53, %v3835_v1  ;;  %v3854_v6 = vsel %vm3848_vm8, %v3841_v10, 920167782  ;;  %v3921_v3 = vshrl.u32 %v3920_v11, 23 }
 0x623   : > { %v7758_v33 = vsub.s32 %v3769_v16, %v3772_v20  ;;  %v3829_v58 = vshrl.u32 %v8238_v36, %v3828_v62  ;;  %vm3847_vm13 = vcmp.lt.s32.totalorder %v3826_v52, 3  ;;  %v7763_v34 = vadd.f32 %v7430_v35, %v7692_v42 }
 0x624   : > { %v3685_v45 = vand.u32 2147483647, %v3684_v23  ;;  %vm3846_vm4 = vcmp.lt.s32.totalorder %v3826_v52, 2  ;;  %v3850_v41 = vsel %vm3848_vm8, %v3838_v29, 2102212464  ;;  %v3855_v7 = vsel %vm3847_vm13, %v3838_v29, %v3854_v6 }
 0x625   : > { %v3687_v9 = vcvt.s32.f32 %v3680_v48  ;;  %v3775_v51 = vsub.s32 0, %v7758_v33  ;;  %v3856_v11 = vsel %vm3846_vm4, %v3853_v44, %v3855_v7  ;;  %v3857_v16 = vsel %vm3845_vm15, %v3835_v1, %v3838_v29 }
 0x626   : > { %v3849_v62 = vsel %vm3845_vm15, %v3829_v58, %v3832_v53  ;;  %v3858_v55 = vsel %vm3848_vm8, %v3844_v47, 1326507024  ;;  %v7773_v35 = vmul.u32.u64.low %v7745_v8, %v3856_v11  ;;  %v7774_v42 = vmul.u32.u64.high %v7745_v8, %v3856_v11, %v7773_v35 }
 0x627   : > { %vm3607_vm1 = vcmp.lt.s32.totalorder %v7423_v40, 0  ;;  %v4404_v28 = vmin.u32 %v3775_v51, %v7758_v33  ;;  %v3851_v12 = vsel %vm3847_vm13, %v3835_v1, %v3850_v41  ;;  %v3859_v50 = vsel %vm3847_vm13, %v3841_v10, %v3858_v55 }
 0x628   : > { %v4411_v27 = vadd.s32 4294967169, %v3921_v3  ;;  %v3586_v23 = vsel %vm3503_vm12, %v3585_v22, %v3584_v15  ;;  %v3688_v53 = vmul.f32 %v3687_v9, %v3685_v45  ;;  %v3860_v29 = vsel %vm3846_vm4, %v3857_v16, %v3859_v50 }
 0x629   : > { %v4024_v24 = vand.u32 2139095040, %v7763_v34  ;;  %v3777_v48 = vclz %v4404_v28  ;;  %v7786_v20 = vmul.u32.u64.low %v7745_v8, %v3860_v29  ;;  %v7787_v47 = vmul.u32.u64.high %v7745_v8, %v3860_v29, %v7786_v20 }
 0x62a   : > { %v3927_v44 = vadd.s32 1, %v4411_v27  ;;  %4728 = vsinq.f32 %v7652_v43  ;;  %v3587_v1 = vsub.s32 4, %v7592_v0  ;;  %v3852_v10 = vsel %vm3846_vm4, %v3849_v62, %v3851_v12 }
 0x62b   : > { %v3871_v6 = vadd.s32 1, %v7774_v42  ;;  %4730 = vcosq.f32 %v7721_v25  ;;  %v7797_v15 = vsel %vm7752_vm9, %v7412_v60, %v3586_v23  ;;  %vm7801_vm6 = vcmp.le.f32.partialorder %v3605_v59, 0.7853982 }
 0x62c   : > { %v3924_v43 = vand.u32 8388607, %v8222_v57  ;;  %vm3928_vm10 = vcmp.gt.s32.totalorder %v3927_v44, 0  ;;  %v3689_v52 = vxor.u32 2147483648, %v3688_v53  ;;  %v4405_v3 = vadd.s32 4294967294, %v3777_v48 }
 0x62d   : > { %v3929_v58 = vsel %vm3928_vm10, %v3927_v44, 0  ;;  %v4025_v45 = vshrl.u32 %v4024_v24, 23  ;;  %4732 = vsinq.f32 %v7721_v25  ;;  %v3868_v7 = vmul.u32 %v7745_v8, %v3852_v10 }
 0x62e   : > { %vm3870_vm0 = vc.u32 %v7787_v47, %v7773_v35  ;;  %v7817_v59 = vsel %vm3503_vm12, %v3587_v1, %v7592_v0  ;;  %4734 = vcosq.f32 %v7797_v15  ;;  %v3931_v51 = vand.u32 31, %v3929_v58 }
 0x62f   : > { %v3872_v9 = vsel %vm3870_vm0, %v3871_v6, %v7774_v42  ;;  %v7823_v11 = vadd.s32 %v7688_v49, %v7704_v4  ;;  %v3925_v16 = vor.u32 8388608, %v3924_v43  ;;  %v3483_v8 = vsub.s32 4, %v7535_v61 }
 0x630   : > { %v3873_v25 = vadd.s32 %v3872_v9, %v3868_v7  ;;  %v3690_v62 = vsel %vm3607_vm1, %v3689_v52, %v3688_v53  ;;  %vm4406_vm2 = vcmp.lt.s32.totalorder %v4405_v3, 0  ;;  %v3932_v55 = vsub.s32 32, %v3931_v51 }
 0x631   : > { %v4415_v0 = vadd.s32 4294967169, %v4025_v45  ;;  %v3930_v12 = vshrl.u32 %v3929_v58, 5  ;;  %v3934_v50 = vshll.u32 %v8238_v36, %v3931_v51  ;;  %v3937_v42 = vshll.u32 %v8244_v14, %v3931_v51 }
 0x632   : > { %v3874_v28 = vadd.s32 536870912, %v3873_v25  ;;  %v3935_v27 = vshrl.u32 %v8244_v14, %v3932_v55  ;;  %v3938_v49 = vshrl.u32 %v8367_v32, %v3932_v55  ;;  %v3940_v4 = vshll.u32 %v8367_v32, %v3931_v51 }
 0x633   : > { %v3941_v23 = vshrl.u32 %v8368_v13, %v3932_v55  ;;  %v7834_v29 = vsel %vm4406_vm2, 0, %v4405_v3  ;;  %v3943_v24 = vshll.u32 %v8368_v13, %v3931_v51  ;;  %v3944_v48 = vshrl.u32 %v8369_v46, %v3932_v55 }
 0x634   : > { %v7836_v53 = vshrl.u32 %v3874_v28, 30  ;;  %v7840_v20 = vpop.eup %4728  ;;  %v3693_v44 = vsel %vm7801_vm6, %v7423_v40, %v3690_v62  ;;  %v3936_v1 = vor.u32 %v3935_v27, %v3934_v50  ;;  %v3939_v10 = vor.u32 %v3938_v49, %v3937_v42 }
 0x635   : > { %v3942_v6 = vor.u32 %v3941_v23, %v3940_v4  ;;  %v7845_v43 = vpop.eup %4730  ;;  %v3945_v3 = vor.u32 %v3944_v48, %v3943_v24  ;;  %v3965_v58 = vshll.u32 %v3925_v16, 8  ;;  %v3781_v7 = vsub.s32 32, %v7834_v29 }
 0x636   : > { %v3876_v52 = vshll.u32 %v7836_v53, 30  ;;  %v3946_v9 = vshll.u32 %v8369_v46, %v3931_v51  ;;  %v3947_v28 = vshrl.u32 %v8370_v38, %v3932_v55  ;;  %v4031_v57 = vadd.s32 1, %v4415_v0 }
 0x637   : > { %v7852_v56 = vpop.eup %4732  ;;  %vm3949_vm7 = vcmp.lt.s32.totalorder %v3930_v12, 1  ;;  %vm3951_vm14 = vcmp.lt.s32.totalorder %v3930_v12, 3  ;;  %vm3952_vm12 = vcmp.lt.s32.totalorder %v3930_v12, 4  ;;  %v3933_v51 = vshrl.u32 %v8238_v36, %v3932_v55 }
 0x638   : > { %v7854_v62 = vsub.s32 %v3873_v25, %v3876_v52  ;;  %v7856_v50 = vpop.eup %4734  ;;  %v3948_v42 = vor.u32 %v3947_v28, %v3946_v9  ;;  %v3954_v16 = vsel %vm3952_vm12, %v3942_v6, 2102212464  ;;  %v3957_v27 = vsel %vm3949_vm7, %v3936_v1, %v3939_v10 }
 0x639   : > { %v3958_v49 = vsel %vm3952_vm12, %v3945_v3, 920167782  ;;  %vm3950_vm15 = vcmp.lt.s32.totalorder %v3930_v12, 2  ;;  %v3785_v25 = vsub.s32 4294967266, %v7834_v29  ;;  %v3961_v24 = vsel %vm3949_vm7, %v3939_v10, %v3942_v6 }
 0x63a   : > { %v3879_v4 = vsub.s32 0, %v7854_v62  ;;  %v3959_v0 = vsel %vm3951_vm14, %v3942_v6, %v3958_v49  ;;  %v3962_v48 = vsel %vm3952_vm12, %v3948_v42, 1326507024  ;;  %v3953_v9 = vsel %vm3949_vm7, %v3933_v51, %v3936_v1 }
 0x63b   : > { %v3960_v23 = vsel %vm3950_vm15, %v3957_v27, %v3959_v0  ;;  %v3955_v28 = vsel %vm3951_vm14, %v3939_v10, %v3954_v16  ;;  %v3963_v30 = vsel %vm3951_vm14, %v3945_v3, %v3962_v48  ;;  %vm4032_vm8 = vcmp.gt.s32.totalorder %v4031_v57, 0 }
 0x63c   : > { %v4408_v52 = vmin.u32 %v3879_v4, %v7854_v62  ;;  %v3964_v55 = vsel %vm3950_vm15, %v3961_v24, %v3963_v30  ;;  %v7870_v41 = vmul.u32.u64.low %v3965_v58, %v3960_v23  ;;  %v7871_v45 = vmul.u32.u64.high %v3965_v58, %v3960_v23, %v7870_v41 }
 0x63d   : > { %v7874_v27 = vmul.u32.u64.low %v3965_v58, %v3964_v55  ;;  %v7875_v0 = vmul.u32.u64.high %v3965_v58, %v3964_v55, %v7874_v27  ;;  %v3484_v6 = vsel %vm3399_vm11, %v3483_v8, %v7535_v61  ;;  %v3590_v1 = vsel %vm7752_vm9, 0, %v7817_v59 }
 0x63e   : > { %v3881_v49 = vclz %v4408_v52  ;;  %4736 = vsinq.f32 %v7797_v15  ;;  %v3956_v30 = vsel %vm3950_vm15, %v3953_v9, %v3955_v28  ;;  %v4033_v10 = vsel %vm4032_vm8, %v4031_v57, 0 }
 0x63f   : > { %v3783_v3 = vshrl.u32 %v7823_v11, %v3781_v7  ;;  %v3786_v42 = vadd.s32 127, %v3785_v25  ;;  %v8379_v16 = vand.u32 2147483647, %v7763_v34  ;;  %v4035_v51 = vand.u32 31, %v4033_v10 }
 0x640   : > { %4738 = vcosq.f32 %v3693_v44  ;;  %v4409_v23 = vadd.s32 4294967294, %v3881_v49  ;;  %v3975_v61 = vadd.s32 1, %v7871_v45  ;;  %v3486_v5 = vsel %vm7681_vm5, 0, %v3484_v6 }
 0x641   : > { %v4028_v4 = vand.u32 8388607, %v8379_v16  ;;  %v3782_v15 = vshll.u32 %v7758_v33, %v7834_v29  ;;  %v3972_v59 = vmul.u32 %v3965_v58, %v3956_v30  ;;  %vm3974_vm11 = vc.u32 %v7875_v0, %v7870_v41 }
 0x642   : > { %v4036_v57 = vsub.s32 32, %v4035_v51  ;;  %v8380_v11 = vsel %vm7642_vm3, 0, %v7715_v37  ;;  %v7901_v12 = vadd.s32 3, %v3590_v1  ;;  %4740 = vsinq.f32 %v3693_v44 }
 0x643   : > { %v7899_v8 = vadd.s32 3, %v8380_v11  ;;  %v3976_v17 = vsel %vm3974_vm11, %v3975_v61, %v7871_v45  ;;  %v7904_v7 = vor.u32 %v3783_v3, %v3782_v15  ;;  %v3787_v25 = vshll.u32 %v3786_v42, 23 }
 0x644   : > { %v3977_v33 = vadd.s32 %v3976_v17, %v3972_v59  ;;  %v4029_v29 = vor.u32 8388608, %v4028_v4  ;;  %vm4410_vm5 = vcmp.lt.s32.totalorder %v4409_v23, 0  ;;  %v4039_v58 = vshrl.u32 %v8244_v14, %v4036_v57 }
 0x645   : > { %v4042_v24 = vshrl.u32 %v8367_v32, %v4036_v57  ;;  %v3490_v26 = vadd.s32 3, %v3486_v5  ;;  %v4038_v37 = vshll.u32 %v8238_v36, %v4035_v51  ;;  %v4041_v52 = vshll.u32 %v8244_v14, %v4035_v51 }
 0x646   : > { %v3978_v48 = vadd.s32 536870912, %v3977_v33  ;;  %v4045_v44 = vshrl.u32 %v8368_v13, %v4036_v57  ;;  %v4034_v9 = vshrl.u32 %v4033_v10, 5  ;;  %v4044_v45 = vshll.u32 %v8367_v32, %v4035_v51 }
 0x647   : > { %v4047_v28 = vshll.u32 %v8368_v13, %v4035_v51  ;;  %v4048_v55 = vshrl.u32 %v8369_v46, %v4036_v57  ;;  %v7914_v49 = vsel %vm4410_vm5, 0, %v4409_v23  ;;  %v4040_v6 = vor.u32 %v4039_v58, %v4038_v37 }
 0x648   : > { %v7916_v27 = vshrl.u32 %v3978_v48, 30  ;;  %v4043_v1 = vor.u32 %v4042_v24, %v4041_v52  ;;  %v7918_v30 = vpop.eup %4736  ;;  %v4046_v3 = vor.u32 %v4045_v44, %v4044_v45  ;;  %v4050_v14 = vshll.u32 %v8369_v46, %v4035_v51 }
 0x649   : > { %v4049_v42 = vor.u32 %v4048_v55, %v4047_v28  ;;  %v4051_v10 = vshrl.u32 %v8370_v38, %v4036_v57  ;;  %v7922_v16 = vor.u32 4788187, %v3787_v25  ;;  %v3791_v32 = vcvt.s32.f32 %v7904_v7 }
 0x64a   : > { %v3869_v13 = vadd.s32 %v7773_v35, %v7787_v47  ;;  %v3980_v4 = vshll.u32 %v7916_v27, 30  ;;  %v7928_v23 = vpop.eup %4738  ;;  %v3889_v61 = vsub.s32 4294967266, %v7914_v49  ;;  %v4069_v15 = vshll.u32 %v4029_v29, 8 }
 0x64b   : > { %v4052_v5 = vor.u32 %v4051_v10, %v4050_v14  ;;  %v3491_v59 = vand.u32 3, %v3490_v26  ;;  %v4037_v46 = vshrl.u32 %v8238_v36, %v4036_v57  ;;  %vm4053_vm3 = vcmp.lt.s32.totalorder %v4034_v9, 1 }
 0x64c   : > { %v7931_v11 = vsub.s32 %v3977_v33, %v3980_v4  ;;  %vm4056_vm9 = vcmp.lt.s32.totalorder %v4034_v9, 4  ;;  %v7934_v38 = vpop.eup %4740  ;;  %vm4055_vm13 = vcmp.lt.s32.totalorder %v4034_v9, 3  ;;  %v4061_v35 = vsel %vm4053_vm3, %v4040_v6, %v4043_v1 }
 0x64d   : > { %v4058_v51 = vsel %vm4056_vm9, %v4046_v3, 2102212464  ;;  %v4062_v47 = vsel %vm4056_vm9, %v4049_v42, 920167782  ;;  %v3885_v17 = vsub.s32 32, %v7914_v49  ;;  %v4057_v25 = vsel %vm4053_vm3, %v4037_v46, %v4040_v6 }
 0x64e   : > { %v3983_v7 = vsub.s32 0, %v7931_v11  ;;  %v4059_v58 = vsel %vm4055_vm13, %v4043_v1, %v4058_v51  ;;  %vm4054_vm4 = vcmp.lt.s32.totalorder %v4034_v9, 2  ;;  %v4063_v29 = vsel %vm4055_vm13, %v4046_v3, %v4062_v47 }
 0x64f   : > { %v4065_v33 = vsel %vm4053_vm3, %v4043_v1, %v4046_v3  ;;  %v4066_v24 = vsel %vm4056_vm9, %v4052_v5, 1326507024  ;;  %v3890_v26 = vadd.s32 127, %v3889_v61  ;;  %v4064_v57 = vsel %vm4054_vm4, %v4061_v35, %v4063_v29 }
 0x650   : > { %v4412_v36 = vmin.u32 %v3983_v7, %v7931_v11  ;;  %v4067_v48 = vsel %vm4055_vm13, %v4049_v42, %v4066_v24  ;;  %v4060_v37 = vsel %vm4054_vm4, %v4057_v25, %v4059_v58  ;;  %v3494_v9 = vxor.u32 2147483648, %v7852_v56 }
 0x651   : > { %v4068_v52 = vsel %vm4054_vm4, %v4065_v33, %v4067_v48  ;;  %v7939_v44 = vmul.u32.u64.low %v4069_v15, %v4064_v57  ;;  %v7940_v45 = vmul.u32.u64.high %v4069_v15, %v4064_v57, %v7939_v44  ;;  %v3789_v6 = vand.u32 2147483647, %v7922_v16 }
 0x652   : > { %v3985_v28 = vclz %v4412_v36  ;;  %v7943_v55 = vmul.u32.u64.low %v4069_v15, %v4068_v52  ;;  %v7944_v14 = vmul.u32.u64.high %v4069_v15, %v4068_v52, %v7943_v55  ;;  %v3886_v1 = vshll.u32 %v7854_v62, %v7914_v49 }
 0x653   : > { %v3887_v3 = vshrl.u32 %v3869_v13, %v3885_v17  ;;  %v3973_v42 = vadd.s32 %v7870_v41, %v7875_v0  ;;  %v3891_v10 = vshll.u32 %v3890_v26, 23  ;;  %v4076_v61 = vmul.u32 %v4069_v15, %v4060_v37 }
 0x654   : > { %v4413_v4 = vadd.s32 4294967294, %v3985_v28  ;;  %vm3489_vm10 = vweird.f32 %v7408_v39  ;;  %v3497_v5 = vxor.u32 2147483648, %v7845_v43  ;;  %v4079_v46 = vadd.s32 1, %v7940_v45 }
 0x655   : > { %vm3493_vm0 = vcmp.eq.s32.totalorder %v3491_v59, 0  ;;  %vm3496_vm2 = vcmp.eq.s32.totalorder %v3491_v59, 2  ;;  %v3691_v16 = vsub.s32 4, %v7646_v54  ;;  %vm4078_vm14 = vc.u32 %v7944_v14, %v7939_v44 }
 0x656   : > { %vm4414_vm7 = vcmp.lt.s32.totalorder %v4413_v4, 0  ;;  %v3495_v62 = vsel %vm3493_vm0, %v7845_v43, %v3494_v9  ;;  %v3498_v41 = vsel %vm3496_vm2, %v3497_v5, %v7852_v56  ;;  %v3888_v0 = vor.u32 %v3887_v3, %v3886_v1 }
 0x657   : > { %v3988_v49 = vsel %vm4414_vm7, 0, %v4413_v4  ;;  %v4080_v13 = vsel %vm4078_vm14, %v4079_v46, %v7940_v45  ;;  %v3692_v15 = vsel %vm3607_vm1, %v3691_v16, %v7646_v54  ;;  %vm3492_vm12 = vcmp.lt.s32.totalorder %v3491_v59, 2 }
 0x658   : > { %v3989_v51 = vsub.s32 32, %v3988_v49  ;;  %v3993_v35 = vsub.s32 4294967266, %v3988_v49  ;;  %v4081_v47 = vadd.s32 %v4080_v13, %v4076_v61  ;;  %v7964_v17 = vmul.f32 %v3791_v32, %v3789_v6 }
 0x659   : > { %v3892_v7 = vor.u32 4788187, %v3891_v10  ;;  %v3499_v25 = vsel %vm3492_vm12, %v3495_v62, %v3498_v41  ;;  %v3694_v43 = vsel %vm7801_vm6, 0, %v3692_v15  ;;  %v3895_v24 = vcvt.s32.f32 %v3888_v0 }
 0x65a   : > { %v3991_v56 = vshrl.u32 %v3973_v42, %v3989_v51  ;;  %v3994_v58 = vadd.s32 127, %v3993_v35  ;;  %v4082_v29 = vadd.s32 536870912, %v4081_v47  ;;  %v3698_v33 = vadd.s32 3, %v3694_v43 }
 0x65b   : > { %v3990_v26 = vshll.u32 %v7931_v11, %v3988_v49  ;;  %v3702_v54 = vxor.u32 2147483648, %v7934_v38  ;;  %v3387_v36 = vand.u32 3, %v7899_v8  ;;  %v3705_v48 = vxor.u32 2147483648, %v7928_v23 }
 0x65c   : > { %v3995_v57 = vshll.u32 %v3994_v58, 23  ;;  %v7971_v59 = vshrl.u32 %v4082_v29, 30  ;;  %v3699_v32 = vand.u32 3, %v3698_v33  ;;  %v3893_v37 = vand.u32 2147483647, %v3892_v7 }
 0x65d   : > { %v3500_v22 = vsel %vm3489_vm10, nan, %v3499_v25  ;;  %vm3697_vm1 = vweird.f32 %v7423_v40  ;;  %v3390_v52 = vxor.u32 2147483648, %v7840_v20  ;;  %v3992_v45 = vor.u32 %v3991_v56, %v3990_v26 }
 0x65e   : > { %v3996_v11 = vor.u32 4788187, %v3995_v57  ;;  %v4084_v28 = vshll.u32 %v7971_v59, 30  ;;  %v3393_v8 = vxor.u32 2147483648, %v7747_v2  ;;  %vm3701_vm6 = vcmp.eq.s32.totalorder %v3699_v32, 0 }
 0x65f   : > { %vm3704_vm15 = vcmp.eq.s32.totalorder %v3699_v32, 2  ;;  %vm3389_vm8 = vcmp.eq.s32.totalorder %v3387_v36, 0  ;;  %vm3392_vm11 = vcmp.eq.s32.totalorder %v3387_v36, 2  ;;  %vm3700_vm5 = vcmp.lt.s32.totalorder %v3699_v32, 2 }
 0x660   : > { %v4085_v55 = vsub.s32 %v4081_v47, %v4084_v28  ;;  %v3703_v9 = vsel %vm3701_vm6, %v7928_v23, %v3702_v54  ;;  %v3706_v39 = vsel %vm3704_vm15, %v3705_v48, %v7934_v38  ;;  %v3997_v6 = vand.u32 2147483647, %v3996_v11 }
 0x661   : > { %v3707_v1 = vsel %vm3700_vm5, %v3703_v9, %v3706_v39  ;;  %v3595_v3 = vand.u32 3, %v7901_v12  ;;  %v3598_v42 = vxor.u32 2147483648, %v7918_v30  ;;  %v3391_v61 = vsel %vm3389_vm8, %v7747_v2, %v3390_v52 }
 0x662   : > { %v4087_v10 = vsub.s32 0, %v4085_v55  ;;  %v3708_v4 = vsel %vm3697_vm1, nan, %v3707_v1  ;;  %v3394_v5 = vsel %vm3392_vm11, %v3393_v8, %v7840_v20  ;;  %v3896_v46 = vmul.f32 %v3895_v24, %v3893_v37 }
 0x663   : > { %v3999_v16 = vcvt.s32.f32 %v3992_v45  ;;  %v4127_v62 = vpack.c.bf16 %v3708_v4, %v3500_v22  ;;  %vm3597_vm3 = vcmp.eq.s32.totalorder %v3595_v3, 0  ;;  %vm3388_vm9 = vcmp.lt.s32.totalorder %v3387_v36, 2 }
 0x664   : > { %v4416_v23 = vmin.u32 %v4087_v10, %v4085_v55  ;;  %v3599_v38 = vsel %vm3597_vm3, %v7856_v50, %v3598_v42  ;;  %v3601_v12 = vxor.u32 2147483648, %v7856_v50  ;;  %v3395_v0 = vsel %vm3388_vm9, %v3391_v61, %v3394_v5 }
 0x665   : > { %v4000_v41 = vmul.f32 %v3999_v16, %v3997_v6  ;;  %4139 = vmatprep.subr.bf16.mxu1 %v4127_v62  ;;  %vm3600_vm13 = vcmp.eq.s32.totalorder %v3595_v3, 2  ;;  %vm3596_vm4 = vcmp.lt.s32.totalorder %v3595_v3, 2  ;;  %v3793_v20 = vxor.u32 2147483648, %v7964_v17 }
 0x666   : > { %v4089_v40 = vclz %v4416_v23  ;;  %v3602_v2 = vsel %vm3600_vm13, %v3601_v12, %v7918_v30  ;;  %vm3385_vm10 = vweird.f32 %v7406_v18  ;;  %vm3593_vm0 = vweird.f32 %v7412_v60 }
 0x667   : > { %v3603_v49 = vsel %vm3596_vm4, %v3599_v38, %v3602_v2  ;;  %v3897_v13 = vxor.u32 2147483648, %v3896_v46  ;;  %v3396_v51 = vsel %vm3385_vm10, nan, %v3395_v0  ;;  %v4001_v50 = vxor.u32 2147483648, %v4000_v41 }
 0x668   : > { %v4417_v15 = vadd.s32 4294967294, %v4089_v40  ;;  %v3604_v35 = vsel %vm3593_vm0, nan, %v3603_v49  ;;  %vm3711_vm2 = vcmp.lt.s32.totalorder %v7576_v21, 0  ;;  %vm3815_vm14 = vcmp.lt.s32.totalorder %v7627_v19, 0 }
 0x669   : > { %v4126_v47 = vpack.c.bf16 %v3604_v35, %v3396_v51  ;;  %v3794_v30 = vsel %vm3711_vm2, %v3793_v20, %v7964_v17  ;;  %vm3919_vm12 = vcmp.lt.s32.totalorder %v7700_v63, 0  ;;  %v3898_v60 = vsel %vm3815_vm14, %v3897_v13, %v3896_v46 }
 0x66a   : > { %vm4418_vm7 = vcmp.lt.s32.totalorder %v4417_v15, 0  ;;  %v4077_v7 = vadd.s32 %v7939_v44, %v7944_v14  ;;  %v8381_v56 = vand.u32 2147483647, %v7576_v21  ;;  %v8384_v17 = vand.u32 2147483647, %v7627_v19 }
 0x66b   : > { %v4092_v18 = vsel %vm4418_vm7, 0, %v4417_v15  ;;  %4140 = vmatpush1.bf16.msra.mxu1 %v4126_v47  ;;  %v4002_v33 = vsel %vm3919_vm12, %v4001_v50, %v4000_v41  ;;  %v8387_v36 = vand.u32 2147483647, %v7700_v63  ;;  %v4003_v22 = vsub.s32 4, %v7916_v27 }
 0x66c   : > { %v4093_v25 = vsub.s32 32, %v4092_v18  ;;  %v4097_v43 = vsub.s32 4294967266, %v4092_v18  ;;  %vm8006_vm1 = vcmp.le.f32.partialorder %v8381_v56, 0.7853982  ;;  %vm8012_vm6 = vcmp.le.f32.partialorder %v8384_v17, 0.7853982 }
 0x66d   : > { %v3797_v44 = vsel %vm8006_vm1, %v7576_v21, %v3794_v30  ;;  %v4094_v14 = vshll.u32 %v4085_v55, %v4092_v18  ;;  %v3901_v54 = vsel %vm8012_vm6, %v7627_v19, %v3898_v60  ;;  %vm8026_vm15 = vcmp.le.f32.partialorder %v8387_v36, 0.7853982 }
 0x66e   : > { %v4095_v24 = vshrl.u32 %v4077_v7, %v4093_v25  ;;  %v4098_v26 = vadd.s32 127, %v4097_v43  ;;  %v4005_v32 = vsel %vm8026_vm15, %v7700_v63, %v4002_v33  ;;  %4742 = vcosq.f32 %v3797_v44 }
 0x66f   : > { %4744 = vcosq.f32 %v3901_v54  ;;  %v3899_v45 = vsub.s32 4, %v7836_v53  ;;  %v3795_v11 = vsub.s32 4, %v7742_v31  ;;  %v4004_v55 = vsel %vm3919_vm12, %v4003_v22, %v7916_v27 }
 0x670   : > { %v4096_v48 = vor.u32 %v4095_v24, %v4094_v14  ;;  %v4099_v37 = vshll.u32 %v4098_v26, 23  ;;  %4746 = vcosq.f32 %v4005_v32  ;;  %v4107_v39 = vsub.s32 4, %v7971_v59 }
 0x671   : > { %4748 = vsinq.f32 %v4005_v32  ;;  %v3900_v6 = vsel %vm3815_vm14, %v3899_v45, %v7836_v53  ;;  %v3796_v1 = vsel %vm3711_vm2, %v3795_v11, %v7742_v31  ;;  %v4006_v42 = vsel %vm8026_vm15, 0, %v4004_v55 }
 0x672   : > { %v4100_v52 = vor.u32 4788187, %v4099_v37  ;;  %v4103_v8 = vcvt.s32.f32 %v4096_v48  ;;  %4750 = vsinq.f32 %v3901_v54  ;;  %vm4023_vm8 = vcmp.lt.s32.totalorder %v7763_v34, 0 }
 0x673   : > { %4752 = vsinq.f32 %v3797_v44  ;;  %v8390_v10 = vand.u32 2147483647, %v7763_v34  ;;  %v3902_v53 = vsel %vm8012_vm6, 0, %v3900_v6  ;;  %v4108_v61 = vsel %vm4023_vm8, %v4107_v39, %v7971_v59 }
 0x674   : > { %v4101_v28 = vand.u32 2147483647, %v4100_v52  ;;  %v3798_v31 = vsel %vm8006_vm1, 0, %v3796_v1  ;;  %v4010_v62 = vadd.s32 3, %v4006_v42  ;;  %v3906_v38 = vadd.s32 3, %v3902_v53 }
 0x675   : > { %vm8051_vm11 = vcmp.le.f32.partialorder %v8390_v10, 0.7853982  ;;  %v3802_v0 = vadd.s32 3, %v3798_v31  ;;  %vm4009_vm6 = vweird.f32 %v7700_v63  ;;  %vm3905_vm15 = vweird.f32 %v7627_v19  ;;  %v4125_v63 = vld [vmem:[%s8133_s8] sm:$0xf]  ;;  %v4134_v19 = vpop.permute.xlu0 %4133 }
 0x676   : > { %v4104_v9 = vmul.f32 %v4103_v8, %v4101_v28  ;;  %v4110_v12 = vsel %vm8051_vm11, 0, %v4108_v61  ;;  %v4011_v20 = vand.u32 3, %v4010_v62  ;;  %v3907_v49 = vand.u32 3, %v3906_v38 }
 0x677   : > { %v4114_v2 = vadd.s32 3, %v4110_v12  ;;  %v3803_v50 = vand.u32 3, %v3802_v0 }
 0x678   : > { %v4105_v3 = vxor.u32 2147483648, %v4104_v9  ;;  %v4743_v5 = vpop.eup %4742  ;;  %vm4013_vm5 = vcmp.eq.s32.totalorder %v4011_v20, 0  ;;  %vm4016_vm3 = vcmp.eq.s32.totalorder %v4011_v20, 2  ;;  %vm3909_vm9 = vcmp.eq.s32.totalorder %v3907_v49, 0 }
 0x679   : > { %v4745_v16 = vpop.eup %4744  ;;  %v3809_v30 = vxor.u32 2147483648, %v4743_v5  ;;  %v4115_v18 = vand.u32 3, %v4114_v2  ;;  %vm3912_vm13 = vcmp.eq.s32.totalorder %v3907_v49, 2  ;;  %vm3805_vm4 = vcmp.eq.s32.totalorder %v3803_v50, 0 }
 0x67a   : > { %v4106_v4 = vsel %vm4023_vm8, %v4105_v3, %v4104_v9  ;;  %v4747_v23 = vpop.eup %4746  ;;  %v3913_v35 = vxor.u32 2147483648, %v4745_v16  ;;  %vm3808_vm10 = vcmp.eq.s32.totalorder %v3803_v50, 2  ;;  %vm4012_vm0 = vcmp.lt.s32.totalorder %v4011_v20, 2 }
 0x67b   : > { %v4109_v46 = vsel %vm8051_vm11, %v7763_v34, %v4106_v4  ;;  %v4749_v41 = vpop.eup %4748  ;;  %v4017_v15 = vxor.u32 2147483648, %v4747_v23  ;;  %vm3908_vm2 = vcmp.lt.s32.totalorder %v3907_v49, 2  ;;  %vm4120_vm7 = vcmp.eq.s32.totalorder %v4115_v18, 2 }
 0x67c   : > { %4754 = vcosq.f32 %v4109_v46  ;;  %v4751_v59 = vpop.eup %4750  ;;  %v4014_v13 = vxor.u32 2147483648, %v4749_v41  ;;  %vm4117_vm14 = vcmp.eq.s32.totalorder %v4115_v18, 0  ;;  %vm3804_vm12 = vcmp.lt.s32.totalorder %v3803_v50, 2 }
 0x67d   : > { %4756 = vsinq.f32 %v4109_v46  ;;  %v4753_v40 = vpop.eup %4752  ;;  %v3910_v51 = vxor.u32 2147483648, %v4751_v59  ;;  %v4018_v7 = vsel %vm4016_vm3, %v4017_v15, %v4749_v41  ;;  %v3914_v56 = vsel %vm3912_vm13, %v3913_v35, %v4751_v59 }
 0x67e   : > { %v3806_v47 = vxor.u32 2147483648, %v4753_v40  ;;  %v4015_v60 = vsel %vm4013_vm5, %v4747_v23, %v4014_v13  ;;  %v3810_v33 = vsel %vm3808_vm10, %v3809_v30, %v4753_v40  ;;  %vm4116_vm1 = vcmp.lt.s32.totalorder %v4115_v18, 2 }
 0x67f   : > { %v3911_v43 = vsel %vm3909_vm9, %v4745_v16, %v3910_v51  ;;  %v4019_v14 = vsel %vm4012_vm0, %v4015_v60, %v4018_v7  ;;  %vm4113_vm8 = vweird.f32 %v7763_v34  ;;  %vm3801_vm11 = vweird.f32 %v7576_v21 }
 0x680   : > { %v3807_v29 = vsel %vm3805_vm4, %v4743_v5, %v3806_v47  ;;  %v3915_v24 = vsel %vm3908_vm2, %v3911_v43, %v3914_v56  ;;  %v4020_v32 = vsel %vm4009_vm6, nan, %v4019_v14  ;;  %vm8393_vm5 = vcmask 261120  }
 0x681   : > { %v3811_v36 = vsel %vm3804_vm12, %v3807_v29, %v3810_v33  ;;  %v3916_v48 = vsel %vm3905_vm15, nan, %v3915_v24 }
 0x682   : > { %v3812_v52 = vsel %vm3801_vm11, nan, %v3811_v36 }
 0x683   : > { %v4128_v45 = vpack.c.bf16 %v4020_v32, %v3812_v52 }
 0x686   : > { %v4755_v25 = vpop.eup %4754 }
 0x687   : > { %v4757_v58 = vpop.eup %4756  ;;  %v4121_v17 = vxor.u32 2147483648, %v4755_v25 }
 0x688   : > { %v4118_v44 = vxor.u32 2147483648, %v4757_v58 }
 0x689   : > { %v4122_v26 = vsel %vm4120_vm7, %v4121_v17, %v4757_v58 }
 0x68a   : > { %v4119_v54 = vsel %vm4117_vm14, %v4755_v25, %v4118_v44 }
 0x68b   : > { %v4123_v57 = vsel %vm4116_vm1, %v4119_v54, %v4122_v26 }
 0x68c   : > { %v4124_v37 = vsel %vm4113_vm8, nan, %v4123_v57 }
 0x68d   : > { %v4129_v22 = vpack.c.bf16 %v4124_v37, %v3916_v48 }
 0x68f   : > { %4141 = vmatprep.subr.bf16.mxu1 %v4129_v22 }
 0x690   : > { %4142 = vmatpush1.bf16.msra.mxu1 %v4128_v45 }
 0x693   : > { %4419 = vmatmul.mubr.msk.bf16.vlgmr.msra.gmra.mrb[8].mxu1 %vm8393_vm5, %v4125_v63 }
 0x766   : > { %v4173_v34 = vpop.f32.mrb[8].mxu1 }
 0x767   : > { %v4174_v11 = vadd.f32 %v4173_v34, %v4134_v19  ;;  %v4175_v28 = vpop.f32.mrb[9].mxu1 }
 0x768   : > { %v4176_v8 = vadd.f32 %v4175_v28, %v4134_v19  ;;  %v4177_v55 = vpop.f32.mrb[10].mxu1 }
 0x769   : > { %4758 = vtanh.f32 %v4174_v11  ;;  %v4178_v21 = vpop.f32.mrb[11].mxu1 }
 0x76a   : > { %4760 = vtanh.f32 %v4176_v8 }
 0x773   : > { %v4759_v9 = vpop.eup %4758 }
 0x774   : > { %v4761_v39 = vpop.eup %4760  ;;  %4182 = vst [vmem:[%s366_s19] sm:$0xff] %v4759_v9 }
 0x775   : > { %4183 = vst [vmem:[%s366_s19 + $0x8] sm:$0xff] %v4761_v39 }
 0x776   : > { %4775 = shalt.err (!%p4772_p5)
}
 0x777   : > { %s4776_s11 = scalar_lea.hbm %s8078_s27, 256  ;;  %s4780_s24 = scalar_lea.hbm %s8135_s10, 512 }
 0x778   : > { %p4777_p6 = scmp.ne.s32.totalorder %s8078_s27, %s4776_s11  ;;  %p4781_p10 = scmp.lt.u32.totalorder %s8078_s27, %s8135_s10 }
 0x779   : > { %p4782_p11 = scmp.lt.u32.totalorder %s4780_s24, %s4776_s11  ;;  %p4784_p13 = scmp.lt.u32.totalorder %s4776_s11, %s8078_s27 }
 0x77a   : > { %p4778_p7 = pnand %p4777_p6, %p4946_p4 }
 0x77b   : > { %p4783_p12 = por %p4782_p11, %p4781_p10 }
 0x77c   : > { %p4779_p9 = pneg %p4778_p7 }
 0x77d   : > { %p4785_p0 = por %p4784_p13, %p4783_p12 }
 0x77f   : > { %p4786_p1 = pnand %p4785_p0, %p4779_p9 }
 0x781   : > { %4789 = shalt.err (!%p4786_p1)
}
 0x782   : > { %4555 = dma.vmem_to_hbm [thread:$0]  (%p4946_p4), %s8080_s20, 256, %s8078_s27, %s4185_s28  }
 0x783 PF: > { %p4561_p2 = scmp.ge.s32.totalorder %s4840_s18, 2  ;;  %s4213_s30 = sand.u32 1, %s4820_s13  }
 0x784   : > { %s4214_s22 = scalar_lea.sflag [#allocation3], %s4213_s30 }
 0x785   : > { %p4558_p3 = pnand %p4561_p2, %p4953_p8 }
 0x787   : > { %4815 = dma.done.wait (!%p4558_p3), %s4214_s22, 256  }
 0x788   : > { %4817 = vsyncadd (!%p4558_p3), %s4214_s22, 4294967040  ;;  %s23_s18 = sadd.s32 1, %s4840_s18   ;;  %s8394_s13 = smov %s4824_s14 }
 0x789   : > { %p20_p5 = scmp.ge.s32.totalorder %s23_s18, 4   ;;  %s8395_s14 = smov %s4828_s15 }
 0x78a   : > { %s8396_s15 = smov %s4959_s26  ;;  %s8397_s16 = smov %s4836_s17 }
 0x78b   : > { %s8398_s17 = smov %s8400_s21  ;;  %22 = sbr.rel (!%p20_p5) target bundleno = 4 (0x4), region = 95 }
 0x792   :  { %4219 = vsyncpa [#allocation3], 1 }
 0x793   :  { %4221 = vsyncpa [#allocation3 + $0x1], 1 }

</bundles_post_ra>
